<compile_context>
chip_gen: v7x
topology: tpu7x:2x2x1
jax: 0.10.0
libtpu: 0.0.40
codegen_flags: <defaults>
</compile_context>

<pallas_src>
import math
import functools

import jax
import jax.numpy as jnp
import numpy as np
from jax.experimental import pallas as pl
from jax.experimental.pallas import tpu as pltpu


# ---------------------------------------------------------------------------
# Pallas kernel: Bb batch elements per grid step
# ---------------------------------------------------------------------------
def decoder_block_kernel(
    q_ref, k_ref, v_ref, trg_mask_ref, src_mask_ref,
    wq1_ref, bq1_ref, wk1_ref, bk1_ref, wv1_ref, bv1_ref, wo1_ref, bo1_ref,
    wq2_ref, bq2_ref, wk2_ref, bk2_ref, wv2_ref, bv2_ref, wo2_ref, bo2_ref,
    wf1_ref, bf1_ref, wf2_ref, bf2_ref,
    g0_ref, be0_ref, g1_ref, be1_ref, g2_ref, be2_ref,
    out_ref, *, n_heads, eps):

    Bb, N, D = q_ref.shape
    M = k_ref.shape[1]
    H = n_heads
    A = D // H
    bf16 = jnp.bfloat16
    NEG = jnp.float32(-1e20)

    # Fold batch into the row dimension for all big matmuls (N, M multiples of 8 in the
    # demo -> layout-free reshape).  Residual stream stays f32.
    x_all = q_ref[...].reshape(Bb * N, D)     # (Bb*N, D) f32
    kx_all = k_ref[...].reshape(Bb * M, D)    # (Bb*M, D) f32
    vx_all = v_ref[...].reshape(Bb * M, D)    # (Bb*M, D) f32
    trg_m = trg_mask_ref[...]                 # (H*N, N) f32 {0,1}
    src_m = src_mask_ref[...]                 # (H*N, M) f32 {0,1}

    def layernorm(x, g, b):                   # f32 (VPU) math throughout
        mean = jnp.mean(x, axis=-1, keepdims=True)
        var = jnp.mean((x - mean) ** 2, axis=-1, keepdims=True)
        return (x - mean) * jax.lax.rsqrt(var + eps) * g + b

    # contract last axis of both operands => Q @ K^T without materializing K^T (no XLU)
    dimnums = (((1,), (1,)), ((), ()))

    def attention(xq, xk, xv, mask_t, wq, bq, wk, bk, wv, bv, wo, bo):
        m_len = xk.shape[0] // Bb
        # Fused block-diagonal, pre-transposed, scale-folded projections: one bf16 MXU
        # matmul each over all batch rows, f32 accumulation, f32 bias add.
        qp = jnp.dot(xq.astype(bf16), wq, preferred_element_type=jnp.float32) + bq
        kp = jnp.dot(xk.astype(bf16), wk, preferred_element_type=jnp.float32) + bk
        vp = (jnp.dot(xv.astype(bf16), wv, preferred_element_type=jnp.float32) + bv
              ).astype(bf16)
        outs = []
        for b in range(Bb):
            qb = qp[b * N:(b + 1) * N, :].astype(bf16)
            kb = kp[b * m_len:(b + 1) * m_len, :].astype(bf16)
            vb = vp[b * m_len:(b + 1) * m_len, :]
            # per-head QK^T tiles stacked along the sublane axis -> ONE softmax pass
            s = jnp.concatenate(
                [jax.lax.dot_general(qb[:, h * A:(h + 1) * A],
                                     kb[:, h * A:(h + 1) * A],
                                     dimnums, preferred_element_type=jnp.float32)
                 for h in range(H)], axis=0)                        # (H*N, M) f32 (scaled)
            s = jnp.where(mask_t == 0.0, NEG, s)                    # exact masked_fill
            s = s - jnp.max(s, axis=-1, keepdims=True)
            p = jnp.exp(s)
            dist = (p * pl.reciprocal(jnp.sum(p, axis=-1, keepdims=True),
                                      approx=True)).astype(bf16)    # divide on the EUP

            # per-head PV + output projection folded together, accumulated in registers
            def head_out(h):
                lo, hi = h * A, (h + 1) * A
                ctx = jnp.dot(dist[h * N:(h + 1) * N, :], vb[:, lo:hi],
                              preferred_element_type=jnp.float32)   # (N, A)
                return jnp.dot(ctx.astype(bf16), wo[lo:hi, :],
                               preferred_element_type=jnp.float32)  # (N, D)

            acc = head_out(0)
            for h in range(1, H):
                acc = acc + head_out(h)
            outs.append(acc)
        return jnp.concatenate(outs, axis=0) + bo                   # (Bb*N, D) f32

    # masked self-attention + residual + LN0
    a1 = attention(x_all, x_all, x_all, trg_m,
                   wq1_ref[...], bq1_ref[...], wk1_ref[...], bk1_ref[...],
                   wv1_ref[...], bv1_ref[...], wo1_ref[...], bo1_ref[...])
    fst = layernorm(a1 + x_all, g0_ref[...], be0_ref[...])

    # encoder-decoder attention + residual + LN1
    a2 = attention(fst, kx_all, vx_all, src_m,
                   wq2_ref[...], bq2_ref[...], wk2_ref[...], bk2_ref[...],
                   wv2_ref[...], bv2_ref[...], wo2_ref[...], bo2_ref[...])
    snd = layernorm(a2 + fst, g1_ref[...], be1_ref[...])

    # feed-forward (Linear -> ReLU -> Linear) + residual + LN2  (weights pre-transposed)
    hdd = jnp.maximum(
        jnp.dot(snd.astype(bf16), wf1_ref[...],
                preferred_element_type=jnp.float32) + bf1_ref[...], 0.0)
    ff = jnp.dot(hdd.astype(bf16), wf2_ref[...],
                 preferred_element_type=jnp.float32) + bf2_ref[...]
    out = layernorm(ff + snd, g2_ref[...], be2_ref[...])

    # single full-width store (reshape is layout-free for N % 8 == 0)
    out_ref[...] = out.reshape(Bb, N, D).astype(out_ref.dtype)


# ---------------------------------------------------------------------------
# Wrapper: host-side weight fusion + pallas_call
# ---------------------------------------------------------------------------
def decoder_block(params, query, key, value, src_mask, trg_mask,
                  n_dim, n_heads, batch_block=None):
    B, N, D = query.shape
    M = key.shape[1]
    H = n_heads
    A = n_dim // n_heads
    eps = float(n_dim)   # nn.LayerNorm(n_dim, n_dim): second positional arg is eps

    # ---- host-side weight fusion / pre-transposition (done once, outside the kernel)
    #      block-diag kron keeps Q/K/V as ONE matmul each; fine at small D.
    # TODO(synk): at production D/H, switch to a head-batched dot_general instead of the
    #             kron block-diagonal (it multiplies weight VMEM/FLOPs by H with zeros).
    scale = 1.0 / math.sqrt(A)
    eyeH = jnp.eye(H, dtype=jnp.float32)
    bd = lambda w: jnp.kron(eyeH, w.T)       # per-head (A,A) -> block-diag (D,D), pre-T
    tb = lambda b: jnp.tile(b, (1, H))       # per-head (1,A) -> (1,D)
    w16 = lambda w: w.astype(jnp.bfloat16)   # MXU operands in bf16
    f32 = lambda x: x.astype(jnp.float32)    # biases / LN params stay f32

    f = {
        'wq1': w16(bd(params['wq1']) * scale), 'bq1': f32(tb(params['bq1']) * scale),
        'wk1': w16(bd(params['wk1'])),         'bk1': f32(tb(params['bk1'])),
        'wv1': w16(bd(params['wv1'])),         'bv1': f32(tb(params['bv1'])),
        'wo1': w16(params['wo1'].T),           'bo1': f32(params['bo1']),
        'wq2': w16(bd(params['wq2']) * scale), 'bq2': f32(tb(params['bq2']) * scale),
        'wk2': w16(bd(params['wk2'])),         'bk2': f32(tb(params['bk2'])),
        'wv2': w16(bd(params['wv2'])),         'bv2': f32(tb(params['bv2'])),
        'wo2': w16(params['wo2'].T),           'bo2': f32(params['bo2']),
        'wf1': w16(params['wf1'].T),           'bf1': f32(params['bf1']),
        'wf2': w16(params['wf2'].T),           'bf2': f32(params['bf2']),
        'g0': f32(params['g0']), 'be0': f32(params['be0']),
        'g1': f32(params['g1']), 'be1': f32(params['be1']),
        'g2': f32(params['g2']), 'be2': f32(params['be2']),
    }
    pnames = ['wq1', 'bq1', 'wk1', 'bk1', 'wv1', 'bv1', 'wo1', 'bo1',
              'wq2', 'bq2', 'wk2', 'bk2', 'wv2', 'bv2', 'wo2', 'bo2',
              'wf1', 'bf1', 'wf2', 'bf2',
              'g0', 'be0', 'g1', 'be1', 'g2', 'be2']
    plist = [f[n] for n in pnames]

    # masks -> f32 {0,1}, tiled across heads once on the host; the kernel applies
    # exact masked_fill semantics (fully-masked rows give a uniform distribution).
    # TODO(synk): for large N generate the causal mask in-kernel from broadcasted_iota
    #             instead of shipping an O(H*N^2) resident array (matters on v7x VMEM).
    trg_m = jnp.tile((trg_mask != 0).astype(jnp.float32), (H, 1))   # (H*N, N)
    src_m = jnp.tile((src_mask != 0).astype(jnp.float32), (H, 1))   # (H*N, M)

    # ---- VMEM budget & batch-block sizing
    try:
        vmem_cap = int(pltpu.get_tpu_info().vmem_capacity_bytes)
    except Exception:
        vmem_cap = 64 * 1024 * 1024            # conservative fallback: v7x per-TC VMEM
    vmem_budget = int(0.75 * vmem_cap)

    weights_bytes = sum(int(np.prod(p.shape)) * p.dtype.itemsize for p in plist)
    masks_bytes = (trg_m.size + src_m.size) * 4
    F = params['wf1'].shape[0]                 # forward_expansion

    def footprint(bb):
        io = 4 * bb * (2 * N * D + 2 * M * D)                       # f32 q,k,v,out blocks
        work = 4 * bb * (4 * N * D + 2 * M * D + N * max(D, F))     # in-kernel activations
        return 2 * io + weights_bytes + masks_bytes + work          # 2x: double-buffered

    if batch_block is None:
        # Fill the MXU rows (>=256 rows/step targets the v6e/v7x 256-row MXU); if the
        # whole batch cannot feed two such steps, use a single grid step (per-step
        # overhead ~0.35us dominates and a 2nd v7x TC could not be kept busy anyway).
        target_rows = 256
        if B * N >= 2 * target_rows:
            cand = min(B, max(1, target_rows // max(N, 1)))
        else:
            cand = B
        while B % cand:
            cand -= 1
        while cand > 1 and footprint(cand) > vmem_budget:
            cand -= 1
            while B % cand:
                cand -= 1
        batch_block = cand
    Bb = batch_block
    assert B % Bb == 0

    vmem_limit = int(min(vmem_budget, max(32 * 1024 * 1024, 4 * footprint(Bb))))

    def full_spec(shape):
        nd = len(shape)
        return pl.BlockSpec(shape, lambda i, _nd=nd: (0,) * _nd)

    in_specs = [
        pl.BlockSpec((Bb, N, D), lambda i: (i, 0, 0)),   # query
        pl.BlockSpec((Bb, M, D), lambda i: (i, 0, 0)),   # key
        pl.BlockSpec((Bb, M, D), lambda i: (i, 0, 0)),   # value
        full_spec(trg_m.shape),                          # trg mask (H*N, N)
        full_spec(src_m.shape),                          # src mask (H*N, M)
    ] + [full_spec(p.shape) for p in plist]

    kernel = functools.partial(decoder_block_kernel, n_heads=n_heads, eps=eps)

    return pl.pallas_call(
        kernel,
        out_shape=jax.ShapeDtypeStruct((B, N, D), jnp.float32),
        grid=(B // Bb,),
        in_specs=in_specs,
        out_specs=pl.BlockSpec((Bb, N, D), lambda i: (i, 0, 0)),
        compiler_params=pltpu.CompilerParams(
            dimension_semantics=("parallel",),
            vmem_limit_bytes=vmem_limit),
    )(query, key, value, trg_m, src_m, *plist)


# ---------------------------------------------------------------------------
# Deterministic parameter init (mirrors PyTorch nn.Linear / nn.LayerNorm init)
# ---------------------------------------------------------------------------
def _init_linear(key, out_dim, in_dim):
    k1, k2 = jax.random.split(key)
    bound = 1.0 / math.sqrt(in_dim)
    W = jax.random.uniform(k1, (out_dim, in_dim), jnp.float32, -bound, bound)
    b = jax.random.uniform(k2, (1, out_dim), jnp.float32, -bound, bound)
    return W, b


def make_params(rng, n_dim, n_heads, forward_expansion):
    A = n_dim // n_heads
    keys = jax.random.split(rng, 16)
    p = {}
    p['wq1'], p['bq1'] = _init_linear(keys[0], A, A)
    p['wk1'], p['bk1'] = _init_linear(keys[1], A, A)
    p['wv1'], p['bv1'] = _init_linear(keys[2], A, A)
    p['wo1'], p['bo1'] = _init_linear(keys[3], n_dim, n_dim)
    p['wq2'], p['bq2'] = _init_linear(keys[4], A, A)
    p['wk2'], p['bk2'] = _init_linear(keys[5], A, A)
    p['wv2'], p['bv2'] = _init_linear(keys[6], A, A)
    p['wo2'], p['bo2'] = _init_linear(keys[7], n_dim, n_dim)
    p['wf1'], p['bf1'] = _init_linear(keys[8], forward_expansion, n_dim)
    p['wf2'], p['bf2'] = _init_linear(keys[9], n_dim, forward_expansion)
    for g, b in [('g0', 'be0'), ('g1', 'be1'), ('g2', 'be2')]:
        p[g] = jnp.ones((1, n_dim), jnp.float32)
        p[b] = jnp.zeros((1, n_dim), jnp.float32)
    return p


# ---------------------------------------------------------------------------
# Pure-JAX reference (mirrors the PyTorch forward, full f32) for correctness checking
# ---------------------------------------------------------------------------
def _ref_attention(xq, xk, xv, mask, wq, bq, wk, bk, wv, bv, wo, bo, H, A):
    B, N, D = xq.shape
    M = xk.shape[1]
    q = xq.reshape(B, N, H, A) @ wq.T + bq[0]
    k = xk.reshape(B, M, H, A) @ wk.T + bk[0]
    v = xv.reshape(B, M, H, A) @ wv.T + bv[0]
    energy = jnp.einsum('bnha,bmha->bhnm', q, k) / np.sqrt(A)
    energy = jnp.where(mask == 0, -1e20, energy)
    dist = jax.nn.softmax(energy, axis=3)
    attn = jnp.einsum('bhnm,bmha->bnha', dist, v).reshape(B, N, D)
    return attn @ wo.T + bo[0]


def _ref_ln(x, g, b, eps):
    mean = jnp.mean(x, axis=-1, keepdims=True)
    var = jnp.mean((x - mean) ** 2, axis=-1, keepdims=True)
    return (x - mean) / jnp.sqrt(var + eps) * g[0] + b[0]


def decoder_block_ref(p, query, key, value, src_mask, trg_mask, n_dim, n_heads):
    A = n_dim // n_heads
    eps = float(n_dim)
    a1 = _ref_attention(query, query, query, trg_mask,
                        p['wq1'], p['bq1'], p['wk1'], p['bk1'],
                        p['wv1'], p['bv1'], p['wo1'], p['bo1'], n_heads, A)
    fst = _ref_ln(a1 + query, p['g0'], p['be0'], eps)
    a2 = _ref_attention(fst, key, value, src_mask,
                        p['wq2'], p['bq2'], p['wk2'], p['bk2'],
                        p['wv2'], p['bv2'], p['wo2'], p['bo2'], n_heads, A)
    snd = _ref_ln(a2 + fst, p['g1'], p['be1'], eps)
    ff = jnp.maximum(snd @ p['wf1'].T + p['bf1'][0], 0.0) @ p['wf2'].T + p['bf2'][0]
    return _ref_ln(ff + snd, p['g2'], p['be2'], eps)


# ---------------------------------------------------------------------------
if __name__ == "__main__":
    B, N, M = 2, 8, 8            # batch, target seq len, source seq len
    n_dim, n_heads = 32, 4       # model dim, heads (atten_size = 8)
    forward_expansion = 64

    rng = jax.random.PRNGKey(0)
    kq, kk, kv, kp = jax.random.split(rng, 4)
    query = jax.random.normal(kq, (B, N, n_dim), jnp.float32)
    key = jax.random.normal(kk, (B, M, n_dim), jnp.float32)
    value = jax.random.normal(kv, (B, M, n_dim), jnp.float32)

    trg_mask = jnp.tril(jnp.ones((N, N), jnp.int32))   # causal decoder mask
    src_mask = jnp.ones((N, M), jnp.int32)             # no source masking

    params = make_params(kp, n_dim, n_heads, forward_expansion)

    out = decoder_block(params, query, key, value, src_mask, trg_mask,
                        n_dim, n_heads)
    out = jax.block_until_ready(out)

    ref = decoder_block_ref(params, query, key, value, src_mask, trg_mask,
                            n_dim, n_heads)
    # bf16 MXU operands (+ approx reciprocal) vs a pure-f32 reference: bf16-level tolerance.
    np.testing.assert_allclose(np.asarray(out), np.asarray(ref),
                               rtol=2e-2, atol=2e-2)
    print("KERNEL_OK")
</pallas_src>

<mosaic_0001>
module attributes {stable_mosaic.version = 11 : i64} {
  func.func @decoder_block_kernel(%arg0: i32, %arg1: memref<2x8x32xf32, #tpu.memory_space<vmem>>, %arg2: memref<2x8x32xf32, #tpu.memory_space<vmem>>, %arg3: memref<2x8x32xf32, #tpu.memory_space<vmem>>, %arg4: memref<32x8xf32, #tpu.memory_space<vmem>>, %arg5: memref<32x8xf32, #tpu.memory_space<vmem>>, %arg6: memref<32x32xbf16, #tpu.memory_space<vmem>>, %arg7: memref<1x32xf32, #tpu.memory_space<vmem>>, %arg8: memref<32x32xbf16, #tpu.memory_space<vmem>>, %arg9: memref<1x32xf32, #tpu.memory_space<vmem>>, %arg10: memref<32x32xbf16, #tpu.memory_space<vmem>>, %arg11: memref<1x32xf32, #tpu.memory_space<vmem>>, %arg12: memref<32x32xbf16, #tpu.memory_space<vmem>>, %arg13: memref<1x32xf32, #tpu.memory_space<vmem>>, %arg14: memref<32x32xbf16, #tpu.memory_space<vmem>>, %arg15: memref<1x32xf32, #tpu.memory_space<vmem>>, %arg16: memref<32x32xbf16, #tpu.memory_space<vmem>>, %arg17: memref<1x32xf32, #tpu.memory_space<vmem>>, %arg18: memref<32x32xbf16, #tpu.memory_space<vmem>>, %arg19: memref<1x32xf32, #tpu.memory_space<vmem>>, %arg20: memref<32x32xbf16, #tpu.memory_space<vmem>>, %arg21: memref<1x32xf32, #tpu.memory_space<vmem>>, %arg22: memref<32x64xbf16, #tpu.memory_space<vmem>>, %arg23: memref<1x64xf32, #tpu.memory_space<vmem>>, %arg24: memref<64x32xbf16, #tpu.memory_space<vmem>>, %arg25: memref<1x32xf32, #tpu.memory_space<vmem>>, %arg26: memref<1x32xf32, #tpu.memory_space<vmem>>, %arg27: memref<1x32xf32, #tpu.memory_space<vmem>>, %arg28: memref<1x32xf32, #tpu.memory_space<vmem>>, %arg29: memref<1x32xf32, #tpu.memory_space<vmem>>, %arg30: memref<1x32xf32, #tpu.memory_space<vmem>>, %arg31: memref<1x32xf32, #tpu.memory_space<vmem>>, %arg32: memref<2x8x32xf32, #tpu.memory_space<vmem>>) attributes {dimension_semantics = [#tpu.dimension_semantics<parallel>], iteration_bounds = array<i64: 1>, scalar_prefetch = 0 : i64, scratch_operands = 0 : i64, tpu.core_type = #tpu.core_type<tc>, window_params = [{transform_indices = @transform_0, window_bounds = array<i64: 2, 8, 32>}, {transform_indices = @transform_1, window_bounds = array<i64: 2, 8, 32>}, {transform_indices = @transform_2, window_bounds = array<i64: 2, 8, 32>}, {pipeline_mode = #tpu.pipeline_mode<synchronous>, transform_indices = @transform_3, window_bounds = array<i64: 32, 8>}, {pipeline_mode = #tpu.pipeline_mode<synchronous>, transform_indices = @transform_4, window_bounds = array<i64: 32, 8>}, {pipeline_mode = #tpu.pipeline_mode<synchronous>, transform_indices = @transform_5, window_bounds = array<i64: 32, 32>}, {pipeline_mode = #tpu.pipeline_mode<synchronous>, transform_indices = @transform_6, window_bounds = array<i64: 1, 32>}, {pipeline_mode = #tpu.pipeline_mode<synchronous>, transform_indices = @transform_7, window_bounds = array<i64: 32, 32>}, {pipeline_mode = #tpu.pipeline_mode<synchronous>, transform_indices = @transform_8, window_bounds = array<i64: 1, 32>}, {pipeline_mode = #tpu.pipeline_mode<synchronous>, transform_indices = @transform_9, window_bounds = array<i64: 32, 32>}, {pipeline_mode = #tpu.pipeline_mode<synchronous>, transform_indices = @transform_10, window_bounds = array<i64: 1, 32>}, {pipeline_mode = #tpu.pipeline_mode<synchronous>, transform_indices = @transform_11, window_bounds = array<i64: 32, 32>}, {pipeline_mode = #tpu.pipeline_mode<synchronous>, transform_indices = @transform_12, window_bounds = array<i64: 1, 32>}, {pipeline_mode = #tpu.pipeline_mode<synchronous>, transform_indices = @transform_13, window_bounds = array<i64: 32, 32>}, {pipeline_mode = #tpu.pipeline_mode<synchronous>, transform_indices = @transform_14, window_bounds = array<i64: 1, 32>}, {pipeline_mode = #tpu.pipeline_mode<synchronous>, transform_indices = @transform_15, window_bounds = array<i64: 32, 32>}, {pipeline_mode = #tpu.pipeline_mode<synchronous>, transform_indices = @transform_16, window_bounds = array<i64: 1, 32>}, {pipeline_mode = #tpu.pipeline_mode<synchronous>, transform_indices = @transform_17, window_bounds = array<i64: 32, 32>}, {pipeline_mode = #tpu.pipeline_mode<synchronous>, transform_indices = @transform_18, window_bounds = array<i64: 1, 32>}, {pipeline_mode = #tpu.pipeline_mode<synchronous>, transform_indices = @transform_19, window_bounds = array<i64: 32, 32>}, {pipeline_mode = #tpu.pipeline_mode<synchronous>, transform_indices = @transform_20, window_bounds = array<i64: 1, 32>}, {pipeline_mode = #tpu.pipeline_mode<synchronous>, transform_indices = @transform_21, window_bounds = array<i64: 32, 64>}, {pipeline_mode = #tpu.pipeline_mode<synchronous>, transform_indices = @transform_22, window_bounds = array<i64: 1, 64>}, {pipeline_mode = #tpu.pipeline_mode<synchronous>, transform_indices = @transform_23, window_bounds = array<i64: 64, 32>}, {pipeline_mode = #tpu.pipeline_mode<synchronous>, transform_indices = @transform_24, window_bounds = array<i64: 1, 32>}, {pipeline_mode = #tpu.pipeline_mode<synchronous>, transform_indices = @transform_25, window_bounds = array<i64: 1, 32>}, {pipeline_mode = #tpu.pipeline_mode<synchronous>, transform_indices = @transform_26, window_bounds = array<i64: 1, 32>}, {pipeline_mode = #tpu.pipeline_mode<synchronous>, transform_indices = @transform_27, window_bounds = array<i64: 1, 32>}, {pipeline_mode = #tpu.pipeline_mode<synchronous>, transform_indices = @transform_28, window_bounds = array<i64: 1, 32>}, {pipeline_mode = #tpu.pipeline_mode<synchronous>, transform_indices = @transform_29, window_bounds = array<i64: 1, 32>}, {pipeline_mode = #tpu.pipeline_mode<synchronous>, transform_indices = @transform_30, window_bounds = array<i64: 1, 32>}, {transform_indices = @transform_31, window_bounds = array<i64: 2, 8, 32>}]} {
    %c0 = arith.constant 0 : index
    %c0_0 = arith.constant 0 : index
    %c0_1 = arith.constant 0 : index
    %0 = vector.load %arg1[%c0, %c0_0, %c0_1] : memref<2x8x32xf32, #tpu.memory_space<vmem>>, vector<2x8x32xf32>
    %1 = vector.shape_cast %0 : vector<2x8x32xf32> to vector<16x32xf32>
    %c0_2 = arith.constant 0 : index
    %c0_3 = arith.constant 0 : index
    %c0_4 = arith.constant 0 : index
    %2 = vector.load %arg2[%c0_2, %c0_3, %c0_4] : memref<2x8x32xf32, #tpu.memory_space<vmem>>, vector<2x8x32xf32>
    %3 = vector.shape_cast %2 : vector<2x8x32xf32> to vector<16x32xf32>
    %c0_5 = arith.constant 0 : index
    %c0_6 = arith.constant 0 : index
    %c0_7 = arith.constant 0 : index
    %4 = vector.load %arg3[%c0_5, %c0_6, %c0_7] : memref<2x8x32xf32, #tpu.memory_space<vmem>>, vector<2x8x32xf32>
    %5 = vector.shape_cast %4 : vector<2x8x32xf32> to vector<16x32xf32>
    %c0_8 = arith.constant 0 : index
    %c0_9 = arith.constant 0 : index
    %6 = vector.load %arg4[%c0_8, %c0_9] : memref<32x8xf32, #tpu.memory_space<vmem>>, vector<32x8xf32>
    %c0_10 = arith.constant 0 : index
    %c0_11 = arith.constant 0 : index
    %7 = vector.load %arg5[%c0_10, %c0_11] : memref<32x8xf32, #tpu.memory_space<vmem>>, vector<32x8xf32>
    %c0_12 = arith.constant 0 : index
    %c0_13 = arith.constant 0 : index
    %8 = vector.load %arg6[%c0_12, %c0_13] : memref<32x32xbf16, #tpu.memory_space<vmem>>, vector<32x32xbf16>
    %c0_14 = arith.constant 0 : index
    %c0_15 = arith.constant 0 : index
    %9 = vector.load %arg7[%c0_14, %c0_15] : memref<1x32xf32, #tpu.memory_space<vmem>>, vector<1x32xf32>
    %c0_16 = arith.constant 0 : index
    %c0_17 = arith.constant 0 : index
    %10 = vector.load %arg8[%c0_16, %c0_17] : memref<32x32xbf16, #tpu.memory_space<vmem>>, vector<32x32xbf16>
    %c0_18 = arith.constant 0 : index
    %c0_19 = arith.constant 0 : index
    %11 = vector.load %arg9[%c0_18, %c0_19] : memref<1x32xf32, #tpu.memory_space<vmem>>, vector<1x32xf32>
    %c0_20 = arith.constant 0 : index
    %c0_21 = arith.constant 0 : index
    %12 = vector.load %arg10[%c0_20, %c0_21] : memref<32x32xbf16, #tpu.memory_space<vmem>>, vector<32x32xbf16>
    %c0_22 = arith.constant 0 : index
    %c0_23 = arith.constant 0 : index
    %13 = vector.load %arg11[%c0_22, %c0_23] : memref<1x32xf32, #tpu.memory_space<vmem>>, vector<1x32xf32>
    %c0_24 = arith.constant 0 : index
    %c0_25 = arith.constant 0 : index
    %14 = vector.load %arg12[%c0_24, %c0_25] : memref<32x32xbf16, #tpu.memory_space<vmem>>, vector<32x32xbf16>
    %c0_26 = arith.constant 0 : index
    %c0_27 = arith.constant 0 : index
    %15 = vector.load %arg13[%c0_26, %c0_27] : memref<1x32xf32, #tpu.memory_space<vmem>>, vector<1x32xf32>
    %16 = arith.truncf %1 : vector<16x32xf32> to vector<16x32xbf16>
    %cst = arith.constant dense<0.000000e+00> : vector<16x32xf32>
    %17 = tpu.matmul %16, %8, %cst {dimension_numbers = #tpu.dot_dimension_numbers<[1], [0], [0], [1], [0, 0, 1, 1], [], []>} : vector<16x32xbf16>, vector<32x32xbf16>, vector<16x32xf32> -> vector<16x32xf32>
    %18 = vector.broadcast %9 : vector<1x32xf32> to vector<16x32xf32>
    %19 = arith.addf %17, %18 : vector<16x32xf32>
    %20 = arith.truncf %1 : vector<16x32xf32> to vector<16x32xbf16>
    %cst_28 = arith.constant dense<0.000000e+00> : vector<16x32xf32>
    %21 = tpu.matmul %20, %10, %cst_28 {dimension_numbers = #tpu.dot_dimension_numbers<[1], [0], [0], [1], [0, 0, 1, 1], [], []>} : vector<16x32xbf16>, vector<32x32xbf16>, vector<16x32xf32> -> vector<16x32xf32>
    %22 = vector.broadcast %11 : vector<1x32xf32> to vector<16x32xf32>
    %23 = arith.addf %21, %22 : vector<16x32xf32>
    %24 = arith.truncf %1 : vector<16x32xf32> to vector<16x32xbf16>
    %cst_29 = arith.constant dense<0.000000e+00> : vector<16x32xf32>
    %25 = tpu.matmul %24, %12, %cst_29 {dimension_numbers = #tpu.dot_dimension_numbers<[1], [0], [0], [1], [0, 0, 1, 1], [], []>} : vector<16x32xbf16>, vector<32x32xbf16>, vector<16x32xf32> -> vector<16x32xf32>
    %26 = vector.broadcast %13 : vector<1x32xf32> to vector<16x32xf32>
    %27 = arith.addf %25, %26 : vector<16x32xf32>
    %28 = arith.truncf %27 : vector<16x32xf32> to vector<16x32xbf16>
    %29 = vector.extract_strided_slice %19 {offsets = [0, 0], sizes = [8, 32], strides = [1, 1]} : vector<16x32xf32> to vector<8x32xf32>
    %30 = arith.truncf %29 : vector<8x32xf32> to vector<8x32xbf16>
    %31 = vector.extract_strided_slice %23 {offsets = [0, 0], sizes = [8, 32], strides = [1, 1]} : vector<16x32xf32> to vector<8x32xf32>
    %32 = arith.truncf %31 : vector<8x32xf32> to vector<8x32xbf16>
    %33 = vector.extract_strided_slice %28 {offsets = [0, 0], sizes = [8, 32], strides = [1, 1]} : vector<16x32xbf16> to vector<8x32xbf16>
    %34 = vector.extract_strided_slice %30 {offsets = [0, 0], sizes = [8, 8], strides = [1, 1]} : vector<8x32xbf16> to vector<8x8xbf16>
    %35 = vector.extract_strided_slice %32 {offsets = [0, 0], sizes = [8, 8], strides = [1, 1]} : vector<8x32xbf16> to vector<8x8xbf16>
    %cst_30 = arith.constant dense<0.000000e+00> : vector<8x8xf32>
    %36 = tpu.matmul %34, %35, %cst_30 {dimension_numbers = #tpu.dot_dimension_numbers<[1], [1], [0], [0], [0, 0, 1, 0], [], []>} : vector<8x8xbf16>, vector<8x8xbf16>, vector<8x8xf32> -> vector<8x8xf32>
    %37 = vector.extract_strided_slice %30 {offsets = [0, 8], sizes = [8, 8], strides = [1, 1]} : vector<8x32xbf16> to vector<8x8xbf16>
    %38 = vector.extract_strided_slice %32 {offsets = [0, 8], sizes = [8, 8], strides = [1, 1]} : vector<8x32xbf16> to vector<8x8xbf16>
    %cst_31 = arith.constant dense<0.000000e+00> : vector<8x8xf32>
    %39 = tpu.matmul %37, %38, %cst_31 {dimension_numbers = #tpu.dot_dimension_numbers<[1], [1], [0], [0], [0, 0, 1, 0], [], []>} : vector<8x8xbf16>, vector<8x8xbf16>, vector<8x8xf32> -> vector<8x8xf32>
    %40 = vector.extract_strided_slice %30 {offsets = [0, 16], sizes = [8, 8], strides = [1, 1]} : vector<8x32xbf16> to vector<8x8xbf16>
    %41 = vector.extract_strided_slice %32 {offsets = [0, 16], sizes = [8, 8], strides = [1, 1]} : vector<8x32xbf16> to vector<8x8xbf16>
    %cst_32 = arith.constant dense<0.000000e+00> : vector<8x8xf32>
    %42 = tpu.matmul %40, %41, %cst_32 {dimension_numbers = #tpu.dot_dimension_numbers<[1], [1], [0], [0], [0, 0, 1, 0], [], []>} : vector<8x8xbf16>, vector<8x8xbf16>, vector<8x8xf32> -> vector<8x8xf32>
    %43 = vector.extract_strided_slice %30 {offsets = [0, 24], sizes = [8, 8], strides = [1, 1]} : vector<8x32xbf16> to vector<8x8xbf16>
    %44 = vector.extract_strided_slice %32 {offsets = [0, 24], sizes = [8, 8], strides = [1, 1]} : vector<8x32xbf16> to vector<8x8xbf16>
    %cst_33 = arith.constant dense<0.000000e+00> : vector<8x8xf32>
    %45 = tpu.matmul %43, %44, %cst_33 {dimension_numbers = #tpu.dot_dimension_numbers<[1], [1], [0], [0], [0, 0, 1, 0], [], []>} : vector<8x8xbf16>, vector<8x8xbf16>, vector<8x8xf32> -> vector<8x8xf32>
    %46 = tpu.concatenate %36, %39, %42, %45 in 0 : vector<8x8xf32>, vector<8x8xf32>, vector<8x8xf32>, vector<8x8xf32> -> vector<32x8xf32>
    %cst_34 = arith.constant 0.000000e+00 : f32
    %47 = vector.broadcast %cst_34 : f32 to vector<32x8xf32>
    %48 = arith.cmpf oeq, %6, %47 : vector<32x8xf32>
    %cst_35 = arith.constant -1.000000e+20 : f32
    %49 = vector.broadcast %cst_35 : f32 to vector<32x8xf32>
    %50 = arith.select %48, %49, %46 : vector<32x8xi1>, vector<32x8xf32>
    %cst_36 = arith.constant dense<0xFF800000> : vector<32xf32>
    %51 = vector.multi_reduction <maximumf>, %50, %cst_36 [1] : vector<32x8xf32> to vector<32xf32>
    %52 = vector.shape_cast %51 : vector<32xf32> to vector<32x1xf32>
    %53 = vector.broadcast %52 : vector<32x1xf32> to vector<32x8xf32>
    %54 = arith.subf %50, %53 : vector<32x8xf32>
    %55 = math.exp %54 : vector<32x8xf32>
    %cst_37 = arith.constant dense<0.000000e+00> : vector<32xf32>
    %56 = vector.multi_reduction <add>, %55, %cst_37 [1] : vector<32x8xf32> to vector<32xf32>
    %57 = vector.shape_cast %56 : vector<32xf32> to vector<32x1xf32>
    %58 = tpu.reciprocal %57 {approx = true} : vector<32x1xf32> -> vector<32x1xf32>
    %59 = vector.broadcast %58 : vector<32x1xf32> to vector<32x8xf32>
    %60 = arith.mulf %55, %59 : vector<32x8xf32>
    %61 = arith.truncf %60 : vector<32x8xf32> to vector<32x8xbf16>
    %62 = vector.extract_strided_slice %61 {offsets = [0, 0], sizes = [8, 8], strides = [1, 1]} : vector<32x8xbf16> to vector<8x8xbf16>
    %63 = vector.extract_strided_slice %33 {offsets = [0, 0], sizes = [8, 8], strides = [1, 1]} : vector<8x32xbf16> to vector<8x8xbf16>
    %cst_38 = arith.constant dense<0.000000e+00> : vector<8x8xf32>
    %64 = tpu.matmul %62, %63, %cst_38 {dimension_numbers = #tpu.dot_dimension_numbers<[1], [0], [0], [1], [0, 0, 1, 1], [], []>} : vector<8x8xbf16>, vector<8x8xbf16>, vector<8x8xf32> -> vector<8x8xf32>
    %65 = arith.truncf %64 : vector<8x8xf32> to vector<8x8xbf16>
    %66 = vector.extract_strided_slice %14 {offsets = [0, 0], sizes = [8, 32], strides = [1, 1]} : vector<32x32xbf16> to vector<8x32xbf16>
    %cst_39 = arith.constant dense<0.000000e+00> : vector<8x32xf32>
    %67 = tpu.matmul %65, %66, %cst_39 {dimension_numbers = #tpu.dot_dimension_numbers<[1], [0], [0], [1], [0, 0, 1, 1], [], []>} : vector<8x8xbf16>, vector<8x32xbf16>, vector<8x32xf32> -> vector<8x32xf32>
    %68 = vector.extract_strided_slice %61 {offsets = [8, 0], sizes = [8, 8], strides = [1, 1]} : vector<32x8xbf16> to vector<8x8xbf16>
    %69 = vector.extract_strided_slice %33 {offsets = [0, 8], sizes = [8, 8], strides = [1, 1]} : vector<8x32xbf16> to vector<8x8xbf16>
    %cst_40 = arith.constant dense<0.000000e+00> : vector<8x8xf32>
    %70 = tpu.matmul %68, %69, %cst_40 {dimension_numbers = #tpu.dot_dimension_numbers<[1], [0], [0], [1], [0, 0, 1, 1], [], []>} : vector<8x8xbf16>, vector<8x8xbf16>, vector<8x8xf32> -> vector<8x8xf32>
    %71 = arith.truncf %70 : vector<8x8xf32> to vector<8x8xbf16>
    %72 = vector.extract_strided_slice %14 {offsets = [8, 0], sizes = [8, 32], strides = [1, 1]} : vector<32x32xbf16> to vector<8x32xbf16>
    %cst_41 = arith.constant dense<0.000000e+00> : vector<8x32xf32>
    %73 = tpu.matmul %71, %72, %cst_41 {dimension_numbers = #tpu.dot_dimension_numbers<[1], [0], [0], [1], [0, 0, 1, 1], [], []>} : vector<8x8xbf16>, vector<8x32xbf16>, vector<8x32xf32> -> vector<8x32xf32>
    %74 = arith.addf %67, %73 : vector<8x32xf32>
    %75 = vector.extract_strided_slice %61 {offsets = [16, 0], sizes = [8, 8], strides = [1, 1]} : vector<32x8xbf16> to vector<8x8xbf16>
    %76 = vector.extract_strided_slice %33 {offsets = [0, 16], sizes = [8, 8], strides = [1, 1]} : vector<8x32xbf16> to vector<8x8xbf16>
    %cst_42 = arith.constant dense<0.000000e+00> : vector<8x8xf32>
    %77 = tpu.matmul %75, %76, %cst_42 {dimension_numbers = #tpu.dot_dimension_numbers<[1], [0], [0], [1], [0, 0, 1, 1], [], []>} : vector<8x8xbf16>, vector<8x8xbf16>, vector<8x8xf32> -> vector<8x8xf32>
    %78 = arith.truncf %77 : vector<8x8xf32> to vector<8x8xbf16>
    %79 = vector.extract_strided_slice %14 {offsets = [16, 0], sizes = [8, 32], strides = [1, 1]} : vector<32x32xbf16> to vector<8x32xbf16>
    %cst_43 = arith.constant dense<0.000000e+00> : vector<8x32xf32>
    %80 = tpu.matmul %78, %79, %cst_43 {dimension_numbers = #tpu.dot_dimension_numbers<[1], [0], [0], [1], [0, 0, 1, 1], [], []>} : vector<8x8xbf16>, vector<8x32xbf16>, vector<8x32xf32> -> vector<8x32xf32>
    %81 = arith.addf %74, %80 : vector<8x32xf32>
    %82 = vector.extract_strided_slice %61 {offsets = [24, 0], sizes = [8, 8], strides = [1, 1]} : vector<32x8xbf16> to vector<8x8xbf16>
    %83 = vector.extract_strided_slice %33 {offsets = [0, 24], sizes = [8, 8], strides = [1, 1]} : vector<8x32xbf16> to vector<8x8xbf16>
    %cst_44 = arith.constant dense<0.000000e+00> : vector<8x8xf32>
    %84 = tpu.matmul %82, %83, %cst_44 {dimension_numbers = #tpu.dot_dimension_numbers<[1], [0], [0], [1], [0, 0, 1, 1], [], []>} : vector<8x8xbf16>, vector<8x8xbf16>, vector<8x8xf32> -> vector<8x8xf32>
    %85 = arith.truncf %84 : vector<8x8xf32> to vector<8x8xbf16>
    %86 = vector.extract_strided_slice %14 {offsets = [24, 0], sizes = [8, 32], strides = [1, 1]} : vector<32x32xbf16> to vector<8x32xbf16>
    %cst_45 = arith.constant dense<0.000000e+00> : vector<8x32xf32>
    %87 = tpu.matmul %85, %86, %cst_45 {dimension_numbers = #tpu.dot_dimension_numbers<[1], [0], [0], [1], [0, 0, 1, 1], [], []>} : vector<8x8xbf16>, vector<8x32xbf16>, vector<8x32xf32> -> vector<8x32xf32>
    %88 = arith.addf %81, %87 : vector<8x32xf32>
    %89 = vector.extract_strided_slice %19 {offsets = [8, 0], sizes = [8, 32], strides = [1, 1]} : vector<16x32xf32> to vector<8x32xf32>
    %90 = arith.truncf %89 : vector<8x32xf32> to vector<8x32xbf16>
    %91 = vector.extract_strided_slice %23 {offsets = [8, 0], sizes = [8, 32], strides = [1, 1]} : vector<16x32xf32> to vector<8x32xf32>
    %92 = arith.truncf %91 : vector<8x32xf32> to vector<8x32xbf16>
    %93 = vector.extract_strided_slice %28 {offsets = [8, 0], sizes = [8, 32], strides = [1, 1]} : vector<16x32xbf16> to vector<8x32xbf16>
    %94 = vector.extract_strided_slice %90 {offsets = [0, 0], sizes = [8, 8], strides = [1, 1]} : vector<8x32xbf16> to vector<8x8xbf16>
    %95 = vector.extract_strided_slice %92 {offsets = [0, 0], sizes = [8, 8], strides = [1, 1]} : vector<8x32xbf16> to vector<8x8xbf16>
    %cst_46 = arith.constant dense<0.000000e+00> : vector<8x8xf32>
    %96 = tpu.matmul %94, %95, %cst_46 {dimension_numbers = #tpu.dot_dimension_numbers<[1], [1], [0], [0], [0, 0, 1, 0], [], []>} : vector<8x8xbf16>, vector<8x8xbf16>, vector<8x8xf32> -> vector<8x8xf32>
    %97 = vector.extract_strided_slice %90 {offsets = [0, 8], sizes = [8, 8], strides = [1, 1]} : vector<8x32xbf16> to vector<8x8xbf16>
    %98 = vector.extract_strided_slice %92 {offsets = [0, 8], sizes = [8, 8], strides = [1, 1]} : vector<8x32xbf16> to vector<8x8xbf16>
    %cst_47 = arith.constant dense<0.000000e+00> : vector<8x8xf32>
    %99 = tpu.matmul %97, %98, %cst_47 {dimension_numbers = #tpu.dot_dimension_numbers<[1], [1], [0], [0], [0, 0, 1, 0], [], []>} : vector<8x8xbf16>, vector<8x8xbf16>, vector<8x8xf32> -> vector<8x8xf32>
    %100 = vector.extract_strided_slice %90 {offsets = [0, 16], sizes = [8, 8], strides = [1, 1]} : vector<8x32xbf16> to vector<8x8xbf16>
    %101 = vector.extract_strided_slice %92 {offsets = [0, 16], sizes = [8, 8], strides = [1, 1]} : vector<8x32xbf16> to vector<8x8xbf16>
    %cst_48 = arith.constant dense<0.000000e+00> : vector<8x8xf32>
    %102 = tpu.matmul %100, %101, %cst_48 {dimension_numbers = #tpu.dot_dimension_numbers<[1], [1], [0], [0], [0, 0, 1, 0], [], []>} : vector<8x8xbf16>, vector<8x8xbf16>, vector<8x8xf32> -> vector<8x8xf32>
    %103 = vector.extract_strided_slice %90 {offsets = [0, 24], sizes = [8, 8], strides = [1, 1]} : vector<8x32xbf16> to vector<8x8xbf16>
    %104 = vector.extract_strided_slice %92 {offsets = [0, 24], sizes = [8, 8], strides = [1, 1]} : vector<8x32xbf16> to vector<8x8xbf16>
    %cst_49 = arith.constant dense<0.000000e+00> : vector<8x8xf32>
    %105 = tpu.matmul %103, %104, %cst_49 {dimension_numbers = #tpu.dot_dimension_numbers<[1], [1], [0], [0], [0, 0, 1, 0], [], []>} : vector<8x8xbf16>, vector<8x8xbf16>, vector<8x8xf32> -> vector<8x8xf32>
    %106 = tpu.concatenate %96, %99, %102, %105 in 0 : vector<8x8xf32>, vector<8x8xf32>, vector<8x8xf32>, vector<8x8xf32> -> vector<32x8xf32>
    %cst_50 = arith.constant 0.000000e+00 : f32
    %107 = vector.broadcast %cst_50 : f32 to vector<32x8xf32>
    %108 = arith.cmpf oeq, %6, %107 : vector<32x8xf32>
    %cst_51 = arith.constant -1.000000e+20 : f32
    %109 = vector.broadcast %cst_51 : f32 to vector<32x8xf32>
    %110 = arith.select %108, %109, %106 : vector<32x8xi1>, vector<32x8xf32>
    %cst_52 = arith.constant dense<0xFF800000> : vector<32xf32>
    %111 = vector.multi_reduction <maximumf>, %110, %cst_52 [1] : vector<32x8xf32> to vector<32xf32>
    %112 = vector.shape_cast %111 : vector<32xf32> to vector<32x1xf32>
    %113 = vector.broadcast %112 : vector<32x1xf32> to vector<32x8xf32>
    %114 = arith.subf %110, %113 : vector<32x8xf32>
    %115 = math.exp %114 : vector<32x8xf32>
    %cst_53 = arith.constant dense<0.000000e+00> : vector<32xf32>
    %116 = vector.multi_reduction <add>, %115, %cst_53 [1] : vector<32x8xf32> to vector<32xf32>
    %117 = vector.shape_cast %116 : vector<32xf32> to vector<32x1xf32>
    %118 = tpu.reciprocal %117 {approx = true} : vector<32x1xf32> -> vector<32x1xf32>
    %119 = vector.broadcast %118 : vector<32x1xf32> to vector<32x8xf32>
    %120 = arith.mulf %115, %119 : vector<32x8xf32>
    %121 = arith.truncf %120 : vector<32x8xf32> to vector<32x8xbf16>
    %122 = vector.extract_strided_slice %121 {offsets = [0, 0], sizes = [8, 8], strides = [1, 1]} : vector<32x8xbf16> to vector<8x8xbf16>
    %123 = vector.extract_strided_slice %93 {offsets = [0, 0], sizes = [8, 8], strides = [1, 1]} : vector<8x32xbf16> to vector<8x8xbf16>
    %cst_54 = arith.constant dense<0.000000e+00> : vector<8x8xf32>
    %124 = tpu.matmul %122, %123, %cst_54 {dimension_numbers = #tpu.dot_dimension_numbers<[1], [0], [0], [1], [0, 0, 1, 1], [], []>} : vector<8x8xbf16>, vector<8x8xbf16>, vector<8x8xf32> -> vector<8x8xf32>
    %125 = arith.truncf %124 : vector<8x8xf32> to vector<8x8xbf16>
    %126 = vector.extract_strided_slice %14 {offsets = [0, 0], sizes = [8, 32], strides = [1, 1]} : vector<32x32xbf16> to vector<8x32xbf16>
    %cst_55 = arith.constant dense<0.000000e+00> : vector<8x32xf32>
    %127 = tpu.matmul %125, %126, %cst_55 {dimension_numbers = #tpu.dot_dimension_numbers<[1], [0], [0], [1], [0, 0, 1, 1], [], []>} : vector<8x8xbf16>, vector<8x32xbf16>, vector<8x32xf32> -> vector<8x32xf32>
    %128 = vector.extract_strided_slice %121 {offsets = [8, 0], sizes = [8, 8], strides = [1, 1]} : vector<32x8xbf16> to vector<8x8xbf16>
    %129 = vector.extract_strided_slice %93 {offsets = [0, 8], sizes = [8, 8], strides = [1, 1]} : vector<8x32xbf16> to vector<8x8xbf16>
    %cst_56 = arith.constant dense<0.000000e+00> : vector<8x8xf32>
    %130 = tpu.matmul %128, %129, %cst_56 {dimension_numbers = #tpu.dot_dimension_numbers<[1], [0], [0], [1], [0, 0, 1, 1], [], []>} : vector<8x8xbf16>, vector<8x8xbf16>, vector<8x8xf32> -> vector<8x8xf32>
    %131 = arith.truncf %130 : vector<8x8xf32> to vector<8x8xbf16>
    %132 = vector.extract_strided_slice %14 {offsets = [8, 0], sizes = [8, 32], strides = [1, 1]} : vector<32x32xbf16> to vector<8x32xbf16>
    %cst_57 = arith.constant dense<0.000000e+00> : vector<8x32xf32>
    %133 = tpu.matmul %131, %132, %cst_57 {dimension_numbers = #tpu.dot_dimension_numbers<[1], [0], [0], [1], [0, 0, 1, 1], [], []>} : vector<8x8xbf16>, vector<8x32xbf16>, vector<8x32xf32> -> vector<8x32xf32>
    %134 = arith.addf %127, %133 : vector<8x32xf32>
    %135 = vector.extract_strided_slice %121 {offsets = [16, 0], sizes = [8, 8], strides = [1, 1]} : vector<32x8xbf16> to vector<8x8xbf16>
    %136 = vector.extract_strided_slice %93 {offsets = [0, 16], sizes = [8, 8], strides = [1, 1]} : vector<8x32xbf16> to vector<8x8xbf16>
    %cst_58 = arith.constant dense<0.000000e+00> : vector<8x8xf32>
    %137 = tpu.matmul %135, %136, %cst_58 {dimension_numbers = #tpu.dot_dimension_numbers<[1], [0], [0], [1], [0, 0, 1, 1], [], []>} : vector<8x8xbf16>, vector<8x8xbf16>, vector<8x8xf32> -> vector<8x8xf32>
    %138 = arith.truncf %137 : vector<8x8xf32> to vector<8x8xbf16>
    %139 = vector.extract_strided_slice %14 {offsets = [16, 0], sizes = [8, 32], strides = [1, 1]} : vector<32x32xbf16> to vector<8x32xbf16>
    %cst_59 = arith.constant dense<0.000000e+00> : vector<8x32xf32>
    %140 = tpu.matmul %138, %139, %cst_59 {dimension_numbers = #tpu.dot_dimension_numbers<[1], [0], [0], [1], [0, 0, 1, 1], [], []>} : vector<8x8xbf16>, vector<8x32xbf16>, vector<8x32xf32> -> vector<8x32xf32>
    %141 = arith.addf %134, %140 : vector<8x32xf32>
    %142 = vector.extract_strided_slice %121 {offsets = [24, 0], sizes = [8, 8], strides = [1, 1]} : vector<32x8xbf16> to vector<8x8xbf16>
    %143 = vector.extract_strided_slice %93 {offsets = [0, 24], sizes = [8, 8], strides = [1, 1]} : vector<8x32xbf16> to vector<8x8xbf16>
    %cst_60 = arith.constant dense<0.000000e+00> : vector<8x8xf32>
    %144 = tpu.matmul %142, %143, %cst_60 {dimension_numbers = #tpu.dot_dimension_numbers<[1], [0], [0], [1], [0, 0, 1, 1], [], []>} : vector<8x8xbf16>, vector<8x8xbf16>, vector<8x8xf32> -> vector<8x8xf32>
    %145 = arith.truncf %144 : vector<8x8xf32> to vector<8x8xbf16>
    %146 = vector.extract_strided_slice %14 {offsets = [24, 0], sizes = [8, 32], strides = [1, 1]} : vector<32x32xbf16> to vector<8x32xbf16>
    %cst_61 = arith.constant dense<0.000000e+00> : vector<8x32xf32>
    %147 = tpu.matmul %145, %146, %cst_61 {dimension_numbers = #tpu.dot_dimension_numbers<[1], [0], [0], [1], [0, 0, 1, 1], [], []>} : vector<8x8xbf16>, vector<8x32xbf16>, vector<8x32xf32> -> vector<8x32xf32>
    %148 = arith.addf %141, %147 : vector<8x32xf32>
    %149 = tpu.concatenate %88, %148 in 0 : vector<8x32xf32>, vector<8x32xf32> -> vector<16x32xf32>
    %150 = vector.broadcast %15 : vector<1x32xf32> to vector<16x32xf32>
    %151 = arith.addf %149, %150 : vector<16x32xf32>
    %152 = arith.addf %151, %1 : vector<16x32xf32>
    %c0_62 = arith.constant 0 : index
    %c0_63 = arith.constant 0 : index
    %153 = vector.load %arg26[%c0_62, %c0_63] : memref<1x32xf32, #tpu.memory_space<vmem>>, vector<1x32xf32>
    %c0_64 = arith.constant 0 : index
    %c0_65 = arith.constant 0 : index
    %154 = vector.load %arg27[%c0_64, %c0_65] : memref<1x32xf32, #tpu.memory_space<vmem>>, vector<1x32xf32>
    %cst_66 = arith.constant dense<0.000000e+00> : vector<16xf32>
    %155 = vector.multi_reduction <add>, %152, %cst_66 [1] : vector<16x32xf32> to vector<16xf32>
    %156 = vector.shape_cast %155 : vector<16xf32> to vector<16x1xf32>
    %cst_67 = arith.constant 3.200000e+01 : f32
    %157 = vector.broadcast %cst_67 : f32 to vector<16x1xf32>
    %158 = arith.divf %156, %157 : vector<16x1xf32>
    %159 = vector.broadcast %158 : vector<16x1xf32> to vector<16x32xf32>
    %160 = arith.subf %152, %159 : vector<16x32xf32>
    %161 = arith.mulf %160, %160 : vector<16x32xf32>
    %cst_68 = arith.constant dense<0.000000e+00> : vector<16xf32>
    %162 = vector.multi_reduction <add>, %161, %cst_68 [1] : vector<16x32xf32> to vector<16xf32>
    %163 = vector.shape_cast %162 : vector<16xf32> to vector<16x1xf32>
    %cst_69 = arith.constant 3.200000e+01 : f32
    %164 = vector.broadcast %cst_69 : f32 to vector<16x1xf32>
    %165 = arith.divf %163, %164 : vector<16x1xf32>
    %166 = vector.broadcast %158 : vector<16x1xf32> to vector<16x32xf32>
    %167 = arith.subf %152, %166 : vector<16x32xf32>
    %cst_70 = arith.constant 3.200000e+01 : f32
    %168 = vector.broadcast %cst_70 : f32 to vector<16x1xf32>
    %169 = arith.addf %165, %168 : vector<16x1xf32>
    %170 = math.rsqrt %169 : vector<16x1xf32>
    %171 = vector.broadcast %170 : vector<16x1xf32> to vector<16x32xf32>
    %172 = arith.mulf %167, %171 : vector<16x32xf32>
    %173 = vector.broadcast %153 : vector<1x32xf32> to vector<16x32xf32>
    %174 = arith.mulf %172, %173 : vector<16x32xf32>
    %175 = vector.broadcast %154 : vector<1x32xf32> to vector<16x32xf32>
    %176 = arith.addf %174, %175 : vector<16x32xf32>
    %c0_71 = arith.constant 0 : index
    %c0_72 = arith.constant 0 : index
    %177 = vector.load %arg14[%c0_71, %c0_72] : memref<32x32xbf16, #tpu.memory_space<vmem>>, vector<32x32xbf16>
    %c0_73 = arith.constant 0 : index
    %c0_74 = arith.constant 0 : index
    %178 = vector.load %arg15[%c0_73, %c0_74] : memref<1x32xf32, #tpu.memory_space<vmem>>, vector<1x32xf32>
    %c0_75 = arith.constant 0 : index
    %c0_76 = arith.constant 0 : index
    %179 = vector.load %arg16[%c0_75, %c0_76] : memref<32x32xbf16, #tpu.memory_space<vmem>>, vector<32x32xbf16>
    %c0_77 = arith.constant 0 : index
    %c0_78 = arith.constant 0 : index
    %180 = vector.load %arg17[%c0_77, %c0_78] : memref<1x32xf32, #tpu.memory_space<vmem>>, vector<1x32xf32>
    %c0_79 = arith.constant 0 : index
    %c0_80 = arith.constant 0 : index
    %181 = vector.load %arg18[%c0_79, %c0_80] : memref<32x32xbf16, #tpu.memory_space<vmem>>, vector<32x32xbf16>
    %c0_81 = arith.constant 0 : index
    %c0_82 = arith.constant 0 : index
    %182 = vector.load %arg19[%c0_81, %c0_82] : memref<1x32xf32, #tpu.memory_space<vmem>>, vector<1x32xf32>
    %c0_83 = arith.constant 0 : index
    %c0_84 = arith.constant 0 : index
    %183 = vector.load %arg20[%c0_83, %c0_84] : memref<32x32xbf16, #tpu.memory_space<vmem>>, vector<32x32xbf16>
    %c0_85 = arith.constant 0 : index
    %c0_86 = arith.constant 0 : index
    %184 = vector.load %arg21[%c0_85, %c0_86] : memref<1x32xf32, #tpu.memory_space<vmem>>, vector<1x32xf32>
    %185 = arith.truncf %176 : vector<16x32xf32> to vector<16x32xbf16>
    %cst_87 = arith.constant dense<0.000000e+00> : vector<16x32xf32>
    %186 = tpu.matmul %185, %177, %cst_87 {dimension_numbers = #tpu.dot_dimension_numbers<[1], [0], [0], [1], [0, 0, 1, 1], [], []>} : vector<16x32xbf16>, vector<32x32xbf16>, vector<16x32xf32> -> vector<16x32xf32>
    %187 = vector.broadcast %178 : vector<1x32xf32> to vector<16x32xf32>
    %188 = arith.addf %186, %187 : vector<16x32xf32>
    %189 = arith.truncf %3 : vector<16x32xf32> to vector<16x32xbf16>
    %cst_88 = arith.constant dense<0.000000e+00> : vector<16x32xf32>
    %190 = tpu.matmul %189, %179, %cst_88 {dimension_numbers = #tpu.dot_dimension_numbers<[1], [0], [0], [1], [0, 0, 1, 1], [], []>} : vector<16x32xbf16>, vector<32x32xbf16>, vector<16x32xf32> -> vector<16x32xf32>
    %191 = vector.broadcast %180 : vector<1x32xf32> to vector<16x32xf32>
    %192 = arith.addf %190, %191 : vector<16x32xf32>
    %193 = arith.truncf %5 : vector<16x32xf32> to vector<16x32xbf16>
    %cst_89 = arith.constant dense<0.000000e+00> : vector<16x32xf32>
    %194 = tpu.matmul %193, %181, %cst_89 {dimension_numbers = #tpu.dot_dimension_numbers<[1], [0], [0], [1], [0, 0, 1, 1], [], []>} : vector<16x32xbf16>, vector<32x32xbf16>, vector<16x32xf32> -> vector<16x32xf32>
    %195 = vector.broadcast %182 : vector<1x32xf32> to vector<16x32xf32>
    %196 = arith.addf %194, %195 : vector<16x32xf32>
    %197 = arith.truncf %196 : vector<16x32xf32> to vector<16x32xbf16>
    %198 = vector.extract_strided_slice %188 {offsets = [0, 0], sizes = [8, 32], strides = [1, 1]} : vector<16x32xf32> to vector<8x32xf32>
    %199 = arith.truncf %198 : vector<8x32xf32> to vector<8x32xbf16>
    %200 = vector.extract_strided_slice %192 {offsets = [0, 0], sizes = [8, 32], strides = [1, 1]} : vector<16x32xf32> to vector<8x32xf32>
    %201 = arith.truncf %200 : vector<8x32xf32> to vector<8x32xbf16>
    %202 = vector.extract_strided_slice %197 {offsets = [0, 0], sizes = [8, 32], strides = [1, 1]} : vector<16x32xbf16> to vector<8x32xbf16>
    %203 = vector.extract_strided_slice %199 {offsets = [0, 0], sizes = [8, 8], strides = [1, 1]} : vector<8x32xbf16> to vector<8x8xbf16>
    %204 = vector.extract_strided_slice %201 {offsets = [0, 0], sizes = [8, 8], strides = [1, 1]} : vector<8x32xbf16> to vector<8x8xbf16>
    %cst_90 = arith.constant dense<0.000000e+00> : vector<8x8xf32>
    %205 = tpu.matmul %203, %204, %cst_90 {dimension_numbers = #tpu.dot_dimension_numbers<[1], [1], [0], [0], [0, 0, 1, 0], [], []>} : vector<8x8xbf16>, vector<8x8xbf16>, vector<8x8xf32> -> vector<8x8xf32>
    %206 = vector.extract_strided_slice %199 {offsets = [0, 8], sizes = [8, 8], strides = [1, 1]} : vector<8x32xbf16> to vector<8x8xbf16>
    %207 = vector.extract_strided_slice %201 {offsets = [0, 8], sizes = [8, 8], strides = [1, 1]} : vector<8x32xbf16> to vector<8x8xbf16>
    %cst_91 = arith.constant dense<0.000000e+00> : vector<8x8xf32>
    %208 = tpu.matmul %206, %207, %cst_91 {dimension_numbers = #tpu.dot_dimension_numbers<[1], [1], [0], [0], [0, 0, 1, 0], [], []>} : vector<8x8xbf16>, vector<8x8xbf16>, vector<8x8xf32> -> vector<8x8xf32>
    %209 = vector.extract_strided_slice %199 {offsets = [0, 16], sizes = [8, 8], strides = [1, 1]} : vector<8x32xbf16> to vector<8x8xbf16>
    %210 = vector.extract_strided_slice %201 {offsets = [0, 16], sizes = [8, 8], strides = [1, 1]} : vector<8x32xbf16> to vector<8x8xbf16>
    %cst_92 = arith.constant dense<0.000000e+00> : vector<8x8xf32>
    %211 = tpu.matmul %209, %210, %cst_92 {dimension_numbers = #tpu.dot_dimension_numbers<[1], [1], [0], [0], [0, 0, 1, 0], [], []>} : vector<8x8xbf16>, vector<8x8xbf16>, vector<8x8xf32> -> vector<8x8xf32>
    %212 = vector.extract_strided_slice %199 {offsets = [0, 24], sizes = [8, 8], strides = [1, 1]} : vector<8x32xbf16> to vector<8x8xbf16>
    %213 = vector.extract_strided_slice %201 {offsets = [0, 24], sizes = [8, 8], strides = [1, 1]} : vector<8x32xbf16> to vector<8x8xbf16>
    %cst_93 = arith.constant dense<0.000000e+00> : vector<8x8xf32>
    %214 = tpu.matmul %212, %213, %cst_93 {dimension_numbers = #tpu.dot_dimension_numbers<[1], [1], [0], [0], [0, 0, 1, 0], [], []>} : vector<8x8xbf16>, vector<8x8xbf16>, vector<8x8xf32> -> vector<8x8xf32>
    %215 = tpu.concatenate %205, %208, %211, %214 in 0 : vector<8x8xf32>, vector<8x8xf32>, vector<8x8xf32>, vector<8x8xf32> -> vector<32x8xf32>
    %cst_94 = arith.constant 0.000000e+00 : f32
    %216 = vector.broadcast %cst_94 : f32 to vector<32x8xf32>
    %217 = arith.cmpf oeq, %7, %216 : vector<32x8xf32>
    %cst_95 = arith.constant -1.000000e+20 : f32
    %218 = vector.broadcast %cst_95 : f32 to vector<32x8xf32>
    %219 = arith.select %217, %218, %215 : vector<32x8xi1>, vector<32x8xf32>
    %cst_96 = arith.constant dense<0xFF800000> : vector<32xf32>
    %220 = vector.multi_reduction <maximumf>, %219, %cst_96 [1] : vector<32x8xf32> to vector<32xf32>
    %221 = vector.shape_cast %220 : vector<32xf32> to vector<32x1xf32>
    %222 = vector.broadcast %221 : vector<32x1xf32> to vector<32x8xf32>
    %223 = arith.subf %219, %222 : vector<32x8xf32>
    %224 = math.exp %223 : vector<32x8xf32>
    %cst_97 = arith.constant dense<0.000000e+00> : vector<32xf32>
    %225 = vector.multi_reduction <add>, %224, %cst_97 [1] : vector<32x8xf32> to vector<32xf32>
    %226 = vector.shape_cast %225 : vector<32xf32> to vector<32x1xf32>
    %227 = tpu.reciprocal %226 {approx = true} : vector<32x1xf32> -> vector<32x1xf32>
    %228 = vector.broadcast %227 : vector<32x1xf32> to vector<32x8xf32>
    %229 = arith.mulf %224, %228 : vector<32x8xf32>
    %230 = arith.truncf %229 : vector<32x8xf32> to vector<32x8xbf16>
    %231 = vector.extract_strided_slice %230 {offsets = [0, 0], sizes = [8, 8], strides = [1, 1]} : vector<32x8xbf16> to vector<8x8xbf16>
    %232 = vector.extract_strided_slice %202 {offsets = [0, 0], sizes = [8, 8], strides = [1, 1]} : vector<8x32xbf16> to vector<8x8xbf16>
    %cst_98 = arith.constant dense<0.000000e+00> : vector<8x8xf32>
    %233 = tpu.matmul %231, %232, %cst_98 {dimension_numbers = #tpu.dot_dimension_numbers<[1], [0], [0], [1], [0, 0, 1, 1], [], []>} : vector<8x8xbf16>, vector<8x8xbf16>, vector<8x8xf32> -> vector<8x8xf32>
    %234 = arith.truncf %233 : vector<8x8xf32> to vector<8x8xbf16>
    %235 = vector.extract_strided_slice %183 {offsets = [0, 0], sizes = [8, 32], strides = [1, 1]} : vector<32x32xbf16> to vector<8x32xbf16>
    %cst_99 = arith.constant dense<0.000000e+00> : vector<8x32xf32>
    %236 = tpu.matmul %234, %235, %cst_99 {dimension_numbers = #tpu.dot_dimension_numbers<[1], [0], [0], [1], [0, 0, 1, 1], [], []>} : vector<8x8xbf16>, vector<8x32xbf16>, vector<8x32xf32> -> vector<8x32xf32>
    %237 = vector.extract_strided_slice %230 {offsets = [8, 0], sizes = [8, 8], strides = [1, 1]} : vector<32x8xbf16> to vector<8x8xbf16>
    %238 = vector.extract_strided_slice %202 {offsets = [0, 8], sizes = [8, 8], strides = [1, 1]} : vector<8x32xbf16> to vector<8x8xbf16>
    %cst_100 = arith.constant dense<0.000000e+00> : vector<8x8xf32>
    %239 = tpu.matmul %237, %238, %cst_100 {dimension_numbers = #tpu.dot_dimension_numbers<[1], [0], [0], [1], [0, 0, 1, 1], [], []>} : vector<8x8xbf16>, vector<8x8xbf16>, vector<8x8xf32> -> vector<8x8xf32>
    %240 = arith.truncf %239 : vector<8x8xf32> to vector<8x8xbf16>
    %241 = vector.extract_strided_slice %183 {offsets = [8, 0], sizes = [8, 32], strides = [1, 1]} : vector<32x32xbf16> to vector<8x32xbf16>
    %cst_101 = arith.constant dense<0.000000e+00> : vector<8x32xf32>
    %242 = tpu.matmul %240, %241, %cst_101 {dimension_numbers = #tpu.dot_dimension_numbers<[1], [0], [0], [1], [0, 0, 1, 1], [], []>} : vector<8x8xbf16>, vector<8x32xbf16>, vector<8x32xf32> -> vector<8x32xf32>
    %243 = arith.addf %236, %242 : vector<8x32xf32>
    %244 = vector.extract_strided_slice %230 {offsets = [16, 0], sizes = [8, 8], strides = [1, 1]} : vector<32x8xbf16> to vector<8x8xbf16>
    %245 = vector.extract_strided_slice %202 {offsets = [0, 16], sizes = [8, 8], strides = [1, 1]} : vector<8x32xbf16> to vector<8x8xbf16>
    %cst_102 = arith.constant dense<0.000000e+00> : vector<8x8xf32>
    %246 = tpu.matmul %244, %245, %cst_102 {dimension_numbers = #tpu.dot_dimension_numbers<[1], [0], [0], [1], [0, 0, 1, 1], [], []>} : vector<8x8xbf16>, vector<8x8xbf16>, vector<8x8xf32> -> vector<8x8xf32>
    %247 = arith.truncf %246 : vector<8x8xf32> to vector<8x8xbf16>
    %248 = vector.extract_strided_slice %183 {offsets = [16, 0], sizes = [8, 32], strides = [1, 1]} : vector<32x32xbf16> to vector<8x32xbf16>
    %cst_103 = arith.constant dense<0.000000e+00> : vector<8x32xf32>
    %249 = tpu.matmul %247, %248, %cst_103 {dimension_numbers = #tpu.dot_dimension_numbers<[1], [0], [0], [1], [0, 0, 1, 1], [], []>} : vector<8x8xbf16>, vector<8x32xbf16>, vector<8x32xf32> -> vector<8x32xf32>
    %250 = arith.addf %243, %249 : vector<8x32xf32>
    %251 = vector.extract_strided_slice %230 {offsets = [24, 0], sizes = [8, 8], strides = [1, 1]} : vector<32x8xbf16> to vector<8x8xbf16>
    %252 = vector.extract_strided_slice %202 {offsets = [0, 24], sizes = [8, 8], strides = [1, 1]} : vector<8x32xbf16> to vector<8x8xbf16>
    %cst_104 = arith.constant dense<0.000000e+00> : vector<8x8xf32>
    %253 = tpu.matmul %251, %252, %cst_104 {dimension_numbers = #tpu.dot_dimension_numbers<[1], [0], [0], [1], [0, 0, 1, 1], [], []>} : vector<8x8xbf16>, vector<8x8xbf16>, vector<8x8xf32> -> vector<8x8xf32>
    %254 = arith.truncf %253 : vector<8x8xf32> to vector<8x8xbf16>
    %255 = vector.extract_strided_slice %183 {offsets = [24, 0], sizes = [8, 32], strides = [1, 1]} : vector<32x32xbf16> to vector<8x32xbf16>
    %cst_105 = arith.constant dense<0.000000e+00> : vector<8x32xf32>
    %256 = tpu.matmul %254, %255, %cst_105 {dimension_numbers = #tpu.dot_dimension_numbers<[1], [0], [0], [1], [0, 0, 1, 1], [], []>} : vector<8x8xbf16>, vector<8x32xbf16>, vector<8x32xf32> -> vector<8x32xf32>
    %257 = arith.addf %250, %256 : vector<8x32xf32>
    %258 = vector.extract_strided_slice %188 {offsets = [8, 0], sizes = [8, 32], strides = [1, 1]} : vector<16x32xf32> to vector<8x32xf32>
    %259 = arith.truncf %258 : vector<8x32xf32> to vector<8x32xbf16>
    %260 = vector.extract_strided_slice %192 {offsets = [8, 0], sizes = [8, 32], strides = [1, 1]} : vector<16x32xf32> to vector<8x32xf32>
    %261 = arith.truncf %260 : vector<8x32xf32> to vector<8x32xbf16>
    %262 = vector.extract_strided_slice %197 {offsets = [8, 0], sizes = [8, 32], strides = [1, 1]} : vector<16x32xbf16> to vector<8x32xbf16>
    %263 = vector.extract_strided_slice %259 {offsets = [0, 0], sizes = [8, 8], strides = [1, 1]} : vector<8x32xbf16> to vector<8x8xbf16>
    %264 = vector.extract_strided_slice %261 {offsets = [0, 0], sizes = [8, 8], strides = [1, 1]} : vector<8x32xbf16> to vector<8x8xbf16>
    %cst_106 = arith.constant dense<0.000000e+00> : vector<8x8xf32>
    %265 = tpu.matmul %263, %264, %cst_106 {dimension_numbers = #tpu.dot_dimension_numbers<[1], [1], [0], [0], [0, 0, 1, 0], [], []>} : vector<8x8xbf16>, vector<8x8xbf16>, vector<8x8xf32> -> vector<8x8xf32>
    %266 = vector.extract_strided_slice %259 {offsets = [0, 8], sizes = [8, 8], strides = [1, 1]} : vector<8x32xbf16> to vector<8x8xbf16>
    %267 = vector.extract_strided_slice %261 {offsets = [0, 8], sizes = [8, 8], strides = [1, 1]} : vector<8x32xbf16> to vector<8x8xbf16>
    %cst_107 = arith.constant dense<0.000000e+00> : vector<8x8xf32>
    %268 = tpu.matmul %266, %267, %cst_107 {dimension_numbers = #tpu.dot_dimension_numbers<[1], [1], [0], [0], [0, 0, 1, 0], [], []>} : vector<8x8xbf16>, vector<8x8xbf16>, vector<8x8xf32> -> vector<8x8xf32>
    %269 = vector.extract_strided_slice %259 {offsets = [0, 16], sizes = [8, 8], strides = [1, 1]} : vector<8x32xbf16> to vector<8x8xbf16>
    %270 = vector.extract_strided_slice %261 {offsets = [0, 16], sizes = [8, 8], strides = [1, 1]} : vector<8x32xbf16> to vector<8x8xbf16>
    %cst_108 = arith.constant dense<0.000000e+00> : vector<8x8xf32>
    %271 = tpu.matmul %269, %270, %cst_108 {dimension_numbers = #tpu.dot_dimension_numbers<[1], [1], [0], [0], [0, 0, 1, 0], [], []>} : vector<8x8xbf16>, vector<8x8xbf16>, vector<8x8xf32> -> vector<8x8xf32>
    %272 = vector.extract_strided_slice %259 {offsets = [0, 24], sizes = [8, 8], strides = [1, 1]} : vector<8x32xbf16> to vector<8x8xbf16>
    %273 = vector.extract_strided_slice %261 {offsets = [0, 24], sizes = [8, 8], strides = [1, 1]} : vector<8x32xbf16> to vector<8x8xbf16>
    %cst_109 = arith.constant dense<0.000000e+00> : vector<8x8xf32>
    %274 = tpu.matmul %272, %273, %cst_109 {dimension_numbers = #tpu.dot_dimension_numbers<[1], [1], [0], [0], [0, 0, 1, 0], [], []>} : vector<8x8xbf16>, vector<8x8xbf16>, vector<8x8xf32> -> vector<8x8xf32>
    %275 = tpu.concatenate %265, %268, %271, %274 in 0 : vector<8x8xf32>, vector<8x8xf32>, vector<8x8xf32>, vector<8x8xf32> -> vector<32x8xf32>
    %cst_110 = arith.constant 0.000000e+00 : f32
    %276 = vector.broadcast %cst_110 : f32 to vector<32x8xf32>
    %277 = arith.cmpf oeq, %7, %276 : vector<32x8xf32>
    %cst_111 = arith.constant -1.000000e+20 : f32
    %278 = vector.broadcast %cst_111 : f32 to vector<32x8xf32>
    %279 = arith.select %277, %278, %275 : vector<32x8xi1>, vector<32x8xf32>
    %cst_112 = arith.constant dense<0xFF800000> : vector<32xf32>
    %280 = vector.multi_reduction <maximumf>, %279, %cst_112 [1] : vector<32x8xf32> to vector<32xf32>
    %281 = vector.shape_cast %280 : vector<32xf32> to vector<32x1xf32>
    %282 = vector.broadcast %281 : vector<32x1xf32> to vector<32x8xf32>
    %283 = arith.subf %279, %282 : vector<32x8xf32>
    %284 = math.exp %283 : vector<32x8xf32>
    %cst_113 = arith.constant dense<0.000000e+00> : vector<32xf32>
    %285 = vector.multi_reduction <add>, %284, %cst_113 [1] : vector<32x8xf32> to vector<32xf32>
    %286 = vector.shape_cast %285 : vector<32xf32> to vector<32x1xf32>
    %287 = tpu.reciprocal %286 {approx = true} : vector<32x1xf32> -> vector<32x1xf32>
    %288 = vector.broadcast %287 : vector<32x1xf32> to vector<32x8xf32>
    %289 = arith.mulf %284, %288 : vector<32x8xf32>
    %290 = arith.truncf %289 : vector<32x8xf32> to vector<32x8xbf16>
    %291 = vector.extract_strided_slice %290 {offsets = [0, 0], sizes = [8, 8], strides = [1, 1]} : vector<32x8xbf16> to vector<8x8xbf16>
    %292 = vector.extract_strided_slice %262 {offsets = [0, 0], sizes = [8, 8], strides = [1, 1]} : vector<8x32xbf16> to vector<8x8xbf16>
    %cst_114 = arith.constant dense<0.000000e+00> : vector<8x8xf32>
    %293 = tpu.matmul %291, %292, %cst_114 {dimension_numbers = #tpu.dot_dimension_numbers<[1], [0], [0], [1], [0, 0, 1, 1], [], []>} : vector<8x8xbf16>, vector<8x8xbf16>, vector<8x8xf32> -> vector<8x8xf32>
    %294 = arith.truncf %293 : vector<8x8xf32> to vector<8x8xbf16>
    %295 = vector.extract_strided_slice %183 {offsets = [0, 0], sizes = [8, 32], strides = [1, 1]} : vector<32x32xbf16> to vector<8x32xbf16>
    %cst_115 = arith.constant dense<0.000000e+00> : vector<8x32xf32>
    %296 = tpu.matmul %294, %295, %cst_115 {dimension_numbers = #tpu.dot_dimension_numbers<[1], [0], [0], [1], [0, 0, 1, 1], [], []>} : vector<8x8xbf16>, vector<8x32xbf16>, vector<8x32xf32> -> vector<8x32xf32>
    %297 = vector.extract_strided_slice %290 {offsets = [8, 0], sizes = [8, 8], strides = [1, 1]} : vector<32x8xbf16> to vector<8x8xbf16>
    %298 = vector.extract_strided_slice %262 {offsets = [0, 8], sizes = [8, 8], strides = [1, 1]} : vector<8x32xbf16> to vector<8x8xbf16>
    %cst_116 = arith.constant dense<0.000000e+00> : vector<8x8xf32>
    %299 = tpu.matmul %297, %298, %cst_116 {dimension_numbers = #tpu.dot_dimension_numbers<[1], [0], [0], [1], [0, 0, 1, 1], [], []>} : vector<8x8xbf16>, vector<8x8xbf16>, vector<8x8xf32> -> vector<8x8xf32>
    %300 = arith.truncf %299 : vector<8x8xf32> to vector<8x8xbf16>
    %301 = vector.extract_strided_slice %183 {offsets = [8, 0], sizes = [8, 32], strides = [1, 1]} : vector<32x32xbf16> to vector<8x32xbf16>
    %cst_117 = arith.constant dense<0.000000e+00> : vector<8x32xf32>
    %302 = tpu.matmul %300, %301, %cst_117 {dimension_numbers = #tpu.dot_dimension_numbers<[1], [0], [0], [1], [0, 0, 1, 1], [], []>} : vector<8x8xbf16>, vector<8x32xbf16>, vector<8x32xf32> -> vector<8x32xf32>
    %303 = arith.addf %296, %302 : vector<8x32xf32>
    %304 = vector.extract_strided_slice %290 {offsets = [16, 0], sizes = [8, 8], strides = [1, 1]} : vector<32x8xbf16> to vector<8x8xbf16>
    %305 = vector.extract_strided_slice %262 {offsets = [0, 16], sizes = [8, 8], strides = [1, 1]} : vector<8x32xbf16> to vector<8x8xbf16>
    %cst_118 = arith.constant dense<0.000000e+00> : vector<8x8xf32>
    %306 = tpu.matmul %304, %305, %cst_118 {dimension_numbers = #tpu.dot_dimension_numbers<[1], [0], [0], [1], [0, 0, 1, 1], [], []>} : vector<8x8xbf16>, vector<8x8xbf16>, vector<8x8xf32> -> vector<8x8xf32>
    %307 = arith.truncf %306 : vector<8x8xf32> to vector<8x8xbf16>
    %308 = vector.extract_strided_slice %183 {offsets = [16, 0], sizes = [8, 32], strides = [1, 1]} : vector<32x32xbf16> to vector<8x32xbf16>
    %cst_119 = arith.constant dense<0.000000e+00> : vector<8x32xf32>
    %309 = tpu.matmul %307, %308, %cst_119 {dimension_numbers = #tpu.dot_dimension_numbers<[1], [0], [0], [1], [0, 0, 1, 1], [], []>} : vector<8x8xbf16>, vector<8x32xbf16>, vector<8x32xf32> -> vector<8x32xf32>
    %310 = arith.addf %303, %309 : vector<8x32xf32>
    %311 = vector.extract_strided_slice %290 {offsets = [24, 0], sizes = [8, 8], strides = [1, 1]} : vector<32x8xbf16> to vector<8x8xbf16>
    %312 = vector.extract_strided_slice %262 {offsets = [0, 24], sizes = [8, 8], strides = [1, 1]} : vector<8x32xbf16> to vector<8x8xbf16>
    %cst_120 = arith.constant dense<0.000000e+00> : vector<8x8xf32>
    %313 = tpu.matmul %311, %312, %cst_120 {dimension_numbers = #tpu.dot_dimension_numbers<[1], [0], [0], [1], [0, 0, 1, 1], [], []>} : vector<8x8xbf16>, vector<8x8xbf16>, vector<8x8xf32> -> vector<8x8xf32>
    %314 = arith.truncf %313 : vector<8x8xf32> to vector<8x8xbf16>
    %315 = vector.extract_strided_slice %183 {offsets = [24, 0], sizes = [8, 32], strides = [1, 1]} : vector<32x32xbf16> to vector<8x32xbf16>
    %cst_121 = arith.constant dense<0.000000e+00> : vector<8x32xf32>
    %316 = tpu.matmul %314, %315, %cst_121 {dimension_numbers = #tpu.dot_dimension_numbers<[1], [0], [0], [1], [0, 0, 1, 1], [], []>} : vector<8x8xbf16>, vector<8x32xbf16>, vector<8x32xf32> -> vector<8x32xf32>
    %317 = arith.addf %310, %316 : vector<8x32xf32>
    %318 = tpu.concatenate %257, %317 in 0 : vector<8x32xf32>, vector<8x32xf32> -> vector<16x32xf32>
    %319 = vector.broadcast %184 : vector<1x32xf32> to vector<16x32xf32>
    %320 = arith.addf %318, %319 : vector<16x32xf32>
    %321 = arith.addf %320, %176 : vector<16x32xf32>
    %c0_122 = arith.constant 0 : index
    %c0_123 = arith.constant 0 : index
    %322 = vector.load %arg28[%c0_122, %c0_123] : memref<1x32xf32, #tpu.memory_space<vmem>>, vector<1x32xf32>
    %c0_124 = arith.constant 0 : index
    %c0_125 = arith.constant 0 : index
    %323 = vector.load %arg29[%c0_124, %c0_125] : memref<1x32xf32, #tpu.memory_space<vmem>>, vector<1x32xf32>
    %cst_126 = arith.constant dense<0.000000e+00> : vector<16xf32>
    %324 = vector.multi_reduction <add>, %321, %cst_126 [1] : vector<16x32xf32> to vector<16xf32>
    %325 = vector.shape_cast %324 : vector<16xf32> to vector<16x1xf32>
    %cst_127 = arith.constant 3.200000e+01 : f32
    %326 = vector.broadcast %cst_127 : f32 to vector<16x1xf32>
    %327 = arith.divf %325, %326 : vector<16x1xf32>
    %328 = vector.broadcast %327 : vector<16x1xf32> to vector<16x32xf32>
    %329 = arith.subf %321, %328 : vector<16x32xf32>
    %330 = arith.mulf %329, %329 : vector<16x32xf32>
    %cst_128 = arith.constant dense<0.000000e+00> : vector<16xf32>
    %331 = vector.multi_reduction <add>, %330, %cst_128 [1] : vector<16x32xf32> to vector<16xf32>
    %332 = vector.shape_cast %331 : vector<16xf32> to vector<16x1xf32>
    %cst_129 = arith.constant 3.200000e+01 : f32
    %333 = vector.broadcast %cst_129 : f32 to vector<16x1xf32>
    %334 = arith.divf %332, %333 : vector<16x1xf32>
    %335 = vector.broadcast %327 : vector<16x1xf32> to vector<16x32xf32>
    %336 = arith.subf %321, %335 : vector<16x32xf32>
    %cst_130 = arith.constant 3.200000e+01 : f32
    %337 = vector.broadcast %cst_130 : f32 to vector<16x1xf32>
    %338 = arith.addf %334, %337 : vector<16x1xf32>
    %339 = math.rsqrt %338 : vector<16x1xf32>
    %340 = vector.broadcast %339 : vector<16x1xf32> to vector<16x32xf32>
    %341 = arith.mulf %336, %340 : vector<16x32xf32>
    %342 = vector.broadcast %322 : vector<1x32xf32> to vector<16x32xf32>
    %343 = arith.mulf %341, %342 : vector<16x32xf32>
    %344 = vector.broadcast %323 : vector<1x32xf32> to vector<16x32xf32>
    %345 = arith.addf %343, %344 : vector<16x32xf32>
    %346 = arith.truncf %345 : vector<16x32xf32> to vector<16x32xbf16>
    %c0_131 = arith.constant 0 : index
    %c0_132 = arith.constant 0 : index
    %347 = vector.load %arg22[%c0_131, %c0_132] : memref<32x64xbf16, #tpu.memory_space<vmem>>, vector<32x64xbf16>
    %cst_133 = arith.constant dense<0.000000e+00> : vector<16x64xf32>
    %348 = tpu.matmul %346, %347, %cst_133 {dimension_numbers = #tpu.dot_dimension_numbers<[1], [0], [0], [1], [0, 0, 1, 1], [], []>} : vector<16x32xbf16>, vector<32x64xbf16>, vector<16x64xf32> -> vector<16x64xf32>
    %c0_134 = arith.constant 0 : index
    %c0_135 = arith.constant 0 : index
    %349 = vector.load %arg23[%c0_134, %c0_135] : memref<1x64xf32, #tpu.memory_space<vmem>>, vector<1x64xf32>
    %350 = vector.broadcast %349 : vector<1x64xf32> to vector<16x64xf32>
    %351 = arith.addf %348, %350 : vector<16x64xf32>
    %cst_136 = arith.constant 0.000000e+00 : f32
    %352 = vector.broadcast %cst_136 : f32 to vector<16x64xf32>
    %353 = arith.maximumf %351, %352 : vector<16x64xf32>
    %354 = arith.truncf %353 : vector<16x64xf32> to vector<16x64xbf16>
    %c0_137 = arith.constant 0 : index
    %c0_138 = arith.constant 0 : index
    %355 = vector.load %arg24[%c0_137, %c0_138] : memref<64x32xbf16, #tpu.memory_space<vmem>>, vector<64x32xbf16>
    %cst_139 = arith.constant dense<0.000000e+00> : vector<16x32xf32>
    %356 = tpu.matmul %354, %355, %cst_139 {dimension_numbers = #tpu.dot_dimension_numbers<[1], [0], [0], [1], [0, 0, 1, 1], [], []>} : vector<16x64xbf16>, vector<64x32xbf16>, vector<16x32xf32> -> vector<16x32xf32>
    %c0_140 = arith.constant 0 : index
    %c0_141 = arith.constant 0 : index
    %357 = vector.load %arg25[%c0_140, %c0_141] : memref<1x32xf32, #tpu.memory_space<vmem>>, vector<1x32xf32>
    %358 = vector.broadcast %357 : vector<1x32xf32> to vector<16x32xf32>
    %359 = arith.addf %356, %358 : vector<16x32xf32>
    %360 = arith.addf %359, %345 : vector<16x32xf32>
    %c0_142 = arith.constant 0 : index
    %c0_143 = arith.constant 0 : index
    %361 = vector.load %arg30[%c0_142, %c0_143] : memref<1x32xf32, #tpu.memory_space<vmem>>, vector<1x32xf32>
    %c0_144 = arith.constant 0 : index
    %c0_145 = arith.constant 0 : index
    %362 = vector.load %arg31[%c0_144, %c0_145] : memref<1x32xf32, #tpu.memory_space<vmem>>, vector<1x32xf32>
    %cst_146 = arith.constant dense<0.000000e+00> : vector<16xf32>
    %363 = vector.multi_reduction <add>, %360, %cst_146 [1] : vector<16x32xf32> to vector<16xf32>
    %364 = vector.shape_cast %363 : vector<16xf32> to vector<16x1xf32>
    %cst_147 = arith.constant 3.200000e+01 : f32
    %365 = vector.broadcast %cst_147 : f32 to vector<16x1xf32>
    %366 = arith.divf %364, %365 : vector<16x1xf32>
    %367 = vector.broadcast %366 : vector<16x1xf32> to vector<16x32xf32>
    %368 = arith.subf %360, %367 : vector<16x32xf32>
    %369 = arith.mulf %368, %368 : vector<16x32xf32>
    %cst_148 = arith.constant dense<0.000000e+00> : vector<16xf32>
    %370 = vector.multi_reduction <add>, %369, %cst_148 [1] : vector<16x32xf32> to vector<16xf32>
    %371 = vector.shape_cast %370 : vector<16xf32> to vector<16x1xf32>
    %cst_149 = arith.constant 3.200000e+01 : f32
    %372 = vector.broadcast %cst_149 : f32 to vector<16x1xf32>
    %373 = arith.divf %371, %372 : vector<16x1xf32>
    %374 = vector.broadcast %366 : vector<16x1xf32> to vector<16x32xf32>
    %375 = arith.subf %360, %374 : vector<16x32xf32>
    %cst_150 = arith.constant 3.200000e+01 : f32
    %376 = vector.broadcast %cst_150 : f32 to vector<16x1xf32>
    %377 = arith.addf %373, %376 : vector<16x1xf32>
    %378 = math.rsqrt %377 : vector<16x1xf32>
    %379 = vector.broadcast %378 : vector<16x1xf32> to vector<16x32xf32>
    %380 = arith.mulf %375, %379 : vector<16x32xf32>
    %381 = vector.broadcast %361 : vector<1x32xf32> to vector<16x32xf32>
    %382 = arith.mulf %380, %381 : vector<16x32xf32>
    %383 = vector.broadcast %362 : vector<1x32xf32> to vector<16x32xf32>
    %384 = arith.addf %382, %383 : vector<16x32xf32>
    %385 = vector.shape_cast %384 : vector<16x32xf32> to vector<2x8x32xf32>
    %c0_151 = arith.constant 0 : index
    %c0_152 = arith.constant 0 : index
    %c0_153 = arith.constant 0 : index
    %386 = vector.load %arg32[%c0_151, %c0_152, %c0_153] : memref<2x8x32xf32, #tpu.memory_space<vmem>>, vector<2x8x32xf32>
    tpu.vector_store %arg32[%c0_151, %c0_152, %c0_153], %385 {strides = array<i32>} : memref<2x8x32xf32, #tpu.memory_space<vmem>>, vector<2x8x32xf32>,
    return
  }
  func.func @transform_0(%arg0: i32) -> (i32, i32, i32) {
    %c0_i32 = arith.constant 0 : i32
    %c0_i32_0 = arith.constant 0 : i32
    %c0_i32_1 = arith.constant 0 : i32
    return %arg0, %c0_i32, %c0_i32_0 : i32, i32, i32
  }
  func.func @transform_1(%arg0: i32) -> (i32, i32, i32) {
    %c0_i32 = arith.constant 0 : i32
    %c0_i32_0 = arith.constant 0 : i32
    %c0_i32_1 = arith.constant 0 : i32
    return %arg0, %c0_i32, %c0_i32_0 : i32, i32, i32
  }
  func.func @transform_2(%arg0: i32) -> (i32, i32, i32) {
    %c0_i32 = arith.constant 0 : i32
    %c0_i32_0 = arith.constant 0 : i32
    %c0_i32_1 = arith.constant 0 : i32
    return %arg0, %c0_i32, %c0_i32_0 : i32, i32, i32
  }
  func.func @transform_3(%arg0: i32) -> (i32, i32) {
    %c0_i32 = arith.constant 0 : i32
    %c0_i32_0 = arith.constant 0 : i32
    %c0_i32_1 = arith.constant 0 : i32
    return %c0_i32, %c0_i32_0 : i32, i32
  }
  func.func @transform_4(%arg0: i32) -> (i32, i32) {
    %c0_i32 = arith.constant 0 : i32
    %c0_i32_0 = arith.constant 0 : i32
    %c0_i32_1 = arith.constant 0 : i32
    return %c0_i32, %c0_i32_0 : i32, i32
  }
  func.func @transform_5(%arg0: i32) -> (i32, i32) {
    %c0_i32 = arith.constant 0 : i32
    %c0_i32_0 = arith.constant 0 : i32
    %c0_i32_1 = arith.constant 0 : i32
    return %c0_i32, %c0_i32_0 : i32, i32
  }
  func.func @transform_6(%arg0: i32) -> (i32, i32) {
    %c0_i32 = arith.constant 0 : i32
    %c0_i32_0 = arith.constant 0 : i32
    %c0_i32_1 = arith.constant 0 : i32
    return %c0_i32, %c0_i32_0 : i32, i32
  }
  func.func @transform_7(%arg0: i32) -> (i32, i32) {
    %c0_i32 = arith.constant 0 : i32
    %c0_i32_0 = arith.constant 0 : i32
    %c0_i32_1 = arith.constant 0 : i32
    return %c0_i32, %c0_i32_0 : i32, i32
  }
  func.func @transform_8(%arg0: i32) -> (i32, i32) {
    %c0_i32 = arith.constant 0 : i32
    %c0_i32_0 = arith.constant 0 : i32
    %c0_i32_1 = arith.constant 0 : i32
    return %c0_i32, %c0_i32_0 : i32, i32
  }
  func.func @transform_9(%arg0: i32) -> (i32, i32) {
    %c0_i32 = arith.constant 0 : i32
    %c0_i32_0 = arith.constant 0 : i32
    %c0_i32_1 = arith.constant 0 : i32
    return %c0_i32, %c0_i32_0 : i32, i32
  }
  func.func @transform_10(%arg0: i32) -> (i32, i32) {
    %c0_i32 = arith.constant 0 : i32
    %c0_i32_0 = arith.constant 0 : i32
    %c0_i32_1 = arith.constant 0 : i32
    return %c0_i32, %c0_i32_0 : i32, i32
  }
  func.func @transform_11(%arg0: i32) -> (i32, i32) {
    %c0_i32 = arith.constant 0 : i32
    %c0_i32_0 = arith.constant 0 : i32
    %c0_i32_1 = arith.constant 0 : i32
    return %c0_i32, %c0_i32_0 : i32, i32
  }
  func.func @transform_12(%arg0: i32) -> (i32, i32) {
    %c0_i32 = arith.constant 0 : i32
    %c0_i32_0 = arith.constant 0 : i32
    %c0_i32_1 = arith.constant 0 : i32
    return %c0_i32, %c0_i32_0 : i32, i32
  }
  func.func @transform_13(%arg0: i32) -> (i32, i32) {
    %c0_i32 = arith.constant 0 : i32
    %c0_i32_0 = arith.constant 0 : i32
    %c0_i32_1 = arith.constant 0 : i32
    return %c0_i32, %c0_i32_0 : i32, i32
  }
  func.func @transform_14(%arg0: i32) -> (i32, i32) {
    %c0_i32 = arith.constant 0 : i32
    %c0_i32_0 = arith.constant 0 : i32
    %c0_i32_1 = arith.constant 0 : i32
    return %c0_i32, %c0_i32_0 : i32, i32
  }
  func.func @transform_15(%arg0: i32) -> (i32, i32) {
    %c0_i32 = arith.constant 0 : i32
    %c0_i32_0 = arith.constant 0 : i32
    %c0_i32_1 = arith.constant 0 : i32
    return %c0_i32, %c0_i32_0 : i32, i32
  }
  func.func @transform_16(%arg0: i32) -> (i32, i32) {
    %c0_i32 = arith.constant 0 : i32
    %c0_i32_0 = arith.constant 0 : i32
    %c0_i32_1 = arith.constant 0 : i32
    return %c0_i32, %c0_i32_0 : i32, i32
  }
  func.func @transform_17(%arg0: i32) -> (i32, i32) {
    %c0_i32 = arith.constant 0 : i32
    %c0_i32_0 = arith.constant 0 : i32
    %c0_i32_1 = arith.constant 0 : i32
    return %c0_i32, %c0_i32_0 : i32, i32
  }
  func.func @transform_18(%arg0: i32) -> (i32, i32) {
    %c0_i32 = arith.constant 0 : i32
    %c0_i32_0 = arith.constant 0 : i32
    %c0_i32_1 = arith.constant 0 : i32
    return %c0_i32, %c0_i32_0 : i32, i32
  }
  func.func @transform_19(%arg0: i32) -> (i32, i32) {
    %c0_i32 = arith.constant 0 : i32
    %c0_i32_0 = arith.constant 0 : i32
    %c0_i32_1 = arith.constant 0 : i32
    return %c0_i32, %c0_i32_0 : i32, i32
  }
  func.func @transform_20(%arg0: i32) -> (i32, i32) {
    %c0_i32 = arith.constant 0 : i32
    %c0_i32_0 = arith.constant 0 : i32
    %c0_i32_1 = arith.constant 0 : i32
    return %c0_i32, %c0_i32_0 : i32, i32
  }
  func.func @transform_21(%arg0: i32) -> (i32, i32) {
    %c0_i32 = arith.constant 0 : i32
    %c0_i32_0 = arith.constant 0 : i32
    %c0_i32_1 = arith.constant 0 : i32
    return %c0_i32, %c0_i32_0 : i32, i32
  }
  func.func @transform_22(%arg0: i32) -> (i32, i32) {
    %c0_i32 = arith.constant 0 : i32
    %c0_i32_0 = arith.constant 0 : i32
    %c0_i32_1 = arith.constant 0 : i32
    return %c0_i32, %c0_i32_0 : i32, i32
  }
  func.func @transform_23(%arg0: i32) -> (i32, i32) {
    %c0_i32 = arith.constant 0 : i32
    %c0_i32_0 = arith.constant 0 : i32
    %c0_i32_1 = arith.constant 0 : i32
    return %c0_i32, %c0_i32_0 : i32, i32
  }
  func.func @transform_24(%arg0: i32) -> (i32, i32) {
    %c0_i32 = arith.constant 0 : i32
    %c0_i32_0 = arith.constant 0 : i32
    %c0_i32_1 = arith.constant 0 : i32
    return %c0_i32, %c0_i32_0 : i32, i32
  }
  func.func @transform_25(%arg0: i32) -> (i32, i32) {
    %c0_i32 = arith.constant 0 : i32
    %c0_i32_0 = arith.constant 0 : i32
    %c0_i32_1 = arith.constant 0 : i32
    return %c0_i32, %c0_i32_0 : i32, i32
  }
  func.func @transform_26(%arg0: i32) -> (i32, i32) {
    %c0_i32 = arith.constant 0 : i32
    %c0_i32_0 = arith.constant 0 : i32
    %c0_i32_1 = arith.constant 0 : i32
    return %c0_i32, %c0_i32_0 : i32, i32
  }
  func.func @transform_27(%arg0: i32) -> (i32, i32) {
    %c0_i32 = arith.constant 0 : i32
    %c0_i32_0 = arith.constant 0 : i32
    %c0_i32_1 = arith.constant 0 : i32
    return %c0_i32, %c0_i32_0 : i32, i32
  }
  func.func @transform_28(%arg0: i32) -> (i32, i32) {
    %c0_i32 = arith.constant 0 : i32
    %c0_i32_0 = arith.constant 0 : i32
    %c0_i32_1 = arith.constant 0 : i32
    return %c0_i32, %c0_i32_0 : i32, i32
  }
  func.func @transform_29(%arg0: i32) -> (i32, i32) {
    %c0_i32 = arith.constant 0 : i32
    %c0_i32_0 = arith.constant 0 : i32
    %c0_i32_1 = arith.constant 0 : i32
    return %c0_i32, %c0_i32_0 : i32, i32
  }
  func.func @transform_30(%arg0: i32) -> (i32, i32) {
    %c0_i32 = arith.constant 0 : i32
    %c0_i32_0 = arith.constant 0 : i32
    %c0_i32_1 = arith.constant 0 : i32
    return %c0_i32, %c0_i32_0 : i32, i32
  }
  func.func @transform_31(%arg0: i32) -> (i32, i32, i32) {
    %c0_i32 = arith.constant 0 : i32
    %c0_i32_0 = arith.constant 0 : i32
    %c0_i32_1 = arith.constant 0 : i32
    return %arg0, %c0_i32, %c0_i32_0 : i32, i32, i32
  }
}

</mosaic_0001>

<bundles_post_ra>
// kernel: tpu_custom_call.1
= control target key start
LH: loop header
LB: loop body
LE: loop exit
PB: predicated region body
PF: predicated region fallthrough
CT: control target
= control target key end

     0   :  { %s4427_s6 = smov 1   ;;  %s4428_s10 = smov 2   ;;  %s5269_s0 = inlined_call_operand.smem [shape: u32[32], index: -1, kind: input, shape index: {}] }
   0x1   :  { %s4483_s5 = sld [smem:[%s5269_s0]]   ;;  %s4429_s14 = smov 3  }
   0x2   :  { %s4488_s9 = sld [smem:[%s5269_s0 + %s4427_s6]]   ;;  %s4430_s18 = smov 4  }
   0x3   :  { %s4493_s13 = sld [smem:[%s5269_s0 + %s4428_s10]]   ;;  %s4431_s22 = smov 5  }
   0x4   :  { %s4498_s17 = sld [smem:[%s5269_s0 + %s4429_s14]]   ;;  %s4432_s26 = smov 6  }
   0x5   :  { %s4503_s21 = sld [smem:[%s5269_s0 + %s4430_s18]]   ;;  %s4433_s30 = smov 7  }
   0x6   :  { %s4508_s25 = sld [smem:[%s5269_s0 + %s4431_s22]]   ;;  %s4434_s4 = smov 8  }
   0x7   :  { %s4513_s29 = sld [smem:[%s5269_s0 + %s4432_s26]]   ;;  %s4435_s10 = smov 9  }
   0x8   :  { %5277 = sst [smem:[#allocation20_spill]] %s4488_s9  ;;  %s4436_s15 = smov 10  }
   0x9   :  { %5278 = sst [smem:[#allocation21_spill]] %s4493_s13  ;;  %s4437_s20 = smov 11  }
   0xa   :  { %s4518_s3 = sld [smem:[%s5269_s0 + %s4433_s30]]   ;;  %s4438_s26 = smov 12  }
   0xb   :  { %5279 = sst [smem:[#allocation22_spill]] %s4503_s21  ;;  %s4439_s1 = smov 13  }
   0xc   :  { %s4523_s8 = sld [smem:[%s5269_s0 + %s4434_s4]]   ;;  %s4440_s7 = smov 14  }
   0xd   :  { %s4528_s14 = sld [smem:[%s5269_s0 + %s4435_s10]]   ;;  %s4442_s22 = smov 16  }
   0xe   :  { %s4533_s19 = sld [smem:[%s5269_s0 + %s4436_s15]]   ;;  %s4441_s15 = smov 15  }
   0xf   :  { %s4538_s24 = sld [smem:[%s5269_s0 + %s4437_s20]]   ;;  %s4443_s28 = smov 17  }
  0x10   :  { %s4543_s30 = sld [smem:[%s5269_s0 + %s4438_s26]]  }
  0x11   :  { %s4548_s6 = sld [smem:[%s5269_s0 + %s4439_s1]]  }
  0x12   :  { %s4553_s12 = sld [smem:[%s5269_s0 + %s4440_s7]]   ;;  %s4444_s7 = smov 18  }
  0x13   :  { %s4558_s20 = sld [smem:[%s5269_s0 + %s4441_s15]]   ;;  %s4445_s15 = smov 19  }
  0x14   :  { %s4563_s27 = sld [smem:[%s5269_s0 + %s4442_s22]]   ;;  %s4446_s22 = smov 20  }
  0x15   :  { %s4568_s4 = sld [smem:[%s5269_s0 + %s4443_s28]]   ;;  %s4447_s28 = smov 21  }
  0x16   :  { %s4573_s21 = sld [smem:[%s5269_s0 + %s4444_s7]]   ;;  %s4448_s7 = smov 22  }
  0x17   :  { %5280 = sst [smem:[#allocation23_spill]] %s4548_s6 }
  0x18   :  { %s4578_s13 = sld [smem:[%s5269_s0 + %s4445_s15]]   ;;  %s4449_s15 = smov 23  }
  0x19   :  { %s4583_s6 = sld [smem:[%s5269_s0 + %s4446_s22]]   ;;  %s4450_s22 = smov 24  }
  0x1b   :  { %5281 = sst [smem:[#allocation24_spill]] %s4568_s4 }
  0x1c   :  { %5282 = sst [smem:[#allocation25_spill]] %s4573_s21 }
  0x1d   :  { %s4588_s4 = sld [smem:[%s5269_s0 + %s4447_s28]]   ;;  %s4451_s28 = smov 25  }
  0x1e   :  { %5283 = sst [smem:[#allocation26_spill]] %s4578_s13 }
  0x1f   :  { %5284 = sst [smem:[#allocation27_spill]] %s4583_s6 }
  0x20   :  { %s4593_s21 = sld [smem:[%s5269_s0 + %s4448_s7]]   ;;  %s4452_s7 = smov 26  }
  0x21   :  { %s4598_s13 = sld [smem:[%s5269_s0 + %s4449_s15]]   ;;  %s4453_s15 = smov 27  }
  0x22   :  { %s4603_s6 = sld [smem:[%s5269_s0 + %s4450_s22]]   ;;  %s4454_s22 = smov 28  }
  0x23   :  { %s4608_s9 = sld [smem:[%s5269_s0 + %s4451_s28]]   ;;  %s4455_s28 = smov 29  }
  0x26   :  { %5285 = sst [smem:[#allocation28_spill]] %s4593_s21 }
  0x27   :  { %5286 = sst [smem:[#allocation29_spill]] %s4598_s13 }
  0x28   :  { %5287 = sst [smem:[#allocation30_spill]] %s4603_s6 }
  0x29   :  { %5288 = sst [smem:[#allocation31_spill]] %s4608_s9 }
  0x2a   :  { %s4613_s21 = sld [smem:[%s5269_s0 + %s4452_s7]]   ;;  %s4456_s7 = smov 30  }
  0x2b   :  { %s4618_s13 = sld [smem:[%s5269_s0 + %s4453_s15]]   ;;  %s4457_s15 = smov 31  }
  0x2c   :  { %s4623_s6 = sld [smem:[%s5269_s0 + %s4454_s22]]  }
  0x2d   :  { %s4628_s9 = sld [smem:[%s5269_s0 + %s4455_s28]]  }
  0x30   :  { %5289 = sst [smem:[#allocation32_spill]] %s4613_s21 }
  0x31   :  { %5290 = sst [smem:[#allocation33_spill]] %s4618_s13 }
  0x32   :  { %s4633_s21 = sld [smem:[%s5269_s0 + %s4456_s7]]  }
  0x33   :  { %s4638_s13 = sld [smem:[%s5269_s0 + %s4457_s15]]  }
  0x34   :  { %68 = vsyncpa [#allocation3], 0 }
  0x35   :  { %69 = vsyncpa [#allocation6], 0 }
  0x36   :  { %70 = vsyncpa [#allocation9], 0 }
  0x37   :  { %71 = vsyncpa [#allocation12], 0 }
  0x38   :  { %72 = vsyncpa [#allocation4], 0  ;;  %s4458_s22 = smov [#allocation5]   ;;  %s4459_s26 = smov [#allocation8]  }
  0x39   :  { %s103_s23 = sshll.u32 %s4458_s22, 4  ;;  %s127_s28 = sshll.u32 %s4459_s26, 4  ;;  %s104_s23 = int_to_ptr.vmem [resolvable:$true] %s103_s23  ;;  %s128_s28 = int_to_ptr.vmem [resolvable:$true] %s127_s28 }
  0x3a   :  { %s4241_s1 = scalar_lea.hbm %s4523_s8, 16 }
  0x3b   :  { %p4242_p0 = scmp.ne.s32.totalorder %s4523_s8, %s4241_s1  ;;  %p4245_p1 = scmp.lt.u32.totalorder %s4241_s1, %s4523_s8 }
  0x3d   :  { %p4247_p2 = pnand %p4245_p1, %p4242_p0 }
  0x3f   :  { %4250 = shalt.err (!%p4247_p2)
}
  0x40   :  { %s4251_s0 = scalar_lea.vmem %s104_s23, 16  ;;  %s4255_s2 = scalar_lea.vmem %s104_s23, 32 }
  0x41   :  { %p4252_p3 = scmp.ne.s32.totalorder %s104_s23, %s4251_s0  ;;  %p4256_p4 = scmp.lt.s32.totalorder %s104_s23, %s104_s23 }
  0x42   :  { %p4257_p5 = scmp.lt.s32.totalorder %s4255_s2, %s4251_s0 }
  0x44   :  { %p4258_p6 = por %p4257_p5, %p4256_p4 }
  0x46   :  { %p4259_p7 = pnand %p4258_p6, %p4252_p3 }
  0x48   :  { %4262 = shalt.err (!%p4259_p7)
}
  0x49   :  { %106 = dma.hbm_to_vmem [thread:$0]  %s4523_s8, 16, %s104_s23, [#allocation6]  }
  0x4a   :  { %s4263_s7 = scalar_lea.hbm %s4543_s30, 16 }
  0x4b   :  { %p4264_p8 = scmp.ne.s32.totalorder %s4543_s30, %s4263_s7  ;;  %p4267_p9 = scmp.lt.u32.totalorder %s4263_s7, %s4543_s30 }
  0x4d   :  { %p4269_p10 = pnand %p4267_p9, %p4264_p8 }
  0x4f   :  { %4272 = shalt.err (!%p4269_p10)
}
  0x50   :  { %s4273_s10 = scalar_lea.vmem %s128_s28, 16  ;;  %s4277_s11 = scalar_lea.vmem %s128_s28, 32 }
  0x51   :  { %p4274_p11 = scmp.ne.s32.totalorder %s128_s28, %s4273_s10  ;;  %p4278_p12 = scmp.lt.s32.totalorder %s128_s28, %s128_s28 }
  0x52   :  { %p4279_p13 = scmp.lt.s32.totalorder %s4277_s11, %s4273_s10 }
  0x54   :  { %p4280_p0 = por %p4279_p13, %p4278_p12 }
  0x56   :  { %p4281_p1 = pnand %p4280_p0, %p4274_p11 }
  0x58   :  { %4284 = shalt.err (!%p4281_p1)
}
  0x59   :  { %130 = dma.hbm_to_vmem [thread:$0]  %s4543_s30, 16, %s128_s28, [#allocation9]  }
  0x5a   :  { %s4460_s15 = smov [#allocation11]   ;;  %s4461_s16 = smov [#allocation2]  }
  0x5b   :  { %s151_s8 = sshll.u32 %s4460_s15, 4  ;;  %s91_s18 = sshll.u32 %s4461_s16, 4  ;;  %s152_s8 = int_to_ptr.vmem [resolvable:$true] %s151_s8  ;;  %s92_s18 = int_to_ptr.vmem [resolvable:$true] %s91_s18 }
  0x5c   :  { %s4285_s22 = scalar_lea.hbm %s4563_s27, 16 }
  0x5d   :  { %p4286_p2 = scmp.ne.s32.totalorder %s4563_s27, %s4285_s22  ;;  %p4289_p3 = scmp.lt.u32.totalorder %s4285_s22, %s4563_s27 }
  0x5f   :  { %p4291_p4 = pnand %p4289_p3, %p4286_p2 }
  0x61   :  { %4294 = shalt.err (!%p4291_p4)
}
  0x62   :  { %s4295_s23 = scalar_lea.vmem %s152_s8, 16  ;;  %s4299_s26 = scalar_lea.vmem %s152_s8, 32 }
  0x63   :  { %p4296_p5 = scmp.ne.s32.totalorder %s152_s8, %s4295_s23  ;;  %p4300_p6 = scmp.lt.s32.totalorder %s152_s8, %s152_s8 }
  0x64   :  { %p4301_p7 = scmp.lt.s32.totalorder %s4299_s26, %s4295_s23 }
  0x66   :  { %p4302_p8 = por %p4301_p7, %p4300_p6 }
  0x68   :  { %p4303_p9 = pnand %p4302_p8, %p4296_p5 }
  0x6a   :  { %4306 = shalt.err (!%p4303_p9)
}
  0x6b   :  { %154 = dma.hbm_to_vmem [thread:$0]  %s4563_s27, 16, %s152_s8, [#allocation12]  }
  0x6c   :  { %s4307_s30 = scalar_lea.hbm %s4513_s29, 16 }
  0x6d   :  { %p4308_p10 = scmp.ne.s32.totalorder %s4513_s29, %s4307_s30  ;;  %p4311_p11 = scmp.lt.u32.totalorder %s4307_s30, %s4513_s29 }
  0x6f   :  { %p4313_p12 = pnand %p4311_p11, %p4308_p10 }
  0x71   :  { %4316 = shalt.err (!%p4313_p12)
}
  0x72   :  { %s4317_s28 = scalar_lea.vmem %s92_s18, 16  ;;  %s4321_s1 = scalar_lea.vmem %s92_s18, 32 }
  0x73   :  { %p4318_p13 = scmp.ne.s32.totalorder %s92_s18, %s4317_s28  ;;  %p4322_p0 = scmp.lt.s32.totalorder %s92_s18, %s92_s18 }
  0x74   :  { %p4323_p1 = scmp.lt.s32.totalorder %s4321_s1, %s4317_s28 }
  0x76   :  { %p4324_p2 = por %p4323_p1, %p4322_p0 }
  0x78   :  { %p4325_p3 = pnand %p4324_p2, %p4318_p13 }
  0x7a   :  { %4328 = shalt.err (!%p4325_p3)
}
  0x7b   :  { %94 = dma.hbm_to_vmem [thread:$0]  %s4513_s29, 16, %s92_s18, [#allocation3]  }
  0x7c   :  { %s4462_s0 = smov [#allocation7]   ;;  %s4463_s2 = smov [#allocation10]  }
  0x7d   :  { %s115_s27 = sshll.u32 %s4462_s0, 4  ;;  %s139_s7 = sshll.u32 %s4463_s2, 4  ;;  %s116_s27 = int_to_ptr.vmem [resolvable:$true] %s115_s27  ;;  %s140_s7 = int_to_ptr.vmem [resolvable:$true] %s139_s7 }
  0x7e   :  { %s4329_s10 = scalar_lea.hbm %s4533_s19, 16 }
  0x7f   :  { %p4330_p4 = scmp.ne.s32.totalorder %s4533_s19, %s4329_s10  ;;  %p4333_p5 = scmp.lt.u32.totalorder %s4329_s10, %s4533_s19 }
  0x81   :  { %p4335_p6 = pnand %p4333_p5, %p4330_p4 }
  0x83   :  { %4338 = shalt.err (!%p4335_p6)
}
  0x84   :  { %s4339_s11 = scalar_lea.vmem %s116_s27, 16  ;;  %s4343_s15 = scalar_lea.vmem %s116_s27, 32 }
  0x85   :  { %p4340_p7 = scmp.ne.s32.totalorder %s116_s27, %s4339_s11  ;;  %p4344_p8 = scmp.lt.s32.totalorder %s116_s27, %s116_s27 }
  0x86   :  { %p4345_p9 = scmp.lt.s32.totalorder %s4343_s15, %s4339_s11 }
  0x88   :  { %p4346_p10 = por %p4345_p9, %p4344_p8 }
  0x8a   :  { %p4347_p11 = pnand %p4346_p10, %p4340_p7 }
  0x8c   :  { %4350 = shalt.err (!%p4347_p11)
}
  0x8d   :  { %118 = dma.hbm_to_vmem [thread:$0]  %s4533_s19, 16, %s116_s27, [#allocation6]  }
  0x8e   :  { %s4351_s29 = scalar_lea.hbm %s4553_s12, 16 }
  0x8f   :  { %p4352_p12 = scmp.ne.s32.totalorder %s4553_s12, %s4351_s29  ;;  %p4355_p13 = scmp.lt.u32.totalorder %s4351_s29, %s4553_s12 }
  0x91   :  { %p4357_p0 = pnand %p4355_p13, %p4352_p12 }
  0x93   :  { %4360 = shalt.err (!%p4357_p0)
}
  0x94   :  { %s4361_s8 = scalar_lea.vmem %s140_s7, 16  ;;  %s4365_s16 = scalar_lea.vmem %s140_s7, 32 }
  0x95   :  { %p4362_p1 = scmp.ne.s32.totalorder %s140_s7, %s4361_s8  ;;  %p4366_p2 = scmp.lt.s32.totalorder %s140_s7, %s140_s7 }
  0x96   :  { %p4367_p3 = scmp.lt.s32.totalorder %s4365_s16, %s4361_s8 }
  0x98   :  { %p4368_p4 = por %p4367_p3, %p4366_p2 }
  0x9a   :  { %p4369_p5 = pnand %p4368_p4, %p4362_p1 }
  0x9c   :  { %4372 = shalt.err (!%p4369_p5)
}
  0x9d   :  { %142 = dma.hbm_to_vmem [thread:$0]  %s4553_s12, 16, %s140_s7, [#allocation9]  }
  0x9e   :  { %s4464_s18 = smov [#allocation13]   ;;  %s4373_s22 = scalar_lea.hbm %s4588_s4, 256 }
  0x9f   :  { %s168_s19 = sshll.u32 %s4464_s18, 4  ;;  %p4374_p6 = scmp.ne.s32.totalorder %s4588_s4, %s4373_s22  ;;  %s169_s19 = int_to_ptr.vmem [resolvable:$true] %s168_s19 }
  0xa0   :  { %p4377_p7 = scmp.lt.u32.totalorder %s4373_s22, %s4588_s4 }
  0xa2   :  { %p4379_p8 = pnand %p4377_p7, %p4374_p6 }
  0xa4   :  { %4382 = shalt.err (!%p4379_p8)
}
  0xa5   :  { %s4383_s23 = scalar_lea.vmem %s169_s19, 256  ;;  %p4388_p10 = scmp.lt.s32.totalorder %s169_s19, %s169_s19 }
  0xa6   :  { %p4384_p9 = scmp.ne.s32.totalorder %s169_s19, %s4383_s23  ;;  %p4389_p11 = scmp.lt.s32.totalorder %s4383_s23, %s4383_s23 }
  0xa8   :  { %p4390_p12 = por %p4389_p11, %p4388_p10 }
  0xaa   :  { %p4391_p13 = pnand %p4390_p12, %p4384_p9 }
  0xac   :  { %4394 = shalt.err (!%p4391_p13)
}
  0xad   :  { %s4465_s26 = smov 64   ;;  %s4466_s30 = smov 4  }
  0xae   :  { %174 = dma.hbm_to_vmem [thread:$0]  %s4588_s4, 256, %s169_s19, [#allocation12], %s4465_s26, %s4465_s26, %s4466_s30  }
  0xaf   :  { %4417 = dma.done.wait [#allocation3], 16  }
  0xb0   :  { %4418 = vsyncadd [#allocation3], 4294967280 }
  0xb1   :  { %4419 = dma.done.wait [#allocation6], 32  }
  0xb2   :  { %4420 = vsyncadd [#allocation6], 4294967264 }
  0xb3   :  { %4421 = dma.done.wait [#allocation9], 32  }
  0xb4   :  { %4422 = vsyncadd [#allocation9], 4294967264 }
  0xb5   :  { %4423 = dma.done.wait [#allocation12], 272  }
  0xb6   :  { %4424 = vsyncadd [#allocation12], 4294967024  ;;  %v4467_v0 = vmov 0.0   ;;  %vm4468_vm0 = vmmov 0   ;;  %v4147_v1 = vld [vmem:[%s4518_s3] sm:$0xff]   ;;  %v4149_v3 = vld [vmem:[%s4518_s3 + $0x8] sm:$0xff]  }
  0xb7   :  { %3751 = vmatprep.subr.bf16.mxu1 %v4467_v0  ;;  %3743 = vmatprep.subr.bf16.mxu0 %v4467_v0  ;;  %v4148_v2 = vld [vmem:[%s4508_s25] sm:$0xff]   ;;  %v4682_v5 = vld [vmem:[%s4483_s5 + $0x8] sm:$0xff]  ;;  %vm268_vm1 = vcmask 261120   ;;  %vm434_vm2 = vcmask 64512   ;;  %s4471_s3 = smov 104   ;;  %vm690_vm3 = vcmask 1043456  }
  0xb8   :  { %3755 = vmatprep.mubr.msk.bf16.mxu1 %vm4468_vm0, %v4467_v0  ;;  %3747 = vmatprep.mubr.msk.bf16.mxu0 %vm4468_vm0, %v4467_v0  ;;  %v4679_v4 = vld [vmem:[%s4483_s5] sm:$0xff]  ;;  %v4150_v6 = vld [vmem:[%s4508_s25 + $0x8] sm:$0xff]   ;;  %s4469_s5 = smov 112   ;;  %s4470_s25 = smov 120   ;;  %vm3387_vm12 = vcmask 523264  }
  0xb9   :  { %3752 = vmatpush3.bf16.msra.mxu1 %v4147_v1  ;;  %3744 = vmatpush3.bf16.msra.mxu0 %v4148_v2  ;;  %v249_v7 = vpack.c.bf16 %v4682_v5, %v4679_v4  ;;  %v4151_v8 = vld [vmem:[%s4528_s14] sm:$0xff]   ;;  %v4152_v9 = vld [vmem:[%s4528_s14 + $0x8] sm:$0xff]   ;;  %s5292_s14 = sld [smem:[#allocation23_spill]]  ;;  %s5294_s12 = sld [smem:[#allocation32_spill]] }
  0xba   :  { %3753 = vmatprep.subr.bf16.mxu1 %v4467_v0  ;;  %3745 = vmatprep.subr.bf16.mxu0 %v4467_v0  ;;  %v3535_v10 = vld [vmem:[#allocation5] ss:$0 sm:$0xff]  ;;  %v3531_v11 = vld [vmem:[#allocation2] ss:$0 sm:$0xff]  ;;  %v3539_v27 = vld [vmem:[#allocation7] ss:$0 sm:$0xff] }
  0xbb   :  { %v4739_v45 = vld [vmem:[%s4498_s17] sm:$0xff]  ;;  %v4746_v52 = vld [vmem:[%s4498_s17 + $0x8] sm:$0xff]  ;;  %s5296_s4 = sld [smem:[#allocation21_spill]]  ;;  %s5297_s28 = sld [smem:[#allocation25_spill]] }
  0xbc   :  { %vm633_vm4 = vcmp.eq.f32.partialorder %v4739_v45, 0.0  ;;  %vm634_vm5 = vcmp.eq.f32.partialorder %v4746_v52, 0.0  ;;  %v4889_v52 = vld [vmem:[#allocation8] ss:$0 sm:$0xff]  ;;  %s5298_s1 = sld [smem:[#allocation22_spill]]  ;;  %s5299_s0 = sld [smem:[#allocation26_spill]] }
  0xbd   :  { %3754 = vmatpush3.bf16.msra.mxu1 %v4149_v3  ;;  %3746 = vmatpush3.bf16.msra.mxu0 %v4150_v6  ;;  %s5300_s27 = sld [smem:[#allocation27_spill]]  ;;  %s5301_s2 = sld [smem:[#allocation29_spill]] }
  0xbe   :  { %3767 = vmatprep.subr.bf16.mxu1 %v4467_v0  ;;  %3759 = vmatprep.subr.bf16.mxu0 %v4467_v0  ;;  %s5302_s7 = sld [smem:[#allocation33_spill]]  ;;  %s5303_s10 = sld [smem:[#allocation28_spill]] }
  0xbf   :  { %s5304_s11 = sld [smem:[#allocation30_spill]] }
  0xc0   :  { %3756 = vmatmul.mubr.msk.bf16.vlgmr.msra.gmra.mrb[0].mxu1 %vm268_vm1, %v249_v7  ;;  %3748 = vmatmul.mubr.msk.bf16.vlgmr.msra.gmra.mrb[0].mxu0 %vm268_vm1, %v249_v7 }
  0xc1   :  { %3769 = vmatprep.mubr.msk.bf16.mxu1 %vm4468_vm0, %v4467_v0  ;;  %3763 = vmatprep.mubr.msk.bf16.mxu0 %vm4468_vm0, %v4467_v0 }
  0xc2   :  { %3760 = vmatpush3.bf16.msra.mxu0 %v4151_v8 }
  0xc3   :  { %3761 = vmatprep.subr.bf16.mxu0 %v4467_v0 }
  0xc6   :  { %3762 = vmatpush3.bf16.msra.mxu0 %v4152_v9 }
  0xc7   :  { %3773 = vmatprep.subr.bf16.mxu0 %v4467_v0 }
  0xc9   :  { %3764 = vmatmul.mubr.msk.bf16.vlgmr.msra.gmra.mrb[4].mxu0 %vm268_vm1, %v249_v7 }
  0xca   :  { %3775 = vmatprep.mubr.msk.bf16.mxu0 %vm4468_vm0, %v4467_v0 }
 0x193   :  { %v365_v12 = vpop.f32.mrb[0].mxu1  ;;  %v306_v15 = vpop.f32.mrb[0].mxu0 }
 0x194   :  { %v366_v13 = vadd.f32 %v3535_v10, %v365_v12  ;;  %v3757_v14 = vpop.f32.mrb[1].mxu1  ;;  %v307_v17 = vadd.f32 %v3531_v11, %v306_v15  ;;  %v3749_v18 = vpop.f32.mrb[1].mxu0 }
 0x195   :  { %v368_v16 = vpop.f32.mrb[2].mxu1  ;;  %v309_v22 = vpop.f32.mrb[2].mxu0  ;;  %v4778_v18 = vld [vmem:[%s4498_s17 + $0x10] sm:$0xff] }
 0x196   :  { %v433_v19 = vpack.c.bf16 %v366_v13, %v366_v13  ;;  %v4703_v20 = vadd.f32 %v3535_v10, %v368_v16  ;;  %v3758_v21 = vpop.f32.mrb[3].mxu1  ;;  %v4705_v23 = vadd.f32 %v3531_v11, %v309_v22  ;;  %v3750_v24 = vpop.f32.mrb[3].mxu0  ;;  %v432_v25 = vpack.c.bf16 %v307_v17, %v307_v17 }
 0x197   :  { %vm635_vm6 = vcmp.eq.f32.partialorder %v4778_v18, 0.0 }
 0x198   :  { %535 = vrot.lane.b32.xlu1 %v433_v19, %s4469_s5  ;;  %485 = vrot.lane.b32.xlu0 %v433_v19, %s4470_s25  ;;  %v439_v26 = vsel %vm434_vm2, %v433_v19, 0  ;;  %v4758_v6 = vpack.c.bf16 %v4703_v20, %v4703_v20  ;;  %v4764_v7 = vpack.c.bf16 %v4705_v23, %v4705_v23  ;;  %v4782_v20 = vld [vmem:[%s4498_s17 + $0x18] sm:$0xff]  ;;  %s5291_s17 = sld [smem:[#allocation20_spill]] }
 0x199   :  { %3768 = vmatpush3.bf16.xpose.msra.mxu1 %v439_v26  ;;  %vm636_vm7 = vcmp.eq.f32.partialorder %v4782_v20, 0.0 }
 0x19a   :  { %3779 = vmatprep.subr.bf16.mxu1 %v4467_v0 }
 0x19c   :  { %585 = vrot.lane.b32.xlu1 %v433_v19, %s4471_s3  ;;  %482 = vrot.lane.b32.xlu0 %v432_v25, %s4470_s25  ;;  %v424_v28 = vpop.f32.mrb[4].mxu0 }
 0x19d   :  { %v425_v29 = vadd.f32 %v3539_v27, %v424_v28  ;;  %v3765_v30 = vpop.f32.mrb[5].mxu0 }
 0x19e   :  { %v427_v31 = vpop.f32.mrb[6].mxu0 }
 0x19f   :  { %v428_v32 = vadd.f32 %v3539_v27, %v427_v31  ;;  %v3766_v33 = vpop.f32.mrb[7].mxu0 }
 0x1a0   :  { %583 = vrot.lane.b32.xlu1 %v432_v25, %s4471_s3  ;;  %533 = vrot.lane.b32.xlu0 %v432_v25, %s4469_s5 }
 0x1a1   :  { %3770 = vmatmul.mubr.msk.bf16.vlgmr.msra.gmra.mrb[4].mxu1 %vm434_vm2, %v432_v25  ;;  %v4718_v34 = vpack.c.bf16 %v428_v32, %v425_v29 }
 0x1a2   :  { %3781 = vmatprep.mubr.msk.bf16.mxu1 %vm4468_vm0, %v4467_v0 }
 0x1a3   :  { %v692_v42 = vsel %vm690_vm3, %v4718_v34, 0 }
 0x20a   :  { %v536_v35 = vpop.permute.xlu1 %535  ;;  %v486_v36 = vpop.permute.xlu0 %485 }
 0x20b   :  { %v541_v37 = vsel %vm434_vm2, %v536_v35, 0  ;;  %v491_v38 = vsel %vm434_vm2, %v486_v36, 0 }
 0x20c   :  { %3774 = vmatpush3.bf16.xpose.msra.mxu0 %v491_v38  ;;  %3780 = vmatpush3.bf16.xpose.msra.mxu1 %v541_v37 }
 0x20d   :  { %3785 = vmatprep.subr.bf16.mxu0 %v4467_v0  ;;  %3791 = vmatprep.subr.bf16.mxu1 %v4467_v0 }
 0x20e   :  { %v483_v39 = vpop.permute.xlu0 %482  ;;  %v586_v40 = vpop.permute.xlu1 %585 }
 0x20f   :  { %v591_v43 = vsel %vm434_vm2, %v586_v40, 0 }
 0x212   :  { %v534_v41 = vpop.permute.xlu0 %533  ;;  %v584_v44 = vpop.permute.xlu1 %583 }
 0x213   :  { %3776 = vmatmul.mubr.msk.bf16.vlgmr.msra.gmra.mrb[8].mxu0 %vm434_vm2, %v483_v39  ;;  %3782 = vmatmul.mubr.msk.bf16.vlgmr.msra.gmra.mrb[8].mxu1 %vm434_vm2, %v534_v41 }
 0x214   :  { %3786 = vmatpush3.bf16.xpose.msra.mxu0 %v591_v43  ;;  %3787 = vmatprep.mubr.msk.bf16.mxu0 %vm4468_vm0, %v4467_v0 }
 0x215   :  { %3792 = vmatpush3.bf16.msra.mxu1 %v692_v42  ;;  %3797 = vmatprep.subr.bf16.mxu0 %v4467_v0 }
 0x216   :  { %3793 = vmatprep.mubr.msk.bf16.mxu1 %vm4468_vm0, %v4467_v0  ;;  %3803 = vmatprep.subr.bf16.mxu1 %v4467_v0 }
 0x21b   :  { %3788 = vmatmul.mubr.msk.bf16.vlgmr.msra.gmra.mrb[12].mxu0 %vm434_vm2, %v584_v44 }
 0x21c   :  { %3799 = vmatprep.mubr.msk.bf16.mxu0 %vm4468_vm0, %v4467_v0 }
 0x274   :  { %v475_v46 = vpop.f32.mrb[4].mxu1 }
 0x275   :  { %v637_v47 = vsel %vm633_vm4, -1e+20, %v475_v46  ;;  %v3771_v48 = vpop.f32.mrb[5].mxu1  ;;  %v245_v46 = vld [vmem:[%s4538_s24 + $0x4] sm:$0xf] }
 0x276   :  { %v478_v49 = vpop.f32.mrb[6].mxu1  ;;  %v641_v50 = vsel %vm434_vm2, %v637_v47, -inf  ;;  %v244_v48 = vld [vmem:[%s4538_s24] sm:$0xf] }
 0x277   :  { %642 = vmax.xlane.f32.xlu0 %v641_v50  ;;  %v3772_v51 = vpop.f32.mrb[7].mxu1  ;;  %v4812_v49 = vsel %vm690_vm3, %v244_v48, 0 }
 0x2e6   :  { %v527_v53 = vpop.f32.mrb[8].mxu0  ;;  %v577_v54 = vpop.f32.mrb[8].mxu1 }
 0x2e7   :  { %v638_v55 = vsel %vm634_vm5, -1e+20, %v527_v53  ;;  %v3777_v56 = vpop.f32.mrb[9].mxu0  ;;  %v3783_v57 = vpop.f32.mrb[9].mxu1  ;;  %v639_v22 = vsel %vm635_vm6, -1e+20, %v577_v54 }
 0x2e8   :  { %v530_v58 = vpop.f32.mrb[10].mxu0  ;;  %v580_v59 = vpop.f32.mrb[10].mxu1  ;;  %v644_v60 = vsel %vm434_vm2, %v638_v55, -inf  ;;  %v647_v23 = vsel %vm434_vm2, %v639_v22, -inf }
 0x2e9   :  { %v3784_v61 = vpop.f32.mrb[11].mxu1  ;;  %645 = vmax.xlane.f32.xlu1 %v644_v60  ;;  %v3778_v62 = vpop.f32.mrb[11].mxu0 }
 0x2ee   :  { %v627_v63 = vpop.f32.mrb[12].mxu0 }
 0x2ef   :  { %v3789_v1 = vpop.f32.mrb[13].mxu0  ;;  %v640_v24 = vsel %vm636_vm7, -1e+20, %v627_v63 }
 0x2f0   :  { %v630_v2 = vpop.f32.mrb[14].mxu0  ;;  %v650_v25 = vsel %vm434_vm2, %v640_v24, -inf }
 0x2f1   :  { %v3790_v3 = vpop.f32.mrb[15].mxu0 }
 0x2fa   :  { %738 = vrot.lane.b32.xlu1 %v4718_v34, %s4470_s25 }
 0x2fe   :  { %879 = vrot.lane.b32.xlu1 %v4718_v34, %s4469_s5 }
 0x302   :  { %1125 = vrot.lane.b32.xlu1 %v4758_v6, %s4470_s25 }
 0x304   :  { %v643_v8 = vpop.xlane.xlu0 %642 }
 0x305   :  { %v653_v9 = vsub.f32 %v637_v47, %v643_v8  ;;  %v4806_v47 = vsel %vm690_vm3, %v245_v46, 0 }
 0x306   :  { %1122 = vrot.lane.b32.xlu1 %v4764_v7, %s4470_s25 }
 0x307   :  { %v657_v10 = vmul.f32 1.442695, %v653_v9 }
 0x309   :  { %4165 = vpow2.f32 %v657_v10 }
 0x30a   :  { %1175 = vrot.lane.b32.xlu1 %v4758_v6, %s4469_s5 }
 0x30e   :  { %1225 = vrot.lane.b32.xlu1 %v4758_v6, %s4471_s3 }
 0x312   :  { %1173 = vrot.lane.b32.xlu1 %v4764_v7, %s4469_s5 }
 0x313   :  { %v4166_v11 = vpop.eup %4165 }
 0x314   :  { %v665_v12 = vsel %vm434_vm2, %v4166_v11, 0.0 }
 0x315   :  { %666 = vadd.xlane.f32.xlu0 %v665_v12 }
 0x376   :  { %v646_v13 = vpop.xlane.xlu1 %645 }
 0x377   :  { %v654_v14 = vsub.f32 %v638_v55, %v646_v13 }
 0x379   :  { %v659_v15 = vmul.f32 1.442695, %v654_v14 }
 0x37a   :  { %v739_v16 = vpop.permute.xlu1 %738 }
 0x37b   :  { %4167 = vpow2.f32 %v659_v15  ;;  %v744_v17 = vsel %vm690_vm3, %v739_v16, 0  ;;  %v1079_v16 = vsel %vm434_vm2, %v4758_v6, 0  ;;  %v4842_v6 = vrot.slane %v4718_v34, 4 }
 0x37c   :  { %3798 = vmatpush3.bf16.msra.mxu0 %v744_v17 }
 0x37d   :  { %3809 = vmatprep.subr.bf16.mxu0 %v4467_v0 }
 0x37e   :  { %v880_v54 = vpop.permute.xlu1 %879 }
 0x37f   :  { %v885_v1 = vsel %vm690_vm3, %v880_v54, 0 }
 0x382   :  { %v1126_v12 = vpop.permute.xlu1 %1125 }
 0x383   :  { %v1131_v48 = vsel %vm434_vm2, %v1126_v12, 0 }
 0x385   :  { %v4168_v19 = vpop.eup %4167 }
 0x386   :  { %v668_v21 = vsel %vm434_vm2, %v4168_v19, 0.0  ;;  %v1123_v14 = vpop.permute.xlu1 %1122 }
 0x387   :  { %669 = vadd.xlane.f32.xlu0 %v668_v21 }
 0x38a   :  { %v1176_v17 = vpop.permute.xlu1 %1175 }
 0x38b   :  { %648 = vmax.xlane.f32.xlu0 %v647_v23  ;;  %v1328_v23 = vsel %vm690_vm3, %v4842_v6, 0 }
 0x38e   :  { %v1226_v21 = vpop.permute.xlu1 %1225 }
 0x38f   :  { %651 = vmax.xlane.f32.xlu0 %v650_v25 }
 0x3a2   :  { %v667_v26 = vpop.xlane.xlu0 %666 }
 0x3a3   :  { %4169 = vrcp.f32 %v667_v26 }
 0x3ad   :  { %v4170_v32 = vpop.eup %4169 }
 0x3ae   :  { %v681_v37 = vmul.f32 %v4170_v32, %v4166_v11 }
 0x414   :  { %v670_v27 = vpop.xlane.xlu0 %669 }
 0x415   :  { %4171 = vrcp.f32 %v670_v27 }
 0x418   :  { %v649_v28 = vpop.xlane.xlu0 %648 }
 0x419   :  { %v655_v29 = vsub.f32 %v639_v22, %v649_v28  ;;  %v1174_v22 = vpop.permute.xlu1 %1173 }
 0x41b   :  { %v661_v30 = vmul.f32 1.442695, %v655_v29 }
 0x41c   :  { %v652_v31 = vpop.xlane.xlu0 %651 }
 0x41d   :  { %4173 = vpow2.f32 %v661_v30  ;;  %v656_v33 = vsub.f32 %v640_v24, %v652_v31 }
 0x41f   :  { %v4172_v35 = vpop.eup %4171  ;;  %v663_v36 = vmul.f32 1.442695, %v656_v33  ;;  %v247_v33 = vld [vmem:[%s4538_s24 + $0xc] sm:$0xf] }
 0x420   :  { %v682_v38 = vmul.f32 %v4172_v35, %v4168_v19  ;;  %v1181_v19 = vsel %vm434_vm2, %v1176_v17, 0 }
 0x421   :  { %4175 = vpow2.f32 %v663_v36 }
 0x422   :  { %v685_v39 = vpack.c.bf16 %v682_v38, %v681_v37  ;;  %v4858_v38 = vsel %vm690_vm3, %v247_v33, 0 }
 0x424   :  { %3794 = vmatmul.mubr.msk.bf16.vlgmr.msra.gmra.mrb[12].mxu1 %vm434_vm2, %v685_v39  ;;  %v736_v40 = vrot.slane %v685_v39, 4 }
 0x425   :  { %3805 = vmatprep.mubr.msk.bf16.mxu1 %vm4468_vm0, %v4467_v0  ;;  %3804 = vmatpush3.bf16.msra.mxu1 %v4806_v47 }
 0x426   :  { %3800 = vmatmul.mubr.msk.bf16.vlgmr.msra.gmra.mrb[16].mxu0 %vm434_vm2, %v736_v40  ;;  %3815 = vmatprep.subr.bf16.mxu1 %v4467_v0 }
 0x427   :  { %v4174_v41 = vpop.eup %4173  ;;  %3811 = vmatprep.mubr.msk.bf16.mxu0 %vm4468_vm0, %v4467_v0  ;;  %3810 = vmatpush3.bf16.msra.mxu0 %v4812_v49 }
 0x428   :  { %v671_v42 = vsel %vm434_vm2, %v4174_v41, 0.0  ;;  %3821 = vmatprep.subr.bf16.mxu0 %v4467_v0 }
 0x429   :  { %672 = vadd.xlane.f32.xlu0 %v671_v42 }
 0x42b   :  { %v4176_v43 = vpop.eup %4175 }
 0x42c   :  { %v674_v44 = vsel %vm434_vm2, %v4176_v43, 0.0 }
 0x42d   :  { %675 = vadd.xlane.f32.xlu0 %v674_v44 }
 0x443   :  { %977 = vrot.lane.b32.xlu0 %v4718_v34, %s4471_s3 }
 0x447   :  { %1223 = vrot.lane.b32.xlu0 %v4764_v7, %s4471_s3 }
 0x4b6   :  { %v673_v50 = vpop.xlane.xlu0 %672 }
 0x4ba   :  { %v676_v51 = vpop.xlane.xlu0 %675 }
 0x4bb   :  { %4177 = vrcp.f32 %v676_v51 }
 0x4bc   :  { %4179 = vrcp.f32 %v673_v50 }
 0x4be   :  { %v978_v10 = vpop.permute.xlu0 %977 }
 0x4bf   :  { %v983_v13 = vsel %vm690_vm3, %v978_v10, 0 }
 0x4c2   :  { %v1224_v45 = vpop.permute.xlu0 %1223 }
 0x4c5   :  { %v4178_v62 = vpop.eup %4177 }
 0x4c6   :  { %v4180_v3 = vpop.eup %4179  ;;  %v684_v8 = vmul.f32 %v4178_v62, %v4176_v43 }
 0x4c7   :  { %v683_v9 = vmul.f32 %v4180_v3, %v4174_v41 }
 0x4c9   :  { %v686_v11 = vpack.c.bf16 %v684_v8, %v683_v9 }
 0x4cb   :  { %v976_v15 = vrot.slane %v686_v11, 4 }
 0x4f7   :  { %v728_v53 = vpop.f32.mrb[12].mxu1 }
 0x4f8   :  { %v734_v55 = vpack.c.bf16 %v728_v53, %v728_v53  ;;  %v3795_v56 = vpop.f32.mrb[13].mxu1 }
 0x4f9   :  { %v731_v57 = vpop.f32.mrb[14].mxu1  ;;  %v780_v58 = vpop.f32.mrb[16].mxu0  ;;  %v1231_v56 = vsel %vm434_vm2, %v1226_v21, 0 }
 0x4fa   :  { %v786_v59 = vpack.c.bf16 %v780_v58, %v780_v58  ;;  %v3796_v60 = vpop.f32.mrb[15].mxu1  ;;  %v3801_v61 = vpop.f32.mrb[17].mxu0  ;;  %3812 = vmatmul.mubr.msk.bf16.vlgmr.msra.gmra.mrb[20].mxu0 %vm434_vm2, %v734_v55 }
 0x4fb   :  { %v783_v63 = vpop.f32.mrb[18].mxu0  ;;  %3823 = vmatprep.mubr.msk.bf16.mxu0 %vm4468_vm0, %v4467_v0 }
 0x4fc   :  { %v3802_v2 = vpop.f32.mrb[19].mxu0  ;;  %3806 = vmatmul.mubr.msk.bf16.vlgmr.msra.gmra.mrb[16].mxu1 %vm434_vm2, %v786_v59 }
 0x4fd   :  { %3816 = vmatpush3.bf16.msra.mxu1 %v885_v1  ;;  %3817 = vmatprep.mubr.msk.bf16.mxu1 %vm4468_vm0, %v4467_v0 }
 0x4fe   :  { %3827 = vmatprep.subr.bf16.mxu1 %v4467_v0 }
 0x504   :  { %3818 = vmatmul.mubr.msk.bf16.vlgmr.msra.gmra.mrb[20].mxu1 %vm434_vm2, %v686_v11 }
 0x505   :  { %3828 = vmatpush3.bf16.msra.mxu1 %v983_v13  ;;  %3829 = vmatprep.mubr.msk.bf16.mxu1 %vm4468_vm0, %v4467_v0 }
 0x506   :  { %3839 = vmatprep.subr.bf16.mxu1 %v4467_v0 }
 0x50c   :  { %3830 = vmatmul.mubr.msk.bf16.vlgmr.msra.gmra.mrb[24].mxu1 %vm434_vm2, %v976_v15 }
 0x50d   :  { %3841 = vmatprep.mubr.msk.bf16.mxu1 %vm4468_vm0, %v4467_v0 }
 0x50e   :  { %3840 = vmatpush3.bf16.xpose.msra.mxu1 %v1079_v16 }
 0x50f   :  { %3851 = vmatprep.subr.bf16.mxu1 %v4467_v0 }
 0x515   :  { %3842 = vmatmul.mubr.msk.bf16.vlgmr.msra.gmra.mrb[28].mxu1 %vm434_vm2, %v4764_v7  ;;  %v246_v7 = vld [vmem:[%s4538_s24 + $0x8] sm:$0xf]  ;;  %s5293_s24 = sld [smem:[#allocation31_spill]] }
 0x516   :  { %3852 = vmatpush3.bf16.xpose.msra.mxu1 %v1181_v19  ;;  %3853 = vmatprep.mubr.msk.bf16.mxu1 %vm4468_vm0, %v4467_v0  ;;  %v4852_v24 = vsel %vm690_vm3, %v246_v7, 0 }
 0x517   :  { %3863 = vmatprep.subr.bf16.mxu1 %v4467_v0  ;;  %3822 = vmatpush3.bf16.msra.mxu0 %v4852_v24 }
 0x518   :  { %3833 = vmatprep.subr.bf16.mxu0 %v4467_v0 }
 0x51d   :  { %3854 = vmatmul.mubr.msk.bf16.vlgmr.msra.gmra.mrb[32].mxu1 %vm434_vm2, %v1174_v22 }
 0x51e   :  { %3864 = vmatpush3.bf16.msra.mxu1 %v1328_v23  ;;  %3865 = vmatprep.mubr.msk.bf16.mxu1 %vm4468_vm0, %v4467_v0 }
 0x51f   :  { %3875 = vmatprep.subr.bf16.mxu1 %v4467_v0 }
 0x5cd   :  { %v873_v34 = vpop.f32.mrb[20].mxu0 }
 0x5ce   :  { %v3813_v25 = vpop.f32.mrb[21].mxu0 }
 0x5cf   :  { %v827_v26 = vpop.f32.mrb[16].mxu1  ;;  %v876_v27 = vpop.f32.mrb[22].mxu0 }
 0x5d0   :  { %v874_v28 = vadd.f32 %v873_v34, %v827_v26  ;;  %v3807_v29 = vpop.f32.mrb[17].mxu1  ;;  %v3814_v30 = vpop.f32.mrb[23].mxu0 }
 0x5d1   :  { %v830_v31 = vpop.f32.mrb[18].mxu1 }
 0x5d2   :  { %v3808_v32 = vpop.f32.mrb[19].mxu1 }
 0x5d7   :  { %v921_v35 = vpop.f32.mrb[20].mxu1 }
 0x5d8   :  { %v927_v36 = vpack.c.bf16 %v921_v35, %v921_v35  ;;  %v3819_v37 = vpop.f32.mrb[21].mxu1 }
 0x5d9   :  { %v924_v39 = vpop.f32.mrb[22].mxu1 }
 0x5da   :  { %v3820_v40 = vpop.f32.mrb[23].mxu1  ;;  %3824 = vmatmul.mubr.msk.bf16.vlgmr.msra.gmra.mrb[24].mxu0 %vm434_vm2, %v927_v36 }
 0x5db   :  { %3834 = vmatpush3.bf16.msra.mxu0 %v4858_v38  ;;  %3835 = vmatprep.mubr.msk.bf16.mxu0 %vm4468_vm0, %v4467_v0 }
 0x5dc   :  { %3845 = vmatprep.subr.bf16.mxu0 %v4467_v0 }
 0x5df   :  { %v1019_v41 = vpop.f32.mrb[24].mxu1 }
 0x5e0   :  { %v1025_v42 = vpack.c.bf16 %v1019_v41, %v1019_v41  ;;  %v3831_v43 = vpop.f32.mrb[25].mxu1 }
 0x5e1   :  { %v1022_v44 = vpop.f32.mrb[26].mxu1 }
 0x5e2   :  { %v3832_v46 = vpop.f32.mrb[27].mxu1  ;;  %3836 = vmatmul.mubr.msk.bf16.vlgmr.msra.gmra.mrb[28].mxu0 %vm434_vm2, %v1025_v42 }
 0x5e3   :  { %3847 = vmatprep.mubr.msk.bf16.mxu0 %vm4468_vm0, %v4467_v0 }
 0x5e4   :  { %3846 = vmatpush3.bf16.xpose.msra.mxu0 %v1131_v48 }
 0x5e5   :  { %3857 = vmatprep.subr.bf16.mxu0 %v4467_v0 }
 0x5e8   :  { %v1115_v50 = vpop.f32.mrb[28].mxu1 }
 0x5e9   :  { %v1273_v51 = vsel %vm633_vm4, -1e+20, %v1115_v50  ;;  %v3843_v53 = vpop.f32.mrb[29].mxu1 }
 0x5ea   :  { %v1118_v54 = vpop.f32.mrb[30].mxu1  ;;  %v1277_v55 = vsel %vm434_vm2, %v1273_v51, -inf }
 0x5eb   :  { %3848 = vmatmul.mubr.msk.bf16.vlgmr.msra.gmra.mrb[32].mxu0 %vm434_vm2, %v1123_v14  ;;  %1278 = vmax.xlane.f32.xlu1 %v1277_v55  ;;  %v3844_v57 = vpop.f32.mrb[31].mxu1 }
 0x5ec   :  { %3858 = vmatpush3.bf16.xpose.msra.mxu0 %v1231_v56  ;;  %3859 = vmatprep.mubr.msk.bf16.mxu0 %vm4468_vm0, %v4467_v0 }
 0x5ed   :  { %3869 = vmatprep.subr.bf16.mxu0 %v4467_v0 }
 0x5f0   :  { %v1217_v58 = vpop.f32.mrb[32].mxu1 }
 0x5f1   :  { %v3855_v59 = vpop.f32.mrb[33].mxu1 }
 0x5f2   :  { %v1220_v60 = vpop.f32.mrb[34].mxu1 }
 0x5f3   :  { %v3856_v61 = vpop.f32.mrb[35].mxu1  ;;  %3860 = vmatmul.mubr.msk.bf16.vlgmr.msra.gmra.mrb[36].mxu0 %vm434_vm2, %v1224_v45 }
 0x5f4   :  { %3871 = vmatprep.mubr.msk.bf16.mxu0 %vm4468_vm0, %v4467_v0 }
 0x678   :  { %v1279_v62 = vpop.xlane.xlu1 %1278 }
 0x679   :  { %v1289_v3 = vsub.f32 %v1273_v51, %v1279_v62 }
 0x67b   :  { %v1293_v10 = vmul.f32 1.442695, %v1289_v3 }
 0x67d   :  { %4181 = vpow2.f32 %v1293_v10 }
 0x687   :  { %v4182_v23 = vpop.eup %4181 }
 0x688   :  { %v1301_v34 = vsel %vm434_vm2, %v4182_v23, 0.0 }
 0x6ad   :  { %v968_v63 = vpop.f32.mrb[24].mxu0 }
 0x6ae   :  { %v974_v1 = vadd.f32 %v968_v63, %v874_v28  ;;  %v3825_v2 = vpop.f32.mrb[25].mxu0 }
 0x6af   :  { %v971_v8 = vpop.f32.mrb[26].mxu0 }
 0x6b0   :  { %v3826_v9 = vpop.f32.mrb[27].mxu0 }
 0x6b5   :  { %v1066_v11 = vpop.f32.mrb[28].mxu0 }
 0x6b6   :  { %v1072_v12 = vadd.f32 %v1066_v11, %v974_v1  ;;  %v3837_v13 = vpop.f32.mrb[29].mxu0 }
 0x6b7   :  { %v1069_v14 = vpop.f32.mrb[30].mxu0 }
 0x6b8   :  { %v3838_v15 = vpop.f32.mrb[31].mxu0  ;;  %v1702_v29 = vadd.f32 %v4889_v52, %v1072_v12 }
 0x6ba   :  { %v1704_v30 = vadd.f32 %v1702_v29, %v4679_v4  ;;  %v1275_v4 = vsel %vm635_vm6, -1e+20, %v1217_v58 }
 0x6bb   :  { %v1283_v42 = vsel %vm434_vm2, %v1275_v4, -inf }
 0x6bc   :  { %v1708_v31 = vsel %vm268_vm1, %v1704_v30, 0.0 }
 0x6be   :  { %v1167_v16 = vpop.f32.mrb[32].mxu0 }
 0x6bf   :  { %v1274_v17 = vsel %vm634_vm5, -1e+20, %v1167_v16  ;;  %v3849_v19 = vpop.f32.mrb[33].mxu0 }
 0x6c0   :  { %v1170_v21 = vpop.f32.mrb[34].mxu0  ;;  %v1280_v22 = vsel %vm434_vm2, %v1274_v17, -inf }
 0x6c1   :  { %1281 = vmax.xlane.f32.xlu0 %v1280_v22  ;;  %v3850_v7 = vpop.f32.mrb[35].mxu0 }
 0x6c5   :  { %1302 = vadd.xlane.f32.xlu0 %v1301_v34 }
 0x6c6   :  { %v1267_v25 = vpop.f32.mrb[36].mxu0 }
 0x6c7   :  { %v3861_v26 = vpop.f32.mrb[37].mxu0  ;;  %v1276_v43 = vsel %vm636_vm7, -1e+20, %v1267_v25 }
 0x6c8   :  { %v1270_v27 = vpop.f32.mrb[38].mxu0  ;;  %v1286_v44 = vsel %vm434_vm2, %v1276_v43, -inf }
 0x6c9   :  { %v3862_v28 = vpop.f32.mrb[39].mxu0 }
 0x6db   :  { %1373 = vrot.lane.b32.xlu0 %v4842_v6, %s4470_s25 }
 0x6df   :  { %1603 = vrot.lane.b32.xlu0 %v4842_v6, %s4471_s3 }
 0x6fe   :  { %1709 = vadd.xlane.f32.xlu0 %v1708_v31 }
 0x74e   :  { %v1282_v32 = vpop.xlane.xlu0 %1281 }
 0x74f   :  { %v1290_v33 = vsub.f32 %v1274_v17, %v1282_v32 }
 0x751   :  { %v1295_v35 = vmul.f32 1.442695, %v1290_v33 }
 0x752   :  { %v1303_v36 = vpop.xlane.xlu0 %1302 }
 0x753   :  { %4183 = vpow2.f32 %v1295_v35 }
 0x754   :  { %4185 = vrcp.f32 %v1303_v36 }
 0x756   :  { %v1374_v37 = vpop.permute.xlu0 %1373 }
 0x757   :  { %v1379_v39 = vsel %vm690_vm3, %v1374_v37, 0 }
 0x758   :  { %3870 = vmatpush3.bf16.msra.mxu0 %v1379_v39 }
 0x759   :  { %3881 = vmatprep.subr.bf16.mxu0 %v4467_v0 }
 0x75a   :  { %v4903_v46 = vpop.permute.xlu0 %1603 }
 0x75b   :  { %v1609_v26 = vsel %vm690_vm3, %v4903_v46, 0 }
 0x75d   :  { %v4184_v40 = vpop.eup %4183 }
 0x75e   :  { %v1304_v41 = vsel %vm434_vm2, %v4184_v40, 0.0  ;;  %v4186_v58 = vpop.eup %4185 }
 0x75f   :  { %1305 = vadd.xlane.f32.xlu1 %v1304_v41  ;;  %v1317_v61 = vmul.f32 %v4186_v58, %v4182_v23 }
 0x763   :  { %1284 = vmax.xlane.f32.xlu1 %v1283_v42 }
 0x767   :  { %1287 = vmax.xlane.f32.xlu1 %v1286_v44 }
 0x78b   :  { %v1710_v48 = vpop.xlane.xlu0 %1709 }
 0x78c   :  { %v1715_v50 = vmul.f32 0.03125, %v1710_v48 }
 0x78e   :  { %v4905_v51 = vsub.f32 %v1704_v30, %v1715_v50 }
 0x790   :  { %v1719_v18 = vmul.f32 %v4905_v51, %v4905_v51 }
 0x792   :  { %v1721_v53 = vsel %vm268_vm1, %v1719_v18, 0.0 }
 0x793   :  { %1722 = vadd.xlane.f32.xlu0 %v1721_v53 }
 0x7ec   :  { %v1306_v54 = vpop.xlane.xlu1 %1305 }
 0x7ed   :  { %4187 = vrcp.f32 %v1306_v54 }
 0x7f0   :  { %v1285_v20 = vpop.xlane.xlu1 %1284 }
 0x7f1   :  { %v1291_v55 = vsub.f32 %v1275_v4, %v1285_v20 }
 0x7f3   :  { %v1297_v56 = vmul.f32 1.442695, %v1291_v55 }
 0x7f4   :  { %v1288_v57 = vpop.xlane.xlu1 %1287 }
 0x7f5   :  { %4189 = vpow2.f32 %v1297_v56  ;;  %v1292_v59 = vsub.f32 %v1276_v43, %v1288_v57 }
 0x7f7   :  { %v4188_v45 = vpop.eup %4187  ;;  %v1299_v60 = vmul.f32 1.442695, %v1292_v59 }
 0x7f8   :  { %v1318_v62 = vmul.f32 %v4188_v45, %v4184_v40 }
 0x7f9   :  { %4191 = vpow2.f32 %v1299_v60 }
 0x7fa   :  { %v1321_v63 = vpack.c.bf16 %v1318_v62, %v1317_v61 }
 0x7fc   :  { %3866 = vmatmul.mubr.msk.bf16.vlgmr.msra.gmra.mrb[36].mxu1 %vm434_vm2, %v1321_v63  ;;  %v1372_v1 = vrot.slane %v1321_v63, 4 }
 0x7fd   :  { %3876 = vmatpush3.bf16.msra.mxu1 %v4806_v47  ;;  %3877 = vmatprep.mubr.msk.bf16.mxu1 %vm4468_vm0, %v4467_v0 }
 0x7fe   :  { %3872 = vmatmul.mubr.msk.bf16.vlgmr.msra.gmra.mrb[40].mxu0 %vm434_vm2, %v1372_v1  ;;  %3887 = vmatprep.subr.bf16.mxu1 %v4467_v0 }
 0x7ff   :  { %v4190_v2 = vpop.eup %4189  ;;  %3882 = vmatpush3.bf16.msra.mxu0 %v4812_v49  ;;  %3883 = vmatprep.mubr.msk.bf16.mxu0 %vm4468_vm0, %v4467_v0 }
 0x800   :  { %v1307_v3 = vsel %vm434_vm2, %v4190_v2, 0.0  ;;  %3893 = vmatprep.subr.bf16.mxu0 %v4467_v0 }
 0x801   :  { %1308 = vadd.xlane.f32.xlu1 %v1307_v3 }
 0x803   :  { %v4192_v8 = vpop.eup %4191 }
 0x804   :  { %v1310_v47 = vsel %vm434_vm2, %v4192_v8, 0.0 }
 0x805   :  { %1311 = vadd.xlane.f32.xlu1 %v1310_v47  ;;  %v217_v47 = vld [vmem:[%s5291_s17] sm:$0xff] }
 0x816   :  { %1508 = vrot.lane.b32.xlu1 %v4842_v6, %s4469_s5 }
 0x88e   :  { %v1309_v9 = vpop.xlane.xlu1 %1308 }
 0x892   :  { %v1312_v10 = vpop.xlane.xlu1 %1311 }
 0x893   :  { %4193 = vrcp.f32 %v1312_v10  ;;  %v4155_v10 = vld [vmem:[%s5292_s14] sm:$0xff]  }
 0x894   :  { %4195 = vrcp.f32 %v1309_v9 }
 0x896   :  { %v1509_v11 = vpop.permute.xlu1 %1508 }
 0x897   :  { %v1514_v6 = vsel %vm690_vm3, %v1509_v11, 0  ;;  %v1723_v11 = vpop.xlane.xlu0 %1722 }
 0x89d   :  { %v4194_v21 = vpop.eup %4193 }
 0x89e   :  { %v4196_v7 = vpop.eup %4195  ;;  %v1320_v34 = vmul.f32 %v4194_v21, %v4192_v8  ;;  %v4153_v8 = vld [vmem:[%s4558_s20] sm:$0xff]  }
 0x89f   :  { %v1319_v25 = vmul.f32 %v4196_v7, %v4190_v2  ;;  %v3568_v21 = vld [vmem:[%s5293_s24] ss:$0 sm:$0xff] }
 0x8a0   :  { %v3569_v7 = vld [vmem:[%s5294_s12] ss:$0 sm:$0xff] }
 0x8cf   :  { %v1364_v49 = vpop.f32.mrb[36].mxu1 }
 0x8d0   :  { %v1370_v12 = vpack.c.bf16 %v1364_v49, %v1364_v49  ;;  %v3867_v13 = vpop.f32.mrb[37].mxu1  ;;  %v4156_v49 = vld [vmem:[%s5292_s14 + $0x8] sm:$0xff]  }
 0x8d1   :  { %v1367_v14 = vpop.f32.mrb[38].mxu1  ;;  %v1415_v15 = vpop.f32.mrb[40].mxu0 }
 0x8d2   :  { %v1421_v16 = vpack.c.bf16 %v1415_v15, %v1415_v15  ;;  %v3868_v17 = vpop.f32.mrb[39].mxu1  ;;  %v3873_v19 = vpop.f32.mrb[41].mxu0  ;;  %3884 = vmatmul.mubr.msk.bf16.vlgmr.msra.gmra.mrb[44].mxu0 %vm434_vm2, %v1370_v12  ;;  %v1727_v12 = vmul.f32 0.03125, %v1723_v11 }
 0x8d3   :  { %v1418_v22 = vpop.f32.mrb[42].mxu0  ;;  %3894 = vmatpush3.bf16.msra.mxu0 %v4852_v24  ;;  %3895 = vmatprep.mubr.msk.bf16.mxu0 %vm4468_vm0, %v4467_v0  ;;  %v1322_v24 = vpack.c.bf16 %v1320_v34, %v1319_v25 }
 0x8d4   :  { %v3874_v23 = vpop.f32.mrb[43].mxu0  ;;  %3878 = vmatmul.mubr.msk.bf16.vlgmr.msra.gmra.mrb[40].mxu1 %vm434_vm2, %v1421_v16  ;;  %3905 = vmatprep.subr.bf16.mxu0 %v4467_v0  ;;  %v1729_v13 = vadd.f32 32.0, %v1727_v12  ;;  %v5033_v12 = vld [vmem:[%s5298_s1 + $0x8] sm:$0xff] }
 0x8d5   :  { %3888 = vmatpush3.bf16.msra.mxu1 %v1514_v6  ;;  %3889 = vmatprep.mubr.msk.bf16.mxu1 %vm4468_vm0, %v4467_v0  ;;  %v1602_v27 = vrot.slane %v1322_v24, 4  ;;  %vm2162_vm9 = vcmp.eq.f32.partialorder %v5033_v12, 0.0  ;;  %v5177_v12 = vld [vmem:[%s5300_s27] ss:$0 sm:$0xff] }
 0x8d6   :  { %3899 = vmatprep.subr.bf16.mxu1 %v4467_v0  ;;  %4197 = vrsqrt.f32 %v1729_v13 }
 0x8dc   :  { %3890 = vmatmul.mubr.msk.bf16.vlgmr.msra.gmra.mrb[44].mxu1 %vm434_vm2, %v1322_v24 }
 0x8dd   :  { %3900 = vmatpush3.bf16.msra.mxu1 %v1609_v26  ;;  %3901 = vmatprep.mubr.msk.bf16.mxu1 %vm4468_vm0, %v4467_v0 }
 0x8de   :  { %3911 = vmatprep.subr.bf16.mxu1 %v4467_v0 }
 0x8e0   :  { %v4198_v17 = vpop.eup %4197 }
 0x8e1   :  { %v1733_v19 = vmul.f32 %v4198_v17, %v4905_v51  ;;  %v3574_v51 = vld [vmem:[#allocation11] ss:$0 sm:$0xff] }
 0x8e3   :  { %v1741_v6 = vmul.f32 %v3568_v21, %v1733_v19 }
 0x8e4   :  { %3902 = vmatmul.mubr.msk.bf16.vlgmr.msra.gmra.mrb[48].mxu1 %vm434_vm2, %v1602_v27 }
 0x8e5   :  { %3915 = vmatprep.mubr.msk.bf16.mxu1 %vm4468_vm0, %v4467_v0  ;;  %3912 = vmatpush3.bf16.msra.mxu1 %v4155_v10  ;;  %v4971_v25 = vadd.f32 %v3569_v7, %v1741_v6 }
 0x8e6   :  { %3913 = vmatprep.subr.bf16.mxu1 %v4467_v0 }
 0x8e9   :  { %3914 = vmatpush3.bf16.msra.mxu1 %v4156_v49 }
 0x8ea   :  { %3927 = vmatprep.subr.bf16.mxu1 %v4467_v0 }
 0x9a5   :  { %v1502_v28 = vpop.f32.mrb[44].mxu0 }
 0x9a6   :  { %v3885_v29 = vpop.f32.mrb[45].mxu0 }
 0x9a7   :  { %v1459_v30 = vpop.f32.mrb[40].mxu1  ;;  %v1505_v31 = vpop.f32.mrb[46].mxu0 }
 0x9a8   :  { %v1503_v32 = vadd.f32 %v1502_v28, %v1459_v30  ;;  %v3879_v33 = vpop.f32.mrb[41].mxu1  ;;  %v3886_v35 = vpop.f32.mrb[47].mxu0 }
 0x9a9   :  { %v1462_v36 = vpop.f32.mrb[42].mxu1 }
 0x9aa   :  { %v3880_v37 = vpop.f32.mrb[43].mxu1 }
 0x9af   :  { %v1550_v39 = vpop.f32.mrb[44].mxu1 }
 0x9b0   :  { %v1556_v40 = vpack.c.bf16 %v1550_v39, %v1550_v39  ;;  %v3891_v41 = vpop.f32.mrb[45].mxu1  ;;  %v219_v39 = vld [vmem:[%s5296_s4] sm:$0xff] }
 0x9b1   :  { %v1553_v4 = vpop.f32.mrb[46].mxu1 }
 0x9b2   :  { %v3892_v42 = vpop.f32.mrb[47].mxu1  ;;  %3896 = vmatmul.mubr.msk.bf16.vlgmr.msra.gmra.mrb[48].mxu0 %vm434_vm2, %v1556_v40  ;;  %v220_v40 = vld [vmem:[%s5296_s4 + $0x8] sm:$0xff] }
 0x9b3   :  { %3906 = vmatpush3.bf16.msra.mxu0 %v4858_v38  ;;  %3907 = vmatprep.mubr.msk.bf16.mxu0 %vm4468_vm0, %v4467_v0  ;;  %v1897_v41 = vpack.c.bf16 %v220_v40, %v219_v39 }
 0x9b4   :  { %3919 = vmatprep.subr.bf16.mxu0 %v4467_v0 }
 0x9b7   :  { %v1645_v43 = vpop.f32.mrb[48].mxu1 }
 0x9b8   :  { %v1651_v44 = vpack.c.bf16 %v1645_v43, %v1645_v43  ;;  %v3903_v46 = vpop.f32.mrb[49].mxu1  ;;  %v3570_v43 = vld [vmem:[#allocation10] ss:$0 sm:$0xff] }
 0x9b9   :  { %v1648_v48 = vpop.f32.mrb[50].mxu1 }
 0x9ba   :  { %v3904_v50 = vpop.f32.mrb[51].mxu1  ;;  %3908 = vmatmul.mubr.msk.bf16.vlgmr.msra.gmra.mrb[52].mxu0 %vm434_vm2, %v1651_v44 }
 0x9bb   :  { %3923 = vmatprep.mubr.msk.bf16.mxu0 %vm4468_vm0, %v4467_v0  ;;  %3920 = vmatpush3.bf16.msra.mxu0 %v4153_v8 }
 0x9bc   :  { %3921 = vmatprep.subr.bf16.mxu0 %v4467_v0 }
 0xa85   :  { %v1594_v18 = vpop.f32.mrb[48].mxu0 }
 0xa86   :  { %v1600_v53 = vadd.f32 %v1594_v18, %v1503_v32  ;;  %v3897_v54 = vpop.f32.mrb[49].mxu0 }
 0xa87   :  { %v1597_v20 = vpop.f32.mrb[50].mxu0 }
 0xa88   :  { %v3898_v38 = vpop.f32.mrb[51].mxu0 }
 0xa8d   :  { %v1689_v55 = vpop.f32.mrb[52].mxu0 }
 0xa8e   :  { %v1695_v56 = vadd.f32 %v1689_v55, %v1600_v53  ;;  %v3909_v57 = vpop.f32.mrb[53].mxu0  ;;  %v3578_v55 = vld [vmem:[%s5297_s28] ss:$0 sm:$0xff] }
 0xa8f   :  { %v1692_v58 = vpop.f32.mrb[54].mxu0 }
 0xa90   :  { %v1703_v59 = vadd.f32 %v4889_v52, %v1695_v56  ;;  %v3910_v45 = vpop.f32.mrb[55].mxu0  ;;  %v4154_v52 = vld [vmem:[%s4558_s20 + $0x8] sm:$0xff]   ;;  %s5295_s20 = sld [smem:[#allocation24_spill]] }
 0xa91   :  { %3922 = vmatpush3.bf16.msra.mxu0 %v4154_v52  ;;  %v5026_v52 = vld [vmem:[%s5298_s1] sm:$0xff] }
 0xa92   :  { %v1705_v60 = vadd.f32 %v1703_v59, %v4682_v5  ;;  %v218_v5 = vld [vmem:[%s5291_s17 + $0x8] sm:$0xff]  ;;  %3935 = vmatprep.subr.bf16.mxu0 %v4467_v0  ;;  %vm2161_vm8 = vcmp.eq.f32.partialorder %v5026_v52, 0.0 }
 0xa93   :  { %v1834_v9 = vpack.c.bf16 %v218_v5, %v217_v47 }
 0xa94   :  { %v1711_v61 = vsel %vm268_vm1, %v1705_v60, 0.0 }
 0xa95   :  { %1712 = vadd.xlane.f32.xlu1 %v1711_v61  ;;  %3924 = vmatmul.mubr.msk.bf16.vlgmr.msra.gmra.mrb[56].mxu0 %vm268_vm1, %v1834_v9 }
 0xa96   :  { %3937 = vmatprep.mubr.msk.bf16.mxu0 %vm4468_vm0, %v4467_v0  ;;  %v4157_v36 = vld [vmem:[%s5295_s20] sm:$0xff]   ;;  %v4158_v37 = vld [vmem:[%s5295_s20 + $0x8] sm:$0xff]  }
 0xb22   :  { %v1713_v62 = vpop.xlane.xlu1 %1712 }
 0xb23   :  { %v1716_v63 = vmul.f32 0.03125, %v1713_v62 }
 0xb25   :  { %v1718_v1 = vsub.f32 %v1705_v60, %v1716_v63 }
 0xb27   :  { %v1720_v2 = vmul.f32 %v1718_v1, %v1718_v1 }
 0xb29   :  { %v1724_v3 = vsel %vm268_vm1, %v1720_v2, 0.0 }
 0xb2a   :  { %1725 = vadd.xlane.f32.xlu0 %v1724_v3 }
 0xb68   :  { %v1890_v27 = vpop.f32.mrb[56].mxu0 }
 0xb69   :  { %v1891_v28 = vadd.f32 %v3574_v51, %v1890_v27  ;;  %v3925_v29 = vpop.f32.mrb[57].mxu0 }
 0xb6a   :  { %v1893_v30 = vpop.f32.mrb[58].mxu0 }
 0xb6b   :  { %v1962_v31 = vpack.c.bf16 %v1891_v28, %v1891_v28  ;;  %v4980_v32 = vadd.f32 %v3574_v51, %v1893_v30  ;;  %v3926_v33 = vpop.f32.mrb[59].mxu0 }
 0xb6d   :  { %2013 = vrot.lane.b32.xlu0 %v1962_v31, %s4470_s25  ;;  %v1967_v35 = vsel %vm434_vm2, %v1962_v31, 0  ;;  %v5045_v27 = vpack.c.bf16 %v4980_v32, %v4980_v32 }
 0xb6e   :  { %3936 = vmatpush3.bf16.xpose.msra.mxu0 %v1967_v35 }
 0xb6f   :  { %3947 = vmatprep.subr.bf16.mxu0 %v4467_v0 }
 0xb71   :  { %2063 = vrot.lane.b32.xlu0 %v1962_v31, %s4469_s5 }
 0xbb7   :  { %v1726_v14 = vpop.xlane.xlu0 %1725 }
 0xbb8   :  { %v1728_v15 = vmul.f32 0.03125, %v1726_v14 }
 0xbba   :  { %v1730_v16 = vadd.f32 32.0, %v1728_v15 }
 0xbbc   :  { %4199 = vrsqrt.f32 %v1730_v16 }
 0xbc6   :  { %v4200_v22 = vpop.eup %4199 }
 0xbc7   :  { %v1734_v23 = vmul.f32 %v4200_v22, %v1718_v1 }
 0xbc9   :  { %v1742_v34 = vmul.f32 %v3568_v21, %v1734_v23 }
 0xbcb   :  { %v4973_v24 = vadd.f32 %v3569_v7, %v1742_v34 }
 0xbcd   :  { %v1771_v26 = vpack.c.bf16 %v4973_v24, %v4971_v25 }
 0xbcf   :  { %3916 = vmatmul.mubr.msk.bf16.vlgmr.msra.gmra.mrb[52].mxu1 %vm268_vm1, %v1771_v26 }
 0xbd0   :  { %3931 = vmatprep.mubr.msk.bf16.mxu1 %vm4468_vm0, %v4467_v0  ;;  %3928 = vmatpush3.bf16.msra.mxu1 %v4157_v36 }
 0xbd1   :  { %3929 = vmatprep.subr.bf16.mxu1 %v4467_v0 }
 0xbd4   :  { %3930 = vmatpush3.bf16.msra.mxu1 %v4158_v37 }
 0xbd5   :  { %3941 = vmatprep.subr.bf16.mxu1 %v4467_v0 }
 0xbd7   :  { %3932 = vmatmul.mubr.msk.bf16.vlgmr.msra.gmra.mrb[56].mxu1 %vm268_vm1, %v1897_v41  ;;  %v5065_v41 = vld [vmem:[%s5298_s1 + $0x10] sm:$0xff] }
 0xbd8   :  { %3943 = vmatprep.mubr.msk.bf16.mxu1 %vm4468_vm0, %v4467_v0  ;;  %vm2163_vm10 = vcmp.eq.f32.partialorder %v5065_v41, 0.0 }
 0xbdf   :  { %v2014_v4 = vpop.permute.xlu0 %2013 }
 0xbe0   :  { %v2019_v42 = vsel %vm434_vm2, %v2014_v4, 0 }
 0xbe1   :  { %3942 = vmatpush3.bf16.xpose.msra.mxu1 %v2019_v42  ;;  %v5069_v42 = vld [vmem:[%s5298_s1 + $0x18] sm:$0xff] }
 0xbe2   :  { %3953 = vmatprep.subr.bf16.mxu1 %v4467_v0  ;;  %vm2164_vm11 = vcmp.eq.f32.partialorder %v5069_v42, 0.0 }
 0xbe3   :  { %v2064_v50 = vpop.permute.xlu0 %2063 }
 0xbe4   :  { %v2069_v38 = vsel %vm434_vm2, %v2064_v50, 0 }
 0xca2   :  { %v1827_v44 = vpop.f32.mrb[52].mxu1 }
 0xca3   :  { %v1828_v46 = vadd.f32 %v3570_v43, %v1827_v44  ;;  %v3917_v48 = vpop.f32.mrb[53].mxu1 }
 0xca4   :  { %v1830_v18 = vpop.f32.mrb[54].mxu1 }
 0xca5   :  { %v1961_v53 = vpack.c.bf16 %v1828_v46, %v1828_v46  ;;  %v4997_v54 = vadd.f32 %v3570_v43, %v1830_v18  ;;  %v3918_v20 = vpop.f32.mrb[55].mxu1 }
 0xca7   :  { %2010 = vrot.lane.b32.xlu1 %v1961_v53, %s4470_s25  ;;  %2061 = vrot.lane.b32.xlu0 %v1961_v53, %s4469_s5  ;;  %v5051_v28 = vpack.c.bf16 %v4997_v54, %v4997_v54 }
 0xca8   :  { %3938 = vmatmul.mubr.msk.bf16.vlgmr.msra.gmra.mrb[60].mxu0 %vm434_vm2, %v1961_v53 }
 0xca9   :  { %3948 = vmatpush3.bf16.xpose.msra.mxu0 %v2069_v38  ;;  %3949 = vmatprep.mubr.msk.bf16.mxu0 %vm4468_vm0, %v4467_v0 }
 0xcaa   :  { %3959 = vmatprep.subr.bf16.mxu0 %v4467_v0  ;;  %v1953_v56 = vpop.f32.mrb[56].mxu1 }
 0xcab   :  { %2113 = vrot.lane.b32.xlu1 %v1962_v31, %s4471_s3  ;;  %v1954_v57 = vadd.f32 %v3578_v55, %v1953_v56  ;;  %v3933_v58 = vpop.f32.mrb[57].mxu1 }
 0xcac   :  { %v1956_v59 = vpop.f32.mrb[58].mxu1 }
 0xcad   :  { %v1957_v45 = vadd.f32 %v3578_v55, %v1956_v59  ;;  %v3934_v60 = vpop.f32.mrb[59].mxu1 }
 0xcaf   :  { %2111 = vrot.lane.b32.xlu1 %v1961_v53, %s4471_s3  ;;  %v5009_v61 = vpack.c.bf16 %v1957_v45, %v1954_v57 }
 0xcb1   :  { %v2219_v62 = vsel %vm690_vm3, %v5009_v61, 0 }
 0xd19   :  { %v2011_v63 = vpop.permute.xlu1 %2010  ;;  %v2062_v1 = vpop.permute.xlu0 %2061 }
 0xd1a   :  { %3944 = vmatmul.mubr.msk.bf16.vlgmr.msra.gmra.mrb[60].mxu1 %vm434_vm2, %v2011_v63  ;;  %3950 = vmatmul.mubr.msk.bf16.vlgmr.msra.gmra.mrb[64].mxu0 %vm434_vm2, %v2062_v1 }
 0xd1b   :  { %3955 = vmatprep.mubr.msk.bf16.mxu1 %vm4468_vm0, %v4467_v0  ;;  %3960 = vmatpush3.bf16.msra.mxu0 %v2219_v62 }
 0xd1c   :  { %3961 = vmatprep.mubr.msk.bf16.mxu0 %vm4468_vm0, %v4467_v0  ;;  %3971 = vmatprep.subr.bf16.mxu0 %v4467_v0 }
 0xd1d   :  { %v2114_v2 = vpop.permute.xlu1 %2113 }
 0xd1e   :  { %v2119_v3 = vsel %vm434_vm2, %v2114_v2, 0 }
 0xd1f   :  { %3954 = vmatpush3.bf16.xpose.msra.mxu1 %v2119_v3 }
 0xd20   :  { %3965 = vmatprep.subr.bf16.mxu1 %v4467_v0 }
 0xd21   :  { %v2112_v8 = vpop.permute.xlu1 %2111 }
 0xd26   :  { %3956 = vmatmul.mubr.msk.bf16.vlgmr.msra.gmra.mrb[64].mxu1 %vm434_vm2, %v2112_v8 }
 0xd27   :  { %3967 = vmatprep.mubr.msk.bf16.mxu1 %vm4468_vm0, %v4467_v0 }
 0xd7b   :  { %v2003_v47 = vpop.f32.mrb[60].mxu0 }
 0xd7c   :  { %v2165_v5 = vsel %vm2161_vm8, -1e+20, %v2003_v47  ;;  %v3939_v9 = vpop.f32.mrb[61].mxu0  ;;  %v1767_v47 = vld [vmem:[%s5299_s0 + $0x4] sm:$0xf] }
 0xd7d   :  { %v2006_v10 = vpop.f32.mrb[62].mxu0  ;;  %v2169_v49 = vsel %vm434_vm2, %v2165_v5, -inf  ;;  %v1766_v9 = vld [vmem:[%s5299_s0] sm:$0xf] }
 0xd7e   :  { %2170 = vmax.xlane.f32.xlu0 %v2169_v49  ;;  %v3940_v11 = vpop.f32.mrb[63].mxu0  ;;  %v5099_v10 = vsel %vm690_vm3, %v1766_v9, 0 }
 0xded   :  { %v2055_v13 = vpop.f32.mrb[60].mxu1  ;;  %v2105_v14 = vpop.f32.mrb[64].mxu0 }
 0xdee   :  { %v2166_v15 = vsel %vm2162_vm9, -1e+20, %v2055_v13  ;;  %v3945_v16 = vpop.f32.mrb[61].mxu1  ;;  %v3951_v17 = vpop.f32.mrb[65].mxu0  ;;  %v2167_v44 = vsel %vm2163_vm10, -1e+20, %v2105_v14 }
 0xdef   :  { %v2058_v19 = vpop.f32.mrb[62].mxu1  ;;  %v2108_v21 = vpop.f32.mrb[66].mxu0  ;;  %v2172_v22 = vsel %vm434_vm2, %v2166_v15, -inf  ;;  %v2175_v46 = vsel %vm434_vm2, %v2167_v44, -inf }
 0xdf0   :  { %2173 = vmax.xlane.f32.xlu1 %v2172_v22  ;;  %v3946_v6 = vpop.f32.mrb[63].mxu1  ;;  %v3952_v23 = vpop.f32.mrb[67].mxu0 }
 0xdf9   :  { %v2155_v7 = vpop.f32.mrb[64].mxu1 }
 0xdfa   :  { %v3957_v34 = vpop.f32.mrb[65].mxu1  ;;  %v2168_v48 = vsel %vm2164_vm11, -1e+20, %v2155_v7 }
 0xdfb   :  { %v2158_v26 = vpop.f32.mrb[66].mxu1  ;;  %v2178_v50 = vsel %vm434_vm2, %v2168_v48, -inf }
 0xdfc   :  { %v3958_v51 = vpop.f32.mrb[67].mxu1 }
 0xe01   :  { %2265 = vrot.lane.b32.xlu1 %v5009_v61, %s4470_s25 }
 0xe05   :  { %2406 = vrot.lane.b32.xlu1 %v5009_v61, %s4469_s5 }
 0xe09   :  { %2652 = vrot.lane.b32.xlu1 %v5045_v27, %s4470_s25 }
 0xe0b   :  { %v2171_v29 = vpop.xlane.xlu0 %2170 }
 0xe0c   :  { %v2181_v30 = vsub.f32 %v2165_v5, %v2171_v29  ;;  %v5093_v5 = vsel %vm690_vm3, %v1767_v47, 0 }
 0xe0d   :  { %2649 = vrot.lane.b32.xlu1 %v5051_v28, %s4470_s25 }
 0xe0e   :  { %v2185_v31 = vmul.f32 1.442695, %v2181_v30 }
 0xe10   :  { %4201 = vpow2.f32 %v2185_v31 }
 0xe11   :  { %2702 = vrot.lane.b32.xlu1 %v5045_v27, %s4469_s5 }
 0xe15   :  { %2752 = vrot.lane.b32.xlu1 %v5045_v27, %s4471_s3 }
 0xe19   :  { %2700 = vrot.lane.b32.xlu1 %v5051_v28, %s4469_s5 }
 0xe1a   :  { %v4202_v32 = vpop.eup %4201 }
 0xe1b   :  { %v2193_v33 = vsel %vm434_vm2, %v4202_v32, 0.0 }
 0xe1c   :  { %2194 = vadd.xlane.f32.xlu0 %v2193_v33 }
 0xe7d   :  { %v2174_v35 = vpop.xlane.xlu1 %2173 }
 0xe7e   :  { %v2182_v36 = vsub.f32 %v2166_v15, %v2174_v35 }
 0xe80   :  { %v2187_v37 = vmul.f32 1.442695, %v2182_v36 }
 0xe81   :  { %v2266_v39 = vpop.permute.xlu1 %2265 }
 0xe82   :  { %4203 = vpow2.f32 %v2187_v37  ;;  %v2271_v40 = vsel %vm690_vm3, %v2266_v39, 0  ;;  %v2606_v39 = vsel %vm434_vm2, %v5045_v27, 0  ;;  %v5129_v27 = vrot.slane %v5009_v61, 4 }
 0xe83   :  { %3966 = vmatpush3.bf16.msra.mxu1 %v2271_v40 }
 0xe84   :  { %3977 = vmatprep.subr.bf16.mxu1 %v4467_v0 }
 0xe85   :  { %v2407_v14 = vpop.permute.xlu1 %2406 }
 0xe86   :  { %v2412_v34 = vsel %vm690_vm3, %v2407_v14, 0 }
 0xe89   :  { %v2653_v33 = vpop.permute.xlu1 %2652 }
 0xe8a   :  { %v2658_v9 = vsel %vm434_vm2, %v2653_v33, 0 }
 0xe8c   :  { %v4204_v4 = vpop.eup %4203 }
 0xe8d   :  { %v2196_v43 = vsel %vm434_vm2, %v4204_v4, 0.0  ;;  %v2650_v36 = vpop.permute.xlu1 %2649 }
 0xe8e   :  { %2197 = vadd.xlane.f32.xlu0 %v2196_v43 }
 0xe91   :  { %v2703_v40 = vpop.permute.xlu1 %2702 }
 0xe92   :  { %2176 = vmax.xlane.f32.xlu0 %v2175_v46  ;;  %v2855_v46 = vsel %vm690_vm3, %v5129_v27, 0 }
 0xe95   :  { %v2753_v43 = vpop.permute.xlu1 %2752 }
 0xe96   :  { %2179 = vmax.xlane.f32.xlu0 %v2178_v50 }
 0xea9   :  { %v2195_v18 = vpop.xlane.xlu0 %2194 }
 0xeaa   :  { %4205 = vrcp.f32 %v2195_v18 }
 0xeb4   :  { %v4206_v56 = vpop.eup %4205 }
 0xeb5   :  { %v2209_v45 = vmul.f32 %v4206_v56, %v4202_v32 }
 0xf1b   :  { %v2198_v53 = vpop.xlane.xlu0 %2197 }
 0xf1c   :  { %4207 = vrcp.f32 %v2198_v53 }
 0xf1f   :  { %v2177_v54 = vpop.xlane.xlu0 %2176 }
 0xf20   :  { %v2183_v20 = vsub.f32 %v2167_v44, %v2177_v54  ;;  %v2701_v44 = vpop.permute.xlu1 %2700 }
 0xf22   :  { %v2189_v38 = vmul.f32 1.442695, %v2183_v20 }
 0xf23   :  { %v2180_v55 = vpop.xlane.xlu0 %2179 }
 0xf24   :  { %4209 = vpow2.f32 %v2189_v38  ;;  %v2184_v57 = vsub.f32 %v2168_v48, %v2180_v55 }
 0xf26   :  { %v4208_v58 = vpop.eup %4207  ;;  %v2191_v59 = vmul.f32 1.442695, %v2184_v57  ;;  %v1769_v57 = vld [vmem:[%s5299_s0 + $0xc] sm:$0xf] }
 0xf27   :  { %v2210_v60 = vmul.f32 %v4208_v58, %v4204_v4  ;;  %v2708_v4 = vsel %vm434_vm2, %v2703_v40, 0 }
 0xf28   :  { %4211 = vpow2.f32 %v2191_v59 }
 0xf29   :  { %v2213_v62 = vpack.c.bf16 %v2210_v60, %v2209_v45  ;;  %v5145_v60 = vsel %vm690_vm3, %v1769_v57, 0 }
 0xf2b   :  { %3962 = vmatmul.mubr.msk.bf16.vlgmr.msra.gmra.mrb[68].mxu0 %vm434_vm2, %v2213_v62  ;;  %v2263_v63 = vrot.slane %v2213_v62, 4 }
 0xf2c   :  { %3973 = vmatprep.mubr.msk.bf16.mxu0 %vm4468_vm0, %v4467_v0  ;;  %3972 = vmatpush3.bf16.msra.mxu0 %v5093_v5 }
 0xf2d   :  { %3968 = vmatmul.mubr.msk.bf16.vlgmr.msra.gmra.mrb[68].mxu1 %vm434_vm2, %v2263_v63  ;;  %3983 = vmatprep.subr.bf16.mxu0 %v4467_v0 }
 0xf2e   :  { %v4210_v1 = vpop.eup %4209  ;;  %3979 = vmatprep.mubr.msk.bf16.mxu1 %vm4468_vm0, %v4467_v0  ;;  %3978 = vmatpush3.bf16.msra.mxu1 %v5099_v10 }
 0xf2f   :  { %v2199_v2 = vsel %vm434_vm2, %v4210_v1, 0.0  ;;  %3989 = vmatprep.subr.bf16.mxu1 %v4467_v0 }
 0xf30   :  { %2200 = vadd.xlane.f32.xlu0 %v2199_v2 }
 0xf32   :  { %v4212_v3 = vpop.eup %4211 }
 0xf33   :  { %v2202_v8 = vsel %vm434_vm2, %v4212_v3, 0.0 }
 0xf34   :  { %2203 = vadd.xlane.f32.xlu0 %v2202_v8 }
 0xf4a   :  { %2504 = vrot.lane.b32.xlu0 %v5009_v61, %s4471_s3 }
 0xf4e   :  { %2750 = vrot.lane.b32.xlu0 %v5051_v28, %s4471_s3 }
 0xfbd   :  { %v2201_v49 = vpop.xlane.xlu0 %2200 }
 0xfc1   :  { %v2204_v11 = vpop.xlane.xlu0 %2203 }
 0xfc2   :  { %4213 = vrcp.f32 %v2204_v11 }
 0xfc3   :  { %4215 = vrcp.f32 %v2201_v49 }
 0xfc5   :  { %v2505_v31 = vpop.permute.xlu0 %2504 }
 0xfc6   :  { %v2510_v35 = vsel %vm690_vm3, %v2505_v31, 0 }
 0xfc9   :  { %v2751_v52 = vpop.permute.xlu0 %2750 }
 0xfcc   :  { %v4214_v23 = vpop.eup %4213 }
 0xfcd   :  { %v4216_v51 = vpop.eup %4215  ;;  %v2212_v29 = vmul.f32 %v4214_v23, %v4212_v3 }
 0xfce   :  { %v2211_v30 = vmul.f32 %v4216_v51, %v4210_v1 }
 0xfd0   :  { %v2214_v32 = vpack.c.bf16 %v2212_v29, %v2211_v30 }
 0xfd2   :  { %v2503_v37 = vrot.slane %v2214_v32, 4 }
 0xffe   :  { %v2255_v13 = vpop.f32.mrb[68].mxu0 }
 0xfff   :  { %v2261_v15 = vpack.c.bf16 %v2255_v13, %v2255_v13  ;;  %v3963_v16 = vpop.f32.mrb[69].mxu0 }
0x1000   :  { %v2258_v17 = vpop.f32.mrb[70].mxu0  ;;  %v2307_v19 = vpop.f32.mrb[68].mxu1  ;;  %v2758_v16 = vsel %vm434_vm2, %v2753_v43, 0 }
0x1001   :  { %v2313_v21 = vpack.c.bf16 %v2307_v19, %v2307_v19  ;;  %v3964_v22 = vpop.f32.mrb[71].mxu0  ;;  %v3969_v6 = vpop.f32.mrb[69].mxu1  ;;  %3980 = vmatmul.mubr.msk.bf16.vlgmr.msra.gmra.mrb[72].mxu1 %vm434_vm2, %v2261_v15 }
0x1002   :  { %v2310_v7 = vpop.f32.mrb[70].mxu1  ;;  %3991 = vmatprep.mubr.msk.bf16.mxu1 %vm4468_vm0, %v4467_v0 }
0x1003   :  { %v3970_v26 = vpop.f32.mrb[71].mxu1  ;;  %3974 = vmatmul.mubr.msk.bf16.vlgmr.msra.gmra.mrb[72].mxu0 %vm434_vm2, %v2313_v21 }
0x1004   :  { %3984 = vmatpush3.bf16.msra.mxu0 %v2412_v34  ;;  %3985 = vmatprep.mubr.msk.bf16.mxu0 %vm4468_vm0, %v4467_v0 }
0x1005   :  { %3995 = vmatprep.subr.bf16.mxu0 %v4467_v0 }
0x100b   :  { %3986 = vmatmul.mubr.msk.bf16.vlgmr.msra.gmra.mrb[76].mxu0 %vm434_vm2, %v2214_v32 }
0x100c   :  { %3996 = vmatpush3.bf16.msra.mxu0 %v2510_v35  ;;  %3997 = vmatprep.mubr.msk.bf16.mxu0 %vm4468_vm0, %v4467_v0 }
0x100d   :  { %4007 = vmatprep.subr.bf16.mxu0 %v4467_v0 }
0x1013   :  { %3998 = vmatmul.mubr.msk.bf16.vlgmr.msra.gmra.mrb[80].mxu0 %vm434_vm2, %v2503_v37 }
0x1014   :  { %4009 = vmatprep.mubr.msk.bf16.mxu0 %vm4468_vm0, %v4467_v0 }
0x1015   :  { %4008 = vmatpush3.bf16.xpose.msra.mxu0 %v2606_v39 }
0x1016   :  { %4019 = vmatprep.subr.bf16.mxu0 %v4467_v0 }
0x101c   :  { %4010 = vmatmul.mubr.msk.bf16.vlgmr.msra.gmra.mrb[84].mxu0 %vm434_vm2, %v5051_v28  ;;  %v1768_v28 = vld [vmem:[%s5299_s0 + $0x8] sm:$0xf] }
0x101d   :  { %4020 = vmatpush3.bf16.xpose.msra.mxu0 %v2708_v4  ;;  %4021 = vmatprep.mubr.msk.bf16.mxu0 %vm4468_vm0, %v4467_v0  ;;  %v5139_v48 = vsel %vm690_vm3, %v1768_v28, 0 }
0x101e   :  { %4031 = vmatprep.subr.bf16.mxu0 %v4467_v0  ;;  %3990 = vmatpush3.bf16.msra.mxu1 %v5139_v48 }
0x101f   :  { %4001 = vmatprep.subr.bf16.mxu1 %v4467_v0 }
0x1024   :  { %4022 = vmatmul.mubr.msk.bf16.vlgmr.msra.gmra.mrb[88].mxu0 %vm434_vm2, %v2701_v44 }
0x1025   :  { %4032 = vmatpush3.bf16.msra.mxu0 %v2855_v46  ;;  %4033 = vmatprep.mubr.msk.bf16.mxu0 %vm4468_vm0, %v4467_v0 }
0x1026   :  { %4043 = vmatprep.subr.bf16.mxu0 %v4467_v0 }
0x10d4   :  { %v2400_v61 = vpop.f32.mrb[72].mxu1 }
0x10d5   :  { %v3981_v50 = vpop.f32.mrb[73].mxu1 }
0x10d6   :  { %v2354_v18 = vpop.f32.mrb[72].mxu0  ;;  %v2403_v53 = vpop.f32.mrb[74].mxu1 }
0x10d7   :  { %v2401_v54 = vadd.f32 %v2400_v61, %v2354_v18  ;;  %v3975_v20 = vpop.f32.mrb[73].mxu0  ;;  %v3982_v38 = vpop.f32.mrb[75].mxu1 }
0x10d8   :  { %v2357_v55 = vpop.f32.mrb[74].mxu0 }
0x10d9   :  { %v3976_v56 = vpop.f32.mrb[75].mxu0 }
0x10de   :  { %v2448_v58 = vpop.f32.mrb[76].mxu0 }
0x10df   :  { %v2454_v59 = vpack.c.bf16 %v2448_v58, %v2448_v58  ;;  %v3987_v45 = vpop.f32.mrb[77].mxu0 }
0x10e0   :  { %v2451_v62 = vpop.f32.mrb[78].mxu0 }
0x10e1   :  { %v3988_v63 = vpop.f32.mrb[79].mxu0  ;;  %3992 = vmatmul.mubr.msk.bf16.vlgmr.msra.gmra.mrb[76].mxu1 %vm434_vm2, %v2454_v59 }
0x10e2   :  { %4002 = vmatpush3.bf16.msra.mxu1 %v5145_v60  ;;  %4003 = vmatprep.mubr.msk.bf16.mxu1 %vm4468_vm0, %v4467_v0 }
0x10e3   :  { %4013 = vmatprep.subr.bf16.mxu1 %v4467_v0 }
0x10e6   :  { %v2546_v1 = vpop.f32.mrb[80].mxu0 }
0x10e7   :  { %v2552_v2 = vpack.c.bf16 %v2546_v1, %v2546_v1  ;;  %v3999_v3 = vpop.f32.mrb[81].mxu0 }
0x10e8   :  { %v2549_v8 = vpop.f32.mrb[82].mxu0 }
0x10e9   :  { %v4000_v47 = vpop.f32.mrb[83].mxu0  ;;  %4004 = vmatmul.mubr.msk.bf16.vlgmr.msra.gmra.mrb[80].mxu1 %vm434_vm2, %v2552_v2 }
0x10ea   :  { %4015 = vmatprep.mubr.msk.bf16.mxu1 %vm4468_vm0, %v4467_v0 }
0x10eb   :  { %4014 = vmatpush3.bf16.xpose.msra.mxu1 %v2658_v9 }
0x10ec   :  { %4025 = vmatprep.subr.bf16.mxu1 %v4467_v0 }
0x10ef   :  { %v2642_v49 = vpop.f32.mrb[84].mxu0 }
0x10f0   :  { %v2800_v11 = vsel %vm2161_vm8, -1e+20, %v2642_v49  ;;  %v4011_v13 = vpop.f32.mrb[85].mxu0 }
0x10f1   :  { %v2645_v14 = vpop.f32.mrb[86].mxu0  ;;  %v2804_v15 = vsel %vm434_vm2, %v2800_v11, -inf }
0x10f2   :  { %4016 = vmatmul.mubr.msk.bf16.vlgmr.msra.gmra.mrb[84].mxu1 %vm434_vm2, %v2650_v36  ;;  %2805 = vmax.xlane.f32.xlu1 %v2804_v15  ;;  %v4012_v17 = vpop.f32.mrb[87].mxu0 }
0x10f3   :  { %4026 = vmatpush3.bf16.xpose.msra.mxu1 %v2758_v16  ;;  %4027 = vmatprep.mubr.msk.bf16.mxu1 %vm4468_vm0, %v4467_v0 }
0x10f4   :  { %4037 = vmatprep.subr.bf16.mxu1 %v4467_v0 }
0x10f7   :  { %v2744_v19 = vpop.f32.mrb[88].mxu0 }
0x10f8   :  { %v4023_v21 = vpop.f32.mrb[89].mxu0 }
0x10f9   :  { %v2747_v22 = vpop.f32.mrb[90].mxu0 }
0x10fa   :  { %v4024_v6 = vpop.f32.mrb[91].mxu0  ;;  %4028 = vmatmul.mubr.msk.bf16.vlgmr.msra.gmra.mrb[88].mxu1 %vm434_vm2, %v2751_v52 }
0x10fb   :  { %4039 = vmatprep.mubr.msk.bf16.mxu1 %vm4468_vm0, %v4467_v0 }
0x117f   :  { %v2806_v23 = vpop.xlane.xlu1 %2805 }
0x1180   :  { %v2816_v51 = vsub.f32 %v2800_v11, %v2806_v23 }
0x1182   :  { %v2820_v31 = vmul.f32 1.442695, %v2816_v51 }
0x1184   :  { %4217 = vpow2.f32 %v2820_v31 }
0x118e   :  { %v4218_v46 = vpop.eup %4217 }
0x118f   :  { %v2828_v61 = vsel %vm434_vm2, %v4218_v46, 0.0 }
0x11b4   :  { %v2495_v7 = vpop.f32.mrb[76].mxu1 }
0x11b5   :  { %v2501_v34 = vadd.f32 %v2495_v7, %v2401_v54  ;;  %v3993_v26 = vpop.f32.mrb[77].mxu1 }
0x11b6   :  { %v2498_v29 = vpop.f32.mrb[78].mxu1 }
0x11b7   :  { %v3994_v30 = vpop.f32.mrb[79].mxu1 }
0x11bc   :  { %v2593_v32 = vpop.f32.mrb[80].mxu1 }
0x11bd   :  { %v2599_v33 = vadd.f32 %v2593_v32, %v2501_v34  ;;  %v4005_v35 = vpop.f32.mrb[81].mxu1 }
0x11be   :  { %v2596_v36 = vpop.f32.mrb[82].mxu1 }
0x11bf   :  { %v4006_v37 = vpop.f32.mrb[83].mxu1  ;;  %v3229_v20 = vadd.f32 %v5177_v12, %v2599_v33 }
0x11c1   :  { %v3231_v38 = vadd.f32 %v3229_v20, %v4971_v25  ;;  %v2802_v25 = vsel %vm2163_vm10, -1e+20, %v2744_v19 }
0x11c2   :  { %v2810_v2 = vsel %vm434_vm2, %v2802_v25, -inf }
0x11c3   :  { %v3235_v55 = vsel %vm268_vm1, %v3231_v38, 0.0 }
0x11c5   :  { %v2694_v39 = vpop.f32.mrb[84].mxu1 }
0x11c6   :  { %v2801_v40 = vsel %vm2162_vm9, -1e+20, %v2694_v39  ;;  %v4017_v4 = vpop.f32.mrb[85].mxu1 }
0x11c7   :  { %v2697_v43 = vpop.f32.mrb[86].mxu1  ;;  %v2807_v44 = vsel %vm434_vm2, %v2801_v40, -inf }
0x11c8   :  { %2808 = vmax.xlane.f32.xlu0 %v2807_v44  ;;  %v4018_v28 = vpop.f32.mrb[87].mxu1 }
0x11cc   :  { %2829 = vadd.xlane.f32.xlu0 %v2828_v61 }
0x11cd   :  { %v2794_v50 = vpop.f32.mrb[88].mxu1 }
0x11ce   :  { %v4029_v18 = vpop.f32.mrb[89].mxu1  ;;  %v2803_v3 = vsel %vm2164_vm11, -1e+20, %v2794_v50 }
0x11cf   :  { %v2797_v53 = vpop.f32.mrb[90].mxu1  ;;  %v2813_v8 = vsel %vm434_vm2, %v2803_v3, -inf }
0x11d0   :  { %v4030_v54 = vpop.f32.mrb[91].mxu1 }
0x11e2   :  { %2900 = vrot.lane.b32.xlu0 %v5129_v27, %s4470_s25 }
0x11e6   :  { %3130 = vrot.lane.b32.xlu0 %v5129_v27, %s4471_s3 }
0x1205   :  { %3236 = vadd.xlane.f32.xlu0 %v3235_v55 }
0x1255   :  { %v2809_v56 = vpop.xlane.xlu0 %2808 }
0x1256   :  { %v2817_v57 = vsub.f32 %v2801_v40, %v2809_v56 }
0x1258   :  { %v2822_v58 = vmul.f32 1.442695, %v2817_v57 }
0x1259   :  { %v2830_v59 = vpop.xlane.xlu0 %2829 }
0x125a   :  { %4219 = vpow2.f32 %v2822_v58 }
0x125b   :  { %4221 = vrcp.f32 %v2830_v59 }
0x125d   :  { %v2901_v45 = vpop.permute.xlu0 %2900 }
0x125e   :  { %v2906_v62 = vsel %vm690_vm3, %v2901_v45, 0 }
0x125f   :  { %4038 = vmatpush3.bf16.msra.mxu1 %v2906_v62 }
0x1260   :  { %4049 = vmatprep.subr.bf16.mxu1 %v4467_v0 }
0x1261   :  { %v5191_v47 = vpop.permute.xlu0 %3130 }
0x1262   :  { %v3136_v18 = vsel %vm690_vm3, %v5191_v47, 0 }
0x1264   :  { %v4220_v63 = vpop.eup %4219 }
0x1265   :  { %v2831_v1 = vsel %vm434_vm2, %v4220_v63, 0.0  ;;  %v4222_v19 = vpop.eup %4221 }
0x1266   :  { %2832 = vadd.xlane.f32.xlu1 %v2831_v1  ;;  %v2844_v6 = vmul.f32 %v4222_v19, %v4218_v46 }
0x126a   :  { %2811 = vmax.xlane.f32.xlu1 %v2810_v2 }
0x126e   :  { %2814 = vmax.xlane.f32.xlu1 %v2813_v8 }
0x1292   :  { %v3237_v9 = vpop.xlane.xlu0 %3236 }
0x1293   :  { %v3241_v49 = vmul.f32 0.03125, %v3237_v9 }
0x1295   :  { %v5193_v11 = vsub.f32 %v3231_v38, %v3241_v49 }
0x1297   :  { %v3245_v41 = vmul.f32 %v5193_v11, %v5193_v11 }
0x1299   :  { %v3247_v13 = vsel %vm268_vm1, %v3245_v41, 0.0 }
0x129a   :  { %3248 = vadd.xlane.f32.xlu0 %v3247_v13 }
0x12f3   :  { %v2833_v14 = vpop.xlane.xlu1 %2832 }
0x12f4   :  { %4223 = vrcp.f32 %v2833_v14 }
0x12f7   :  { %v2812_v42 = vpop.xlane.xlu1 %2811 }
0x12f8   :  { %v2818_v15 = vsub.f32 %v2802_v25, %v2812_v42 }
0x12fa   :  { %v2824_v16 = vmul.f32 1.442695, %v2818_v15 }
0x12fb   :  { %v2815_v17 = vpop.xlane.xlu1 %2814 }
0x12fc   :  { %4225 = vpow2.f32 %v2824_v16  ;;  %v2819_v21 = vsub.f32 %v2803_v3, %v2815_v17 }
0x12fe   :  { %v4224_v52 = vpop.eup %4223  ;;  %v2826_v22 = vmul.f32 1.442695, %v2819_v21 }
0x12ff   :  { %v2845_v23 = vmul.f32 %v4224_v52, %v4220_v63 }
0x1300   :  { %4227 = vpow2.f32 %v2826_v22 }
0x1301   :  { %v2848_v7 = vpack.c.bf16 %v2845_v23, %v2844_v6 }
0x1303   :  { %4034 = vmatmul.mubr.msk.bf16.vlgmr.msra.gmra.mrb[92].mxu0 %vm434_vm2, %v2848_v7  ;;  %v2899_v34 = vrot.slane %v2848_v7, 4 }
0x1304   :  { %4044 = vmatpush3.bf16.msra.mxu0 %v5093_v5  ;;  %4045 = vmatprep.mubr.msk.bf16.mxu0 %vm4468_vm0, %v4467_v0 }
0x1305   :  { %4040 = vmatmul.mubr.msk.bf16.vlgmr.msra.gmra.mrb[92].mxu1 %vm434_vm2, %v2899_v34  ;;  %4055 = vmatprep.subr.bf16.mxu0 %v4467_v0 }
0x1306   :  { %v4226_v26 = vpop.eup %4225  ;;  %4050 = vmatpush3.bf16.msra.mxu1 %v5099_v10  ;;  %4051 = vmatprep.mubr.msk.bf16.mxu1 %vm4468_vm0, %v4467_v0 }
0x1307   :  { %v2834_v51 = vsel %vm434_vm2, %v4226_v26, 0.0  ;;  %4061 = vmatprep.subr.bf16.mxu1 %v4467_v0 }
0x1308   :  { %2835 = vadd.xlane.f32.xlu1 %v2834_v51 }
0x130a   :  { %v4228_v29 = vpop.eup %4227 }
0x130b   :  { %v2837_v5 = vsel %vm434_vm2, %v4228_v29, 0.0 }
0x130c   :  { %2838 = vadd.xlane.f32.xlu1 %v2837_v5  ;;  %v4160_v5 = vld [vmem:[#allocation13 + $0x8] sm:$0xff]  }
0x131d   :  { %3035 = vrot.lane.b32.xlu1 %v5129_v27, %s4469_s5 }
0x1395   :  { %v2836_v30 = vpop.xlane.xlu1 %2835 }
0x1399   :  { %v2839_v31 = vpop.xlane.xlu1 %2838 }
0x139a   :  { %4229 = vrcp.f32 %v2839_v31 }
0x139b   :  { %4231 = vrcp.f32 %v2836_v30  ;;  %v3249_v30 = vpop.xlane.xlu0 %3248 }
0x139c   :  { %v3253_v31 = vmul.f32 0.03125, %v3249_v30 }
0x139d   :  { %v3036_v32 = vpop.permute.xlu1 %3035 }
0x139e   :  { %v3041_v27 = vsel %vm690_vm3, %v3036_v32, 0 }
0x13a4   :  { %v4230_v43 = vpop.eup %4229 }
0x13a5   :  { %v4232_v28 = vpop.eup %4231  ;;  %v2847_v61 = vmul.f32 %v4230_v43, %v4228_v29  ;;  %v4159_v29 = vld [vmem:[#allocation13] sm:$0xff]  }
0x13a6   :  { %v2846_v50 = vmul.f32 %v4232_v28, %v4226_v26 }
0x13d6   :  { %v2891_v10 = vpop.f32.mrb[92].mxu0 }
0x13d7   :  { %v2897_v33 = vpack.c.bf16 %v2891_v10, %v2891_v10  ;;  %v4035_v35 = vpop.f32.mrb[93].mxu0  ;;  %v3255_v10 = vadd.f32 32.0, %v3253_v31 }
0x13d8   :  { %v2894_v36 = vpop.f32.mrb[94].mxu0  ;;  %v2942_v37 = vpop.f32.mrb[92].mxu1 }
0x13d9   :  { %v2948_v39 = vpack.c.bf16 %v2942_v37, %v2942_v37  ;;  %v4036_v40 = vpop.f32.mrb[95].mxu0  ;;  %v4041_v4 = vpop.f32.mrb[93].mxu1  ;;  %4052 = vmatmul.mubr.msk.bf16.vlgmr.msra.gmra.mrb[96].mxu1 %vm434_vm2, %v2897_v33  ;;  %4233 = vrsqrt.f32 %v3255_v10 }
0x13da   :  { %v2945_v44 = vpop.f32.mrb[94].mxu1  ;;  %4062 = vmatpush3.bf16.msra.mxu1 %v5139_v48  ;;  %4063 = vmatprep.mubr.msk.bf16.mxu1 %vm4468_vm0, %v4467_v0  ;;  %v2849_v48 = vpack.c.bf16 %v2847_v61, %v2846_v50  ;;  %v4163_v50 = vld [vmem:[%s5301_s2 + $0x10] sm:$0xff]  }
0x13db   :  { %v4042_v46 = vpop.f32.mrb[95].mxu1  ;;  %4046 = vmatmul.mubr.msk.bf16.vlgmr.msra.gmra.mrb[96].mxu0 %vm434_vm2, %v2948_v39  ;;  %4073 = vmatprep.subr.bf16.mxu1 %v4467_v0  ;;  %v3607_v39 = vld [vmem:[%s5302_s7] ss:$0 sm:$0xff] }
0x13dc   :  { %4056 = vmatpush3.bf16.msra.mxu0 %v3041_v27  ;;  %4057 = vmatprep.mubr.msk.bf16.mxu0 %vm4468_vm0, %v4467_v0  ;;  %v3129_v53 = vrot.slane %v2849_v48, 4  ;;  %v3608_v44 = vld [vmem:[%s4623_s6] ss:$0 sm:$0xff]  ;;  %s4472_s6 = smov [#allocation14]  }
0x13dd   :  { %4067 = vmatprep.subr.bf16.mxu0 %v4467_v0  ;;  %s3485_s15 = sshll.u32 %s4472_s6, 4  ;;  %s3486_s15 = int_to_ptr.vmem [resolvable:$true] %s3485_s15 }
0x13de   :  { %s4395_s29 = scalar_lea.vmem %s3486_s15, 256  ;;  %p4400_p1 = scmp.lt.s32.totalorder %s3486_s15, %s3486_s15 }
0x13df   :  { %p4396_p0 = scmp.ne.s32.totalorder %s3486_s15, %s4395_s29  ;;  %p4401_p2 = scmp.lt.s32.totalorder %s4395_s29, %s4395_s29 }
0x13e1   :  { %p4402_p3 = por %p4401_p2, %p4400_p1 }
0x13e3   :  { %4058 = vmatmul.mubr.msk.bf16.vlgmr.msra.gmra.mrb[100].mxu0 %vm434_vm2, %v2849_v48  ;;  %v4234_v36 = vpop.eup %4233  ;;  %v4164_v48 = vld [vmem:[%s5301_s2 + $0x18] sm:$0xff]   ;;  %p4403_p4 = pnand %p4402_p3, %p4396_p0 }
0x13e4   :  { %4068 = vmatpush3.bf16.msra.mxu0 %v3136_v18  ;;  %4069 = vmatprep.mubr.msk.bf16.mxu0 %vm4468_vm0, %v4467_v0  ;;  %v3259_v37 = vmul.f32 %v4234_v36, %v5193_v11  ;;  %v3609_v11 = vld [vmem:[%s5303_s10] ss:$0 sm:$0xff] }
0x13e5   :  { %4079 = vmatprep.subr.bf16.mxu0 %v4467_v0 }
0x13e6   :  { %v3267_v4 = vmul.f32 %v3607_v39, %v3259_v37 }
0x13e8   :  { %v3275_v46 = vadd.f32 %v3608_v44, %v3267_v4 }
0x13eb   :  { %4070 = vmatmul.mubr.msk.bf16.vlgmr.msra.gmra.mrb[104].mxu0 %vm434_vm2, %v3129_v53 }
0x13ec   :  { %4083 = vmatprep.mubr.msk.bf16.mxu0 %vm4468_vm0, %v4467_v0  ;;  %4080 = vmatpush3.bf16.msra.mxu0 %v4159_v29 }
0x13ed   :  { %4081 = vmatprep.subr.bf16.mxu0 %v4467_v0 }
0x13f0   :  { %4082 = vmatpush3.bf16.msra.mxu0 %v4160_v5 }
0x14ac   :  { %v3029_v54 = vpop.f32.mrb[96].mxu1 }
0x14ad   :  { %v4053_v20 = vpop.f32.mrb[97].mxu1 }
0x14ae   :  { %v2986_v38 = vpop.f32.mrb[96].mxu0  ;;  %v3032_v55 = vpop.f32.mrb[98].mxu1 }
0x14af   :  { %v3030_v56 = vadd.f32 %v3029_v54, %v2986_v38  ;;  %v4047_v57 = vpop.f32.mrb[97].mxu0  ;;  %v4054_v58 = vpop.f32.mrb[99].mxu1 }
0x14b0   :  { %v2989_v59 = vpop.f32.mrb[98].mxu0 }
0x14b1   :  { %v4048_v45 = vpop.f32.mrb[99].mxu0  ;;  %v3613_v59 = vld [vmem:[%s5304_s11] ss:$0 sm:$0xff] }
0x14b6   :  { %v3077_v62 = vpop.f32.mrb[100].mxu0 }
0x14b7   :  { %v3083_v63 = vpack.c.bf16 %v3077_v62, %v3077_v62  ;;  %v4059_v1 = vpop.f32.mrb[101].mxu0 }
0x14b8   :  { %v3080_v25 = vpop.f32.mrb[102].mxu0 }
0x14b9   :  { %v4060_v2 = vpop.f32.mrb[103].mxu0  ;;  %4064 = vmatmul.mubr.msk.bf16.vlgmr.msra.gmra.mrb[100].mxu1 %vm434_vm2, %v3083_v63 }
0x14ba   :  { %4074 = vmatpush3.bf16.msra.mxu1 %v5145_v60  ;;  %4075 = vmatprep.mubr.msk.bf16.mxu1 %vm4468_vm0, %v4467_v0 }
0x14bb   :  { %4087 = vmatprep.subr.bf16.mxu1 %v4467_v0 }
0x14be   :  { %v3172_v3 = vpop.f32.mrb[104].mxu0 }
0x14bf   :  { %v3178_v8 = vpack.c.bf16 %v3172_v3, %v3172_v3  ;;  %v4071_v47 = vpop.f32.mrb[105].mxu0 }
0x14c0   :  { %v3175_v9 = vpop.f32.mrb[106].mxu0 }
0x14c1   :  { %v4072_v49 = vpop.f32.mrb[107].mxu0  ;;  %4076 = vmatmul.mubr.msk.bf16.vlgmr.msra.gmra.mrb[104].mxu1 %vm434_vm2, %v3178_v8 }
0x14c2   :  { %4095 = vmatprep.mubr.msk.bf16.mxu1 %vm4468_vm0, %v4467_v0 }
0x158c   :  { %v3121_v41 = vpop.f32.mrb[100].mxu1 }
0x158d   :  { %v3127_v13 = vadd.f32 %v3121_v41, %v3030_v56  ;;  %v4065_v14 = vpop.f32.mrb[101].mxu1 }
0x158e   :  { %v3124_v42 = vpop.f32.mrb[102].mxu1 }
0x158f   :  { %v4066_v60 = vpop.f32.mrb[103].mxu1 }
0x1594   :  { %v3216_v15 = vpop.f32.mrb[104].mxu1 }
0x1595   :  { %v3222_v16 = vadd.f32 %v3216_v15, %v3127_v13  ;;  %v4077_v17 = vpop.f32.mrb[105].mxu1 }
0x1596   :  { %v3219_v19 = vpop.f32.mrb[106].mxu1 }
0x1597   :  { %v3230_v21 = vadd.f32 %v5177_v12, %v3222_v16  ;;  %v4078_v52 = vpop.f32.mrb[107].mxu1  ;;  %v4161_v12 = vld [vmem:[%s5301_s2] sm:$0xff]  }
0x1598   :  { %4088 = vmatpush3.bf16.msra.mxu1 %v4161_v12 }
0x1599   :  { %v3232_v22 = vadd.f32 %v3230_v21, %v4973_v24  ;;  %v4162_v24 = vld [vmem:[%s5301_s2 + $0x8] sm:$0xff]   ;;  %4089 = vmatprep.subr.bf16.mxu1 %v4467_v0 }
0x159b   :  { %v3238_v6 = vsel %vm268_vm1, %v3232_v22, 0.0 }
0x159c   :  { %3239 = vadd.xlane.f32.xlu1 %v3238_v6  ;;  %4090 = vmatpush3.bf16.msra.mxu1 %v4162_v24 }
0x159d   :  { %4091 = vmatprep.subr.bf16.mxu1 %v4467_v0 }
0x15a0   :  { %4092 = vmatpush3.bf16.msra.mxu1 %v4163_v50 }
0x15a1   :  { %4093 = vmatprep.subr.bf16.mxu1 %v4467_v0 }
0x15a4   :  { %4094 = vmatpush3.bf16.msra.mxu1 %v4164_v48 }
0x1629   :  { %v3240_v23 = vpop.xlane.xlu1 %3239 }
0x162a   :  { %v3242_v7 = vmul.f32 0.03125, %v3240_v23 }
0x162c   :  { %v3244_v34 = vsub.f32 %v3232_v22, %v3242_v7 }
0x162e   :  { %v3246_v26 = vmul.f32 %v3244_v34, %v3244_v34 }
0x1630   :  { %v3250_v51 = vsel %vm268_vm1, %v3246_v26, 0.0 }
0x1631   :  { %3251 = vadd.xlane.f32.xlu0 %v3250_v51  ;;  %v3620_v51 = vld [vmem:[%s4633_s21] ss:$0 sm:$0xff] }
0x16be   :  { %v3252_v32 = vpop.xlane.xlu0 %3251 }
0x16bf   :  { %v3254_v33 = vmul.f32 0.03125, %v3252_v32 }
0x16c1   :  { %v3256_v35 = vadd.f32 32.0, %v3254_v33 }
0x16c3   :  { %4235 = vrsqrt.f32 %v3256_v35 }
0x16cd   :  { %v4236_v40 = vpop.eup %4235 }
0x16ce   :  { %v3260_v43 = vmul.f32 %v4236_v40, %v3244_v34  ;;  %v3619_v34 = vld [vmem:[%s4628_s9] ss:$0 sm:$0xff] }
0x16d0   :  { %v3268_v27 = vmul.f32 %v3607_v39, %v3260_v43 }
0x16d2   :  { %v3276_v28 = vadd.f32 %v3608_v44, %v3268_v27 }
0x16d4   :  { %v3277_v61 = vpack.c.bf16 %v3276_v28, %v3275_v46 }
0x16d6   :  { %4084 = vmatmul.mubr.msk.bf16.vlgmr.msra.gmra.mrb[108].mxu0 %vm268_vm1, %v3277_v61 }
0x17a9   :  { %v3338_v18 = vpop.f32.mrb[108].mxu0 }
0x17aa   :  { %v3339_v53 = vadd.f32 %v3609_v11, %v3338_v18  ;;  %v4085_v54 = vpop.f32.mrb[109].mxu0 }
0x17ab   :  { %v3341_v20 = vpop.f32.mrb[110].mxu0 }
0x17ac   :  { %v3342_v38 = vadd.f32 %v3609_v11, %v3341_v20  ;;  %v4086_v55 = vpop.f32.mrb[111].mxu0  ;;  %v3345_v56 = vmax.f32 %v3339_v53, 0.0 }
0x17ae   :  { %v3346_v57 = vmax.f32 %v3342_v38, 0.0 }
0x17b0   :  { %v3347_v58 = vpack.c.bf16 %v3346_v57, %v3345_v56 }
0x17b2   :  { %4096 = vmatmul.mubr.msk.bf16.vlgmr.msra.gmra.mrb[108].mxu1 %vm3387_vm12, %v3347_v58 }
0x1885   :  { %v3425_v45 = vpop.f32.mrb[108].mxu1 }
0x1886   :  { %v3426_v62 = vadd.f32 %v3613_v59, %v3425_v45  ;;  %v4097_v63 = vpop.f32.mrb[109].mxu1 }
0x1887   :  { %v3428_v1 = vpop.f32.mrb[110].mxu1 }
0x1888   :  { %v3429_v0 = vadd.f32 %v3613_v59, %v3428_v1  ;;  %v4098_v25 = vpop.f32.mrb[111].mxu1  ;;  %v3432_v2 = vadd.f32 %v3426_v62, %v3275_v46 }
0x188a   :  { %v3436_v3 = vsel %vm268_vm1, %v3432_v2, 0.0  ;;  %v3433_v8 = vadd.f32 %v3429_v0, %v3276_v28 }
0x188b   :  { %3437 = vadd.xlane.f32.xlu0 %v3436_v3 }
0x188c   :  { %v3439_v47 = vsel %vm268_vm1, %v3433_v8, 0.0 }
0x188f   :  { %3440 = vadd.xlane.f32.xlu0 %v3439_v47 }
0x1918   :  { %v3438_v9 = vpop.xlane.xlu0 %3437 }
0x1919   :  { %v3442_v49 = vmul.f32 0.03125, %v3438_v9 }
0x191b   :  { %v3444_v41 = vsub.f32 %v3432_v2, %v3442_v49 }
0x191c   :  { %v3441_v13 = vpop.xlane.xlu0 %3440 }
0x191d   :  { %v3443_v14 = vmul.f32 0.03125, %v3441_v13  ;;  %v3446_v42 = vmul.f32 %v3444_v41, %v3444_v41 }
0x191f   :  { %v3445_v60 = vsub.f32 %v3433_v8, %v3443_v14  ;;  %v3448_v15 = vsel %vm268_vm1, %v3446_v42, 0.0 }
0x1920   :  { %3449 = vadd.xlane.f32.xlu1 %v3448_v15 }
0x1921   :  { %v3447_v16 = vmul.f32 %v3445_v60, %v3445_v60 }
0x1923   :  { %v3451_v17 = vsel %vm268_vm1, %v3447_v16, 0.0 }
0x1924   :  { %3452 = vadd.xlane.f32.xlu0 %v3451_v17 }
0x19ad   :  { %v3450_v19 = vpop.xlane.xlu1 %3449 }
0x19ae   :  { %v3454_v21 = vmul.f32 0.03125, %v3450_v19 }
0x19b0   :  { %v3456_v52 = vadd.f32 32.0, %v3454_v21 }
0x19b1   :  { %v3453_v22 = vpop.xlane.xlu0 %3452 }
0x19b2   :  { %4237 = vrsqrt.f32 %v3456_v52  ;;  %v3455_v6 = vmul.f32 0.03125, %v3453_v22 }
0x19b4   :  { %v3457_v23 = vadd.f32 32.0, %v3455_v6 }
0x19b6   :  { %4239 = vrsqrt.f32 %v3457_v23 }
0x19bc   :  { %v4238_v7 = vpop.eup %4237 }
0x19bd   :  { %v3460_v26 = vmul.f32 %v4238_v7, %v3444_v41 }
0x19bf   :  { %v3468_v29 = vmul.f32 %v3619_v34, %v3460_v26 }
0x19c0   :  { %v4240_v5 = vpop.eup %4239 }
0x19c1   :  { %v3461_v12 = vmul.f32 %v4240_v5, %v3445_v60  ;;  %v3476_v24 = vadd.f32 %v3620_v51, %v3468_v29 }
0x19c3   :  { %v3469_v30 = vmul.f32 %v3619_v34, %v3461_v12  ;;  %3478 = vst.msk [vmem:[#allocation14] sm:$0xff] %vm268_vm1, %v3476_v24 }
0x19c5   :  { %v3477_v31 = vadd.f32 %v3620_v51, %v3469_v30 }
0x19c7   :  { %3479 = vst.msk [vmem:[#allocation14 + $0x8] sm:$0xff] %vm268_vm1, %v3477_v31 }
0x19c8   :  { %4406 = shalt.err (!%p4403_p4)
}
0x19c9   :  { %s4407_s9 = scalar_lea.hbm %s4638_s13, 256 }
0x19ca   :  { %p4408_p5 = scmp.ne.s32.totalorder %s4638_s13, %s4407_s9  ;;  %p4411_p6 = scmp.lt.u32.totalorder %s4407_s9, %s4638_s13 }
0x19cc   :  { %p4413_p7 = pnand %p4411_p6, %p4408_p5 }
0x19ce   :  { %4416 = shalt.err (!%p4413_p7)
}
0x19cf   :  { %s4473_s21 = smov 128   ;;  %s4474_s8 = smov 8  }
0x19d0   :  { %3491 = dma.vmem_to_hbm [thread:$0]  %s3486_s15, 256, %s4638_s13, [#allocation4], %s4473_s21, %s4473_s21, %s4474_s8  }
0x19d1   :  { %4425 = dma.done.wait [#allocation4], 256  }
0x19d2   :  { %4426 = vsyncadd [#allocation4], 4294967040 }
0x19d3   :  { %3495 = vsyncpa [#allocation3], 1 }
0x19d4   :  { %3496 = vsyncpa [#allocation6], 1 }
0x19d5   :  { %3497 = vsyncpa [#allocation9], 1 }
0x19d6   :  { %3498 = vsyncpa [#allocation12], 1 }
0x19d7   :  { %3499 = vsyncpa [#allocation4], 1 }

</bundles_post_ra>
